<compile_context>
chip_gen: v7x
topology: tpu7x:2x2x1
jax: 0.10.0
libtpu: 0.0.40
codegen_flags: <defaults>
</compile_context>

<pallas_src>
import jax
import jax.numpy as jnp
from jax.experimental import pallas as pl
from jax.experimental.pallas import tpu as pltpu


_VMEM_LIMIT = 32 * 1024 * 1024  # bytes; safe on v5e/v6e (128 MiB) and v7x (64 MiB)


def _round_up(x, m):
    return (x + m - 1) // m * m


def _choose_tile(m, max_tile):
    """Row tile (multiple of 8) for a 1-D 'parallel' grid over m rows.

    Prefers (a) exact division (no ragged tail block), (b) >= 2 grid steps so
    both v7x TensorCores get work, (c) tiles as large as possible (<= max_tile)
    to amortize the ~0.35us per-grid-step overhead.  Falls back to a ragged
    last block (Pallas masks the partial write) when m has no friendly divisor.
    """
    if m <= 8:
        return 8
    hi = min(max_tile, (m // 2) // 8 * 8)
    for t in range(hi, 7, -8):           # largest multiple-of-8 divisor, >=2 steps
        if m % t == 0:
            return t
    if m % 8 == 0 and m <= max_tile:
        return m                          # single full-extent block
    return max(8, min(max_tile, _round_up(-(-m // 2), 8)))   # ragged tail block


# ---------------------------------------------------------------------------
# Kernel A: conv (matmul over pool-grouped, row-packed im2col patches)
#           + folded-BN shift + ReLU + fused 2x2 max-pool, lane-dense output.
#   x_ref : (4, tm, Kp)  bf16   4 = position inside the 2x2 pool window,
#                               Kp = pack * (kh*kw*Cin)  (row-packed patches)
#   w_ref : (Kp, 128)    bf16   block-diagonal, BN scale folded into columns
#   s_ref : (1, 128)     f32    folded shift, tiled over the packed rows
#   o_ref : (tm, 128)    bf16   `pack` pooled rows per 128-lane output row
# ---------------------------------------------------------------------------
def _conv_pool_kernel(x_ref, w_ref, s_ref, o_ref):
    _, tm, kp = x_ref.shape
    cp = w_ref.shape[1]
    w = w_ref[...]
    if tm % 8 == 0:
        # One long LHS keeps the MXU push/pop pipeline full; the leading-dim
        # merge/split reshapes are layout no-ops because tm % 8 == 0.
        z = jnp.dot(x_ref[...].reshape(4 * tm, kp), w,
                    preferred_element_type=jnp.float32)
        z = jnp.max(z.reshape(4, tm, cp), axis=0)            # 2x2 max-pool
    else:  # trace-time fallback (full-extent non-8-aligned block): running max
        z = jnp.dot(x_ref[0], w, preferred_element_type=jnp.float32)
        for q in range(1, 4):
            z = jnp.maximum(z, jnp.dot(x_ref[q], w,
                                       preferred_element_type=jnp.float32))
    # Per-channel shift is identical across the 4 window positions so it
    # commutes with the max; ReLU is monotone so it commutes as well.
    o_ref[...] = jnp.maximum(z + s_ref[...], 0.0).astype(o_ref.dtype)


def conv_bn_relu_pool(patches, w, shift, *, max_tile=1024):
    """patches: (4, Mp, Kp) bf16; w: (Kp, 128) bf16; shift: (1, 128) f32.
    Returns (Mp, 128) bf16 = row-packed maxpool2x2(relu(conv*scale + shift))."""
    _, m, kp = patches.shape
    cp = w.shape[1]
    tm = _choose_tile(m, max_tile)
    grid = -(-m // tm)
    cost = pl.CostEstimate(
        flops=int(2 * 4 * m * kp * cp),
        transcendentals=0,
        bytes_accessed=int(patches.size * 2 + w.size * 2 + shift.size * 4
                           + m * cp * 2),
    )
    return pl.pallas_call(
        _conv_pool_kernel,
        out_shape=jax.ShapeDtypeStruct((m, cp), jnp.bfloat16),
        grid=(grid,),
        in_specs=[
            pl.BlockSpec((4, tm, kp), lambda i: (0, i, 0)),
            pl.BlockSpec((kp, cp), lambda i: (0, 0)),
            pl.BlockSpec((1, cp), lambda i: (0, 0)),
        ],
        out_specs=pl.BlockSpec((tm, cp), lambda i: (i, 0)),
        compiler_params=pltpu.CompilerParams(
            dimension_semantics=("parallel",),
            vmem_limit_bytes=_VMEM_LIMIT,
        ),
        cost_estimate=cost,
    )(patches, w, shift)


# ---------------------------------------------------------------------------
# Kernel B: conv3+bn3+relu+pool + flatten + fc1/bn4/relu + fc2/bn5/relu + fc3.
#   x_ref  : (4, 9, tn, 576) bf16  conv3 patches (window, position, image, K)
#   w3_ref : (576, 128) bf16 ; s3_ref : (1, 128) f32
#   w1_ref : (9, 128, 256) bf16 (fc1 grouped by spatial position); s1: (1, 256)
#   w2_ref : (256, 128) bf16 ; s2_ref : (1, 128) f32
#   wf3_ref: (128, 10) bf16 ; b3_ref : (1, 10) f32
#   o_ref  : (tn, 10) f32
# ---------------------------------------------------------------------------
def _conv3_fc_kernel(x_ref, w3_ref, s3_ref, w1_ref, s1_ref, w2_ref, s2_ref,
                     wf3_ref, b3_ref, o_ref):
    _, npos, tn, k3 = x_ref.shape
    c3 = w3_ref.shape[1]
    # conv3 as one long MXU dot over all (window, position, image) rows.
    x = x_ref[...].reshape(4 * npos * tn, k3)
    z = jnp.dot(x, w3_ref[...], preferred_element_type=jnp.float32)
    z = jnp.max(z.reshape(4, npos, tn, c3), axis=0)          # 2x2 max-pool
    z = jnp.maximum(z + s3_ref[...], 0.0).astype(jnp.bfloat16)   # bn3 + relu
    # Flatten + fc1: nine contiguous (tn,128)x(128,256) chunk-dots; the fc1
    # weight is pre-grouped as (position, cin, out), so no in-kernel relayout.
    h = jnp.dot(z[0], w1_ref[0], preferred_element_type=jnp.float32)
    for p in range(1, npos):
        h = h + jnp.dot(z[p], w1_ref[p], preferred_element_type=jnp.float32)
    h = jnp.maximum(h + s1_ref[...], 0.0).astype(jnp.bfloat16)   # bn4 + relu
    h = jnp.dot(h, w2_ref[...], preferred_element_type=jnp.float32)
    h = jnp.maximum(h + s2_ref[...], 0.0).astype(jnp.bfloat16)   # bn5 + relu
    o_ref[...] = (jnp.dot(h, wf3_ref[...], preferred_element_type=jnp.float32)
                  + b3_ref[...])


def conv3_fc_head(patches3, f, *, max_tile=128):
    """patches3: (4, 9, N8, 576) bf16 pool/position-grouped conv3 patches.
    Returns (N8, 10) f32 logits."""
    _, npos, n8, k3 = patches3.shape
    c3 = f["w3"].shape[1]
    tn = _choose_tile(n8, max_tile)
    grid = -(-n8 // tn)

    def full(a):
        nd = a.ndim
        return pl.BlockSpec(a.shape, lambda i, _nd=nd: (0,) * _nd)

    flops = 2 * n8 * (4 * npos * k3 * c3 + npos * c3 * 256 + 256 * 128 + 128 * 10)
    bytes_acc = (patches3.size * 2 + f["w3"].size * 2 + f["fw1"].size * 2
                 + f["fw2"].size * 2 + f["fw3"].size * 2 + n8 * 10 * 4)
    return pl.pallas_call(
        _conv3_fc_kernel,
        out_shape=jax.ShapeDtypeStruct((n8, 10), jnp.float32),
        grid=(grid,),
        in_specs=[pl.BlockSpec((4, npos, tn, k3), lambda i: (0, 0, i, 0)),
                  full(f["w3"]), full(f["s3"]),
                  full(f["fw1"]), full(f["fs1"]),
                  full(f["fw2"]), full(f["fs2"]),
                  full(f["fw3"]), full(f["fb3"])],
        out_specs=pl.BlockSpec((tn, 10), lambda i: (i, 0)),
        compiler_params=pltpu.CompilerParams(
            dimension_semantics=("parallel",),
            vmem_limit_bytes=_VMEM_LIMIT,
        ),
        cost_estimate=pl.CostEstimate(flops=int(flops), transcendentals=0,
                                      bytes_accessed=int(bytes_acc)),
    )(patches3, f["w3"], f["s3"], f["fw1"], f["fs1"], f["fw2"], f["fs2"],
      f["fw3"], f["fb3"])


# ---------------------------------------------------------------------------
# XLA-side layout plumbing: pool-grouped im2col (stride 1, zero 'same' padding)
# ---------------------------------------------------------------------------
def im2col_pooled_packed(x, kh, kw, pad, pack):
    """NHWC x -> (4, M/pack, pack*K) patches.  Rows grouped by the position
    inside each 2x2 pool window; `pack` consecutive pooled rows share one row
    (drives the block-diagonal weight / lane-dense store).  Ho=H//2, Wo=W//2."""
    n, h, w, c = x.shape
    ho, wo = h // 2, w // 2
    k = kh * kw * c
    xp = jnp.pad(x, ((0, 0), (pad, pad), (pad, pad), (0, 0)))
    taps = [xp[:, i:i + h, j:j + w, :] for i in range(kh) for j in range(kw)]
    p = jnp.stack(taps, axis=3).reshape(n, h, w, k)
    p = p[:, :2 * ho, :2 * wo, :]
    p = p.reshape(n, ho, 2, wo, 2, k).transpose(2, 4, 0, 1, 3, 5)  # (wi,wj,n,ho,wo,K)
    m = n * ho * wo
    assert m % pack == 0
    return p.reshape(4, m, k).reshape(4, m // pack, pack * k)


def im2col_pooled_pmajor(x, kh, kw, pad):
    """NHWC x -> (4, Ho*Wo, N, K) patches for the fused conv3+FC kernel:
    window position major, then pooled spatial position, then image."""
    n, h, w, c = x.shape
    ho, wo = h // 2, w // 2
    k = kh * kw * c
    xp = jnp.pad(x, ((0, 0), (pad, pad), (pad, pad), (0, 0)))
    taps = [xp[:, i:i + h, j:j + w, :] for i in range(kh) for j in range(kw)]
    p = jnp.stack(taps, axis=3).reshape(n, h, w, k)
    p = p[:, :2 * ho, :2 * wo, :]
    p = p.reshape(n, ho, 2, wo, 2, k).transpose(2, 4, 1, 3, 0, 5)  # (wi,wj,ho,wo,n,K)
    return p.reshape(4, ho * wo, n, k)


# ---------------------------------------------------------------------------
# Parameters: PyTorch-layout init + one-time fold (BN into weights, layouts)
# ---------------------------------------------------------------------------
def init_params(key):
    def nrm(k, shape, std=0.05):
        return std * jax.random.normal(k, shape, dtype=jnp.float32)

    ks = iter(jax.random.split(key, 40))

    def bn(c):
        return (
            1.0 + nrm(next(ks), (c,)),            # gamma
            nrm(next(ks), (c,)),                  # beta
            nrm(next(ks), (c,)),                  # running_mean
            1.0 + jnp.abs(nrm(next(ks), (c,))),   # running_var (>0)
        )

    return {
        "conv1_w": nrm(next(ks), (32, 1, 5, 5)),  "conv1_b": nrm(next(ks), (32,)),
        "bn1": bn(32),
        "conv2_w": nrm(next(ks), (64, 32, 3, 3)), "conv2_b": nrm(next(ks), (64,)),
        "bn2": bn(64),
        "conv3_w": nrm(next(ks), (128, 64, 3, 3)), "conv3_b": nrm(next(ks), (128,)),
        "bn3": bn(128),
        "fc1_w": nrm(next(ks), (256, 128 * 3 * 3)), "fc1_b": nrm(next(ks), (256,)),
        "bn4": bn(256),
        "fc2_w": nrm(next(ks), (128, 256)), "fc2_b": nrm(next(ks), (128,)),
        "bn5": bn(128),
        "fc3_w": nrm(next(ks), (10, 128)), "fc3_b": nrm(next(ks), (10,)),
    }


def _bn_fold(gamma, beta, mean, var, eps=1e-5):
    scale = gamma / jnp.sqrt(var + eps)
    shift = beta - mean * scale
    return scale, shift


def _conv_w_to_matmul(w_oihw):
    """(Cout, Cin, KH, KW) -> (KH*KW*Cin, Cout), matching im2col column order."""
    co, ci, kh, kw = w_oihw.shape
    return jnp.transpose(w_oihw, (2, 3, 1, 0)).reshape(kh * kw * ci, co)


def _block_diag(w, pack):
    """(K, C) -> (pack*K, pack*C) block-diagonal (lane-dense packed conv)."""
    k, c = w.shape
    out = jnp.zeros((pack, k, pack, c), w.dtype)
    idx = jnp.arange(pack)
    out = out.at[idx, :, idx, :].set(w)
    return out.reshape(pack * k, pack * c)


def fold_params(p):
    """BN folding + weight layout/dtype preparation, done ONCE outside forward."""
    f = {}
    conv_cfg = [("conv1_w", "conv1_b", "bn1", 4),   # pack 4 pooled rows -> 128 lanes
                ("conv2_w", "conv2_b", "bn2", 2),   # pack 2 pooled rows -> 128 lanes
                ("conv3_w", "conv3_b", "bn3", 1)]   # consumed by the fused FC kernel
    for idx, (wn, bname, bnn, pack) in enumerate(conv_cfg, start=1):
        scale, shift = _bn_fold(*p[bnn])
        wm = _conv_w_to_matmul(p[wn]) * scale[None, :]
        sv = (p[bname] * scale + shift).reshape(1, -1)
        if pack > 1:
            wm = _block_diag(wm, pack)
            sv = jnp.tile(sv, (1, pack))
        f[f"w{idx}"] = wm.astype(jnp.bfloat16)
        f[f"s{idx}"] = sv.astype(jnp.float32)

    # fc1: columns regrouped to (position=(ho,wo), cin, out) to match the fused
    # conv3 kernel's (position, image, channel) activation layout (NHWC flatten).
    scale, shift = _bn_fold(*p["bn4"])
    w1 = p["fc1_w"].reshape(256, 128, 3, 3).transpose(2, 3, 1, 0).reshape(9, 128, 256)
    f["fw1"] = (w1 * scale[None, None, :]).astype(jnp.bfloat16)
    f["fs1"] = (p["fc1_b"] * scale + shift).reshape(1, -1).astype(jnp.float32)

    scale, shift = _bn_fold(*p["bn5"])
    f["fw2"] = (p["fc2_w"].T * scale[None, :]).astype(jnp.bfloat16)
    f["fs2"] = (p["fc2_b"] * scale + shift).reshape(1, -1).astype(jnp.float32)

    f["fw3"] = p["fc3_w"].T.astype(jnp.bfloat16)
    f["fb3"] = p["fc3_b"].reshape(1, -1).astype(jnp.float32)
    return f


# ---------------------------------------------------------------------------
# Forward pass (matches DigitRecognitionCNN.forward, eval mode)
# ---------------------------------------------------------------------------
def forward(folded, x_nchw):
    n = x_nchw.shape[0]
    n8 = _round_up(n, 8)
    if n8 != n:  # pad the tiny raw input once; all later row counts stay 8-aligned
        x_nchw = jnp.pad(x_nchw, ((0, n8 - n), (0, 0), (0, 0), (0, 0)))
    x = jnp.transpose(x_nchw, (0, 2, 3, 1)).astype(jnp.bfloat16)  # NCHW -> NHWC

    # conv1(5x5,pad2) + bn1 + relu + maxpool2x2   (Dropout2d: identity in eval)
    h, w = x.shape[1] // 2, x.shape[2] // 2
    x = conv_bn_relu_pool(im2col_pooled_packed(x, 5, 5, 2, pack=4),
                          folded["w1"], folded["s1"])
    x = x.reshape(n8, h, w, 32)          # free row-major unpack of packed lanes

    # conv2(3x3,pad1) + bn2 + relu + maxpool2x2
    h, w = x.shape[1] // 2, x.shape[2] // 2
    x = conv_bn_relu_pool(im2col_pooled_packed(x, 3, 3, 1, pack=2),
                          folded["w2"], folded["s2"])
    x = x.reshape(n8, h, w, 64)

    # conv3(3x3,pad1)+bn3+relu+pool + flatten + fc1/bn4/relu + fc2/bn5/relu + fc3
    # fused into one VMEM-resident kernel.  (Dropout(0.4): identity in eval.)
    out = conv3_fc_head(im2col_pooled_pmajor(x, 3, 3, 1), folded)
    return out[:n] if n8 != n else out


# ---------------------------------------------------------------------------
if __name__ == "__main__":
    key = jax.random.PRNGKey(0)
    pkey, xkey = jax.random.split(key)
    params = init_params(pkey)
    folded = fold_params(params)          # one-time fold, outside the jitted path
    # Input shape is pinned by the architecture: fc1 expects 128*3*3 -> 28x28 input.
    x = jax.random.normal(xkey, (2, 1, 28, 28), dtype=jnp.float32)

    out = jax.jit(forward)(folded, x)
    out = jax.block_until_ready(out)
    assert out.shape == (2, 10) and out.dtype == jnp.float32
    assert bool(jnp.all(jnp.isfinite(out)))
    print("KERNEL_OK")
</pallas_src>

<mosaic_0001>
module attributes {stable_mosaic.version = 11 : i64} {
  func.func @_conv_pool_kernel(%arg0: i32, %arg1: memref<4x56x100xbf16, #tpu.memory_space<vmem>>, %arg2: memref<100x128xbf16, #tpu.memory_space<vmem>>, %arg3: memref<1x128xf32, #tpu.memory_space<vmem>>, %arg4: memref<56x128xbf16, #tpu.memory_space<vmem>>) attributes {dimension_semantics = [#tpu.dimension_semantics<parallel>], iteration_bounds = array<i64: 7>, scalar_prefetch = 0 : i64, scratch_operands = 0 : i64, tpu.core_type = #tpu.core_type<tc>, window_params = [{transform_indices = @transform_0, window_bounds = array<i64: 4, 56, 100>}, {pipeline_mode = #tpu.pipeline_mode<synchronous>, transform_indices = @transform_1, window_bounds = array<i64: 100, 128>}, {pipeline_mode = #tpu.pipeline_mode<synchronous>, transform_indices = @transform_2, window_bounds = array<i64: 1, 128>}, {transform_indices = @transform_3, window_bounds = array<i64: 56, 128>}]} {
    %c0 = arith.constant 0 : index
    %c0_0 = arith.constant 0 : index
    %0 = vector.load %arg2[%c0, %c0_0] : memref<100x128xbf16, #tpu.memory_space<vmem>>, vector<100x128xbf16>
    %c0_1 = arith.constant 0 : index
    %c0_2 = arith.constant 0 : index
    %c0_3 = arith.constant 0 : index
    %1 = vector.load %arg1[%c0_1, %c0_2, %c0_3] : memref<4x56x100xbf16, #tpu.memory_space<vmem>>, vector<4x56x100xbf16>
    %2 = vector.shape_cast %1 : vector<4x56x100xbf16> to vector<224x100xbf16>
    %cst = arith.constant dense<0.000000e+00> : vector<224x128xf32>
    %3 = tpu.matmul %2, %0, %cst {dimension_numbers = #tpu.dot_dimension_numbers<[1], [0], [0], [1], [0, 0, 1, 1], [], []>} : vector<224x100xbf16>, vector<100x128xbf16>, vector<224x128xf32> -> vector<224x128xf32>
    %4 = vector.shape_cast %3 : vector<224x128xf32> to vector<4x56x128xf32>
    %cst_4 = arith.constant dense<0xFF800000> : vector<56x128xf32>
    %5 = vector.multi_reduction <maximumf>, %4, %cst_4 [0] : vector<4x56x128xf32> to vector<56x128xf32>
    %c0_5 = arith.constant 0 : index
    %c0_6 = arith.constant 0 : index
    %6 = vector.load %arg3[%c0_5, %c0_6] : memref<1x128xf32, #tpu.memory_space<vmem>>, vector<1x128xf32>
    %7 = vector.broadcast %6 : vector<1x128xf32> to vector<56x128xf32>
    %8 = arith.addf %5, %7 : vector<56x128xf32>
    %cst_7 = arith.constant 0.000000e+00 : f32
    %9 = vector.broadcast %cst_7 : f32 to vector<56x128xf32>
    %10 = arith.maximumf %8, %9 : vector<56x128xf32>
    %11 = arith.truncf %10 : vector<56x128xf32> to vector<56x128xbf16>
    %c0_8 = arith.constant 0 : index
    %c0_9 = arith.constant 0 : index
    %12 = vector.load %arg4[%c0_8, %c0_9] : memref<56x128xbf16, #tpu.memory_space<vmem>>, vector<56x128xbf16>
    tpu.vector_store %arg4[%c0_8, %c0_9], %11 {strides = array<i32>} : memref<56x128xbf16, #tpu.memory_space<vmem>>, vector<56x128xbf16>,
    return
  }
  func.func @transform_0(%arg0: i32) -> (i32, i32, i32) {
    %c0_i32 = arith.constant 0 : i32
    %c0_i32_0 = arith.constant 0 : i32
    %c0_i32_1 = arith.constant 0 : i32
    return %c0_i32, %arg0, %c0_i32_0 : i32, i32, i32
  }
  func.func @transform_1(%arg0: i32) -> (i32, i32) {
    %c0_i32 = arith.constant 0 : i32
    %c0_i32_0 = arith.constant 0 : i32
    %c0_i32_1 = arith.constant 0 : i32
    return %c0_i32, %c0_i32_0 : i32, i32
  }
  func.func @transform_2(%arg0: i32) -> (i32, i32) {
    %c0_i32 = arith.constant 0 : i32
    %c0_i32_0 = arith.constant 0 : i32
    %c0_i32_1 = arith.constant 0 : i32
    return %c0_i32, %c0_i32_0 : i32, i32
  }
  func.func @transform_3(%arg0: i32) -> (i32, i32) {
    %c0_i32 = arith.constant 0 : i32
    %c0_i32_0 = arith.constant 0 : i32
    return %arg0, %c0_i32 : i32, i32
  }
}

module attributes {stable_mosaic.version = 11 : i64} {
  func.func @_conv_pool_kernel(%arg0: i32, %arg1: memref<4x104x576xbf16, #tpu.memory_space<vmem>>, %arg2: memref<576x128xbf16, #tpu.memory_space<vmem>>, %arg3: memref<1x128xf32, #tpu.memory_space<vmem>>, %arg4: memref<104x128xbf16, #tpu.memory_space<vmem>>) attributes {dimension_semantics = [#tpu.dimension_semantics<parallel>], iteration_bounds = array<i64: 2>, scalar_prefetch = 0 : i64, scratch_operands = 0 : i64, tpu.core_type = #tpu.core_type<tc>, window_params = [{transform_indices = @transform_0, window_bounds = array<i64: 4, 104, 576>}, {pipeline_mode = #tpu.pipeline_mode<synchronous>, transform_indices = @transform_1, window_bounds = array<i64: 576, 128>}, {pipeline_mode = #tpu.pipeline_mode<synchronous>, transform_indices = @transform_2, window_bounds = array<i64: 1, 128>}, {transform_indices = @transform_3, window_bounds = array<i64: 104, 128>}]} {
    %c0 = arith.constant 0 : index
    %c0_0 = arith.constant 0 : index
    %0 = vector.load %arg2[%c0, %c0_0] : memref<576x128xbf16, #tpu.memory_space<vmem>>, vector<576x128xbf16>
    %c0_1 = arith.constant 0 : index
    %c0_2 = arith.constant 0 : index
    %c0_3 = arith.constant 0 : index
    %1 = vector.load %arg1[%c0_1, %c0_2, %c0_3] : memref<4x104x576xbf16, #tpu.memory_space<vmem>>, vector<4x104x576xbf16>
    %2 = vector.shape_cast %1 : vector<4x104x576xbf16> to vector<416x576xbf16>
    %cst = arith.constant dense<0.000000e+00> : vector<416x128xf32>
    %3 = tpu.matmul %2, %0, %cst {dimension_numbers = #tpu.dot_dimension_numbers<[1], [0], [0], [1], [0, 0, 1, 1], [], []>} : vector<416x576xbf16>, vector<576x128xbf16>, vector<416x128xf32> -> vector<416x128xf32>
    %4 = vector.shape_cast %3 : vector<416x128xf32> to vector<4x104x128xf32>
    %cst_4 = arith.constant dense<0xFF800000> : vector<104x128xf32>
    %5 = vector.multi_reduction <maximumf>, %4, %cst_4 [0] : vector<4x104x128xf32> to vector<104x128xf32>
    %c0_5 = arith.constant 0 : index
    %c0_6 = arith.constant 0 : index
    %6 = vector.load %arg3[%c0_5, %c0_6] : memref<1x128xf32, #tpu.memory_space<vmem>>, vector<1x128xf32>
    %7 = vector.broadcast %6 : vector<1x128xf32> to vector<104x128xf32>
    %8 = arith.addf %5, %7 : vector<104x128xf32>
    %cst_7 = arith.constant 0.000000e+00 : f32
    %9 = vector.broadcast %cst_7 : f32 to vector<104x128xf32>
    %10 = arith.maximumf %8, %9 : vector<104x128xf32>
    %11 = arith.truncf %10 : vector<104x128xf32> to vector<104x128xbf16>
    %c0_8 = arith.constant 0 : index
    %c0_9 = arith.constant 0 : index
    %12 = vector.load %arg4[%c0_8, %c0_9] : memref<104x128xbf16, #tpu.memory_space<vmem>>, vector<104x128xbf16>
    tpu.vector_store %arg4[%c0_8, %c0_9], %11 {strides = array<i32>} : memref<104x128xbf16, #tpu.memory_space<vmem>>, vector<104x128xbf16>,
    return
  }
  func.func @transform_0(%arg0: i32) -> (i32, i32, i32) {
    %c0_i32 = arith.constant 0 : i32
    %c0_i32_0 = arith.constant 0 : i32
    %c0_i32_1 = arith.constant 0 : i32
    return %c0_i32, %arg0, %c0_i32_0 : i32, i32, i32
  }
  func.func @transform_1(%arg0: i32) -> (i32, i32) {
    %c0_i32 = arith.constant 0 : i32
    %c0_i32_0 = arith.constant 0 : i32
    %c0_i32_1 = arith.constant 0 : i32
    return %c0_i32, %c0_i32_0 : i32, i32
  }
  func.func @transform_2(%arg0: i32) -> (i32, i32) {
    %c0_i32 = arith.constant 0 : i32
    %c0_i32_0 = arith.constant 0 : i32
    %c0_i32_1 = arith.constant 0 : i32
    return %c0_i32, %c0_i32_0 : i32, i32
  }
  func.func @transform_3(%arg0: i32) -> (i32, i32) {
    %c0_i32 = arith.constant 0 : i32
    %c0_i32_0 = arith.constant 0 : i32
    return %arg0, %c0_i32 : i32, i32
  }
}

module attributes {stable_mosaic.version = 11 : i64} {
  func.func @_conv3_fc_kernel(%arg0: i32, %arg1: memref<4x9x8x576xbf16, #tpu.memory_space<vmem>>, %arg2: memref<576x128xbf16, #tpu.memory_space<vmem>>, %arg3: memref<1x128xf32, #tpu.memory_space<vmem>>, %arg4: memref<9x128x256xbf16, #tpu.memory_space<vmem>>, %arg5: memref<1x256xf32, #tpu.memory_space<vmem>>, %arg6: memref<256x128xbf16, #tpu.memory_space<vmem>>, %arg7: memref<1x128xf32, #tpu.memory_space<vmem>>, %arg8: memref<128x10xbf16, #tpu.memory_space<vmem>>, %arg9: memref<1x10xf32, #tpu.memory_space<vmem>>, %arg10: memref<8x10xf32, #tpu.memory_space<vmem>>) attributes {dimension_semantics = [#tpu.dimension_semantics<parallel>], iteration_bounds = array<i64: 1>, scalar_prefetch = 0 : i64, scratch_operands = 0 : i64, tpu.core_type = #tpu.core_type<tc>, window_params = [{transform_indices = @transform_0, window_bounds = array<i64: 4, 9, 8, 576>}, {pipeline_mode = #tpu.pipeline_mode<synchronous>, transform_indices = @transform_1, window_bounds = array<i64: 576, 128>}, {pipeline_mode = #tpu.pipeline_mode<synchronous>, transform_indices = @transform_2, window_bounds = array<i64: 1, 128>}, {pipeline_mode = #tpu.pipeline_mode<synchronous>, transform_indices = @transform_3, window_bounds = array<i64: 9, 128, 256>}, {pipeline_mode = #tpu.pipeline_mode<synchronous>, transform_indices = @transform_4, window_bounds = array<i64: 1, 256>}, {pipeline_mode = #tpu.pipeline_mode<synchronous>, transform_indices = @transform_5, window_bounds = array<i64: 256, 128>}, {pipeline_mode = #tpu.pipeline_mode<synchronous>, transform_indices = @transform_6, window_bounds = array<i64: 1, 128>}, {pipeline_mode = #tpu.pipeline_mode<synchronous>, transform_indices = @transform_7, window_bounds = array<i64: 128, 10>}, {pipeline_mode = #tpu.pipeline_mode<synchronous>, transform_indices = @transform_8, window_bounds = array<i64: 1, 10>}, {transform_indices = @transform_9, window_bounds = array<i64: 8, 10>}]} {
    %c0 = arith.constant 0 : index
    %c0_0 = arith.constant 0 : index
    %c0_1 = arith.constant 0 : index
    %c0_2 = arith.constant 0 : index
    %0 = vector.load %arg1[%c0, %c0_0, %c0_1, %c0_2] : memref<4x9x8x576xbf16, #tpu.memory_space<vmem>>, vector<4x9x8x576xbf16>
    %1 = vector.shape_cast %0 : vector<4x9x8x576xbf16> to vector<288x576xbf16>
    %c0_3 = arith.constant 0 : index
    %c0_4 = arith.constant 0 : index
    %2 = vector.load %arg2[%c0_3, %c0_4] : memref<576x128xbf16, #tpu.memory_space<vmem>>, vector<576x128xbf16>
    %cst = arith.constant dense<0.000000e+00> : vector<288x128xf32>
    %3 = tpu.matmul %1, %2, %cst {dimension_numbers = #tpu.dot_dimension_numbers<[1], [0], [0], [1], [0, 0, 1, 1], [], []>} : vector<288x576xbf16>, vector<576x128xbf16>, vector<288x128xf32> -> vector<288x128xf32>
    %4 = vector.shape_cast %3 : vector<288x128xf32> to vector<4x9x8x128xf32>
    %cst_5 = arith.constant dense<0xFF800000> : vector<9x8x128xf32>
    %5 = vector.multi_reduction <maximumf>, %4, %cst_5 [0] : vector<4x9x8x128xf32> to vector<9x8x128xf32>
    %c0_6 = arith.constant 0 : index
    %c0_7 = arith.constant 0 : index
    %6 = vector.load %arg3[%c0_6, %c0_7] : memref<1x128xf32, #tpu.memory_space<vmem>>, vector<1x128xf32>
    %7 = vector.shape_cast %6 : vector<1x128xf32> to vector<1x1x128xf32>
    %8 = vector.broadcast %7 : vector<1x1x128xf32> to vector<9x8x128xf32>
    %9 = arith.addf %5, %8 : vector<9x8x128xf32>
    %cst_8 = arith.constant 0.000000e+00 : f32
    %10 = vector.broadcast %cst_8 : f32 to vector<9x8x128xf32>
    %11 = arith.maximumf %9, %10 : vector<9x8x128xf32>
    %12 = arith.truncf %11 : vector<9x8x128xf32> to vector<9x8x128xbf16>
    %13 = vector.extract_strided_slice %12 {offsets = [0, 0, 0], sizes = [1, 8, 128], strides = [1, 1, 1]} : vector<9x8x128xbf16> to vector<1x8x128xbf16>
    %14 = vector.shape_cast %13 : vector<1x8x128xbf16> to vector<8x128xbf16>
    %c0_9 = arith.constant 0 : index
    %c0_10 = arith.constant 0 : index
    %c0_11 = arith.constant 0 : index
    %15 = vector.load %arg4[%c0_9, %c0_10, %c0_11] : memref<9x128x256xbf16, #tpu.memory_space<vmem>>, vector<1x128x256xbf16>
    %16 = vector.shape_cast %15 : vector<1x128x256xbf16> to vector<128x256xbf16>
    %cst_12 = arith.constant dense<0.000000e+00> : vector<8x256xf32>
    %17 = tpu.matmul %14, %16, %cst_12 {dimension_numbers = #tpu.dot_dimension_numbers<[1], [0], [0], [1], [0, 0, 1, 1], [], []>} : vector<8x128xbf16>, vector<128x256xbf16>, vector<8x256xf32> -> vector<8x256xf32>
    %18 = vector.extract_strided_slice %12 {offsets = [1, 0, 0], sizes = [1, 8, 128], strides = [1, 1, 1]} : vector<9x8x128xbf16> to vector<1x8x128xbf16>
    %19 = vector.shape_cast %18 : vector<1x8x128xbf16> to vector<8x128xbf16>
    %c1 = arith.constant 1 : index
    %c0_13 = arith.constant 0 : index
    %c0_14 = arith.constant 0 : index
    %20 = vector.load %arg4[%c1, %c0_13, %c0_14] : memref<9x128x256xbf16, #tpu.memory_space<vmem>>, vector<1x128x256xbf16>
    %21 = vector.shape_cast %20 : vector<1x128x256xbf16> to vector<128x256xbf16>
    %cst_15 = arith.constant dense<0.000000e+00> : vector<8x256xf32>
    %22 = tpu.matmul %19, %21, %cst_15 {dimension_numbers = #tpu.dot_dimension_numbers<[1], [0], [0], [1], [0, 0, 1, 1], [], []>} : vector<8x128xbf16>, vector<128x256xbf16>, vector<8x256xf32> -> vector<8x256xf32>
    %23 = arith.addf %17, %22 : vector<8x256xf32>
    %24 = vector.extract_strided_slice %12 {offsets = [2, 0, 0], sizes = [1, 8, 128], strides = [1, 1, 1]} : vector<9x8x128xbf16> to vector<1x8x128xbf16>
    %25 = vector.shape_cast %24 : vector<1x8x128xbf16> to vector<8x128xbf16>
    %c2 = arith.constant 2 : index
    %c0_16 = arith.constant 0 : index
    %c0_17 = arith.constant 0 : index
    %26 = vector.load %arg4[%c2, %c0_16, %c0_17] : memref<9x128x256xbf16, #tpu.memory_space<vmem>>, vector<1x128x256xbf16>
    %27 = vector.shape_cast %26 : vector<1x128x256xbf16> to vector<128x256xbf16>
    %cst_18 = arith.constant dense<0.000000e+00> : vector<8x256xf32>
    %28 = tpu.matmul %25, %27, %cst_18 {dimension_numbers = #tpu.dot_dimension_numbers<[1], [0], [0], [1], [0, 0, 1, 1], [], []>} : vector<8x128xbf16>, vector<128x256xbf16>, vector<8x256xf32> -> vector<8x256xf32>
    %29 = arith.addf %23, %28 : vector<8x256xf32>
    %30 = vector.extract_strided_slice %12 {offsets = [3, 0, 0], sizes = [1, 8, 128], strides = [1, 1, 1]} : vector<9x8x128xbf16> to vector<1x8x128xbf16>
    %31 = vector.shape_cast %30 : vector<1x8x128xbf16> to vector<8x128xbf16>
    %c3 = arith.constant 3 : index
    %c0_19 = arith.constant 0 : index
    %c0_20 = arith.constant 0 : index
    %32 = vector.load %arg4[%c3, %c0_19, %c0_20] : memref<9x128x256xbf16, #tpu.memory_space<vmem>>, vector<1x128x256xbf16>
    %33 = vector.shape_cast %32 : vector<1x128x256xbf16> to vector<128x256xbf16>
    %cst_21 = arith.constant dense<0.000000e+00> : vector<8x256xf32>
    %34 = tpu.matmul %31, %33, %cst_21 {dimension_numbers = #tpu.dot_dimension_numbers<[1], [0], [0], [1], [0, 0, 1, 1], [], []>} : vector<8x128xbf16>, vector<128x256xbf16>, vector<8x256xf32> -> vector<8x256xf32>
    %35 = arith.addf %29, %34 : vector<8x256xf32>
    %36 = vector.extract_strided_slice %12 {offsets = [4, 0, 0], sizes = [1, 8, 128], strides = [1, 1, 1]} : vector<9x8x128xbf16> to vector<1x8x128xbf16>
    %37 = vector.shape_cast %36 : vector<1x8x128xbf16> to vector<8x128xbf16>
    %c4 = arith.constant 4 : index
    %c0_22 = arith.constant 0 : index
    %c0_23 = arith.constant 0 : index
    %38 = vector.load %arg4[%c4, %c0_22, %c0_23] : memref<9x128x256xbf16, #tpu.memory_space<vmem>>, vector<1x128x256xbf16>
    %39 = vector.shape_cast %38 : vector<1x128x256xbf16> to vector<128x256xbf16>
    %cst_24 = arith.constant dense<0.000000e+00> : vector<8x256xf32>
    %40 = tpu.matmul %37, %39, %cst_24 {dimension_numbers = #tpu.dot_dimension_numbers<[1], [0], [0], [1], [0, 0, 1, 1], [], []>} : vector<8x128xbf16>, vector<128x256xbf16>, vector<8x256xf32> -> vector<8x256xf32>
    %41 = arith.addf %35, %40 : vector<8x256xf32>
    %42 = vector.extract_strided_slice %12 {offsets = [5, 0, 0], sizes = [1, 8, 128], strides = [1, 1, 1]} : vector<9x8x128xbf16> to vector<1x8x128xbf16>
    %43 = vector.shape_cast %42 : vector<1x8x128xbf16> to vector<8x128xbf16>
    %c5 = arith.constant 5 : index
    %c0_25 = arith.constant 0 : index
    %c0_26 = arith.constant 0 : index
    %44 = vector.load %arg4[%c5, %c0_25, %c0_26] : memref<9x128x256xbf16, #tpu.memory_space<vmem>>, vector<1x128x256xbf16>
    %45 = vector.shape_cast %44 : vector<1x128x256xbf16> to vector<128x256xbf16>
    %cst_27 = arith.constant dense<0.000000e+00> : vector<8x256xf32>
    %46 = tpu.matmul %43, %45, %cst_27 {dimension_numbers = #tpu.dot_dimension_numbers<[1], [0], [0], [1], [0, 0, 1, 1], [], []>} : vector<8x128xbf16>, vector<128x256xbf16>, vector<8x256xf32> -> vector<8x256xf32>
    %47 = arith.addf %41, %46 : vector<8x256xf32>
    %48 = vector.extract_strided_slice %12 {offsets = [6, 0, 0], sizes = [1, 8, 128], strides = [1, 1, 1]} : vector<9x8x128xbf16> to vector<1x8x128xbf16>
    %49 = vector.shape_cast %48 : vector<1x8x128xbf16> to vector<8x128xbf16>
    %c6 = arith.constant 6 : index
    %c0_28 = arith.constant 0 : index
    %c0_29 = arith.constant 0 : index
    %50 = vector.load %arg4[%c6, %c0_28, %c0_29] : memref<9x128x256xbf16, #tpu.memory_space<vmem>>, vector<1x128x256xbf16>
    %51 = vector.shape_cast %50 : vector<1x128x256xbf16> to vector<128x256xbf16>
    %cst_30 = arith.constant dense<0.000000e+00> : vector<8x256xf32>
    %52 = tpu.matmul %49, %51, %cst_30 {dimension_numbers = #tpu.dot_dimension_numbers<[1], [0], [0], [1], [0, 0, 1, 1], [], []>} : vector<8x128xbf16>, vector<128x256xbf16>, vector<8x256xf32> -> vector<8x256xf32>
    %53 = arith.addf %47, %52 : vector<8x256xf32>
    %54 = vector.extract_strided_slice %12 {offsets = [7, 0, 0], sizes = [1, 8, 128], strides = [1, 1, 1]} : vector<9x8x128xbf16> to vector<1x8x128xbf16>
    %55 = vector.shape_cast %54 : vector<1x8x128xbf16> to vector<8x128xbf16>
    %c7 = arith.constant 7 : index
    %c0_31 = arith.constant 0 : index
    %c0_32 = arith.constant 0 : index
    %56 = vector.load %arg4[%c7, %c0_31, %c0_32] : memref<9x128x256xbf16, #tpu.memory_space<vmem>>, vector<1x128x256xbf16>
    %57 = vector.shape_cast %56 : vector<1x128x256xbf16> to vector<128x256xbf16>
    %cst_33 = arith.constant dense<0.000000e+00> : vector<8x256xf32>
    %58 = tpu.matmul %55, %57, %cst_33 {dimension_numbers = #tpu.dot_dimension_numbers<[1], [0], [0], [1], [0, 0, 1, 1], [], []>} : vector<8x128xbf16>, vector<128x256xbf16>, vector<8x256xf32> -> vector<8x256xf32>
    %59 = arith.addf %53, %58 : vector<8x256xf32>
    %60 = vector.extract_strided_slice %12 {offsets = [8, 0, 0], sizes = [1, 8, 128], strides = [1, 1, 1]} : vector<9x8x128xbf16> to vector<1x8x128xbf16>
    %61 = vector.shape_cast %60 : vector<1x8x128xbf16> to vector<8x128xbf16>
    %c8 = arith.constant 8 : index
    %c0_34 = arith.constant 0 : index
    %c0_35 = arith.constant 0 : index
    %62 = vector.load %arg4[%c8, %c0_34, %c0_35] : memref<9x128x256xbf16, #tpu.memory_space<vmem>>, vector<1x128x256xbf16>
    %63 = vector.shape_cast %62 : vector<1x128x256xbf16> to vector<128x256xbf16>
    %cst_36 = arith.constant dense<0.000000e+00> : vector<8x256xf32>
    %64 = tpu.matmul %61, %63, %cst_36 {dimension_numbers = #tpu.dot_dimension_numbers<[1], [0], [0], [1], [0, 0, 1, 1], [], []>} : vector<8x128xbf16>, vector<128x256xbf16>, vector<8x256xf32> -> vector<8x256xf32>
    %65 = arith.addf %59, %64 : vector<8x256xf32>
    %c0_37 = arith.constant 0 : index
    %c0_38 = arith.constant 0 : index
    %66 = vector.load %arg5[%c0_37, %c0_38] : memref<1x256xf32, #tpu.memory_space<vmem>>, vector<1x256xf32>
    %67 = vector.broadcast %66 : vector<1x256xf32> to vector<8x256xf32>
    %68 = arith.addf %65, %67 : vector<8x256xf32>
    %cst_39 = arith.constant 0.000000e+00 : f32
    %69 = vector.broadcast %cst_39 : f32 to vector<8x256xf32>
    %70 = arith.maximumf %68, %69 : vector<8x256xf32>
    %71 = arith.truncf %70 : vector<8x256xf32> to vector<8x256xbf16>
    %c0_40 = arith.constant 0 : index
    %c0_41 = arith.constant 0 : index
    %72 = vector.load %arg6[%c0_40, %c0_41] : memref<256x128xbf16, #tpu.memory_space<vmem>>, vector<256x128xbf16>
    %cst_42 = arith.constant dense<0.000000e+00> : vector<8x128xf32>
    %73 = tpu.matmul %71, %72, %cst_42 {dimension_numbers = #tpu.dot_dimension_numbers<[1], [0], [0], [1], [0, 0, 1, 1], [], []>} : vector<8x256xbf16>, vector<256x128xbf16>, vector<8x128xf32> -> vector<8x128xf32>
    %c0_43 = arith.constant 0 : index
    %c0_44 = arith.constant 0 : index
    %74 = vector.load %arg7[%c0_43, %c0_44] : memref<1x128xf32, #tpu.memory_space<vmem>>, vector<1x128xf32>
    %75 = vector.broadcast %74 : vector<1x128xf32> to vector<8x128xf32>
    %76 = arith.addf %73, %75 : vector<8x128xf32>
    %cst_45 = arith.constant 0.000000e+00 : f32
    %77 = vector.broadcast %cst_45 : f32 to vector<8x128xf32>
    %78 = arith.maximumf %76, %77 : vector<8x128xf32>
    %79 = arith.truncf %78 : vector<8x128xf32> to vector<8x128xbf16>
    %c0_46 = arith.constant 0 : index
    %c0_47 = arith.constant 0 : index
    %80 = vector.load %arg8[%c0_46, %c0_47] : memref<128x10xbf16, #tpu.memory_space<vmem>>, vector<128x10xbf16>
    %cst_48 = arith.constant dense<0.000000e+00> : vector<8x10xf32>
    %81 = tpu.matmul %79, %80, %cst_48 {dimension_numbers = #tpu.dot_dimension_numbers<[1], [0], [0], [1], [0, 0, 1, 1], [], []>} : vector<8x128xbf16>, vector<128x10xbf16>, vector<8x10xf32> -> vector<8x10xf32>
    %c0_49 = arith.constant 0 : index
    %c0_50 = arith.constant 0 : index
    %82 = vector.load %arg9[%c0_49, %c0_50] : memref<1x10xf32, #tpu.memory_space<vmem>>, vector<1x10xf32>
    %83 = vector.broadcast %82 : vector<1x10xf32> to vector<8x10xf32>
    %84 = arith.addf %81, %83 : vector<8x10xf32>
    %c0_51 = arith.constant 0 : index
    %c0_52 = arith.constant 0 : index
    %85 = vector.load %arg10[%c0_51, %c0_52] : memref<8x10xf32, #tpu.memory_space<vmem>>, vector<8x10xf32>
    tpu.vector_store %arg10[%c0_51, %c0_52], %84 {strides = array<i32>} : memref<8x10xf32, #tpu.memory_space<vmem>>, vector<8x10xf32>,
    return
  }
  func.func @transform_0(%arg0: i32) -> (i32, i32, i32, i32) {
    %c0_i32 = arith.constant 0 : i32
    %c0_i32_0 = arith.constant 0 : i32
    %c0_i32_1 = arith.constant 0 : i32
    %c0_i32_2 = arith.constant 0 : i32
    return %c0_i32, %c0_i32_0, %arg0, %c0_i32_1 : i32, i32, i32, i32
  }
  func.func @transform_1(%arg0: i32) -> (i32, i32) {
    %c0_i32 = arith.constant 0 : i32
    %c0_i32_0 = arith.constant 0 : i32
    %c0_i32_1 = arith.constant 0 : i32
    return %c0_i32, %c0_i32_0 : i32, i32
  }
  func.func @transform_2(%arg0: i32) -> (i32, i32) {
    %c0_i32 = arith.constant 0 : i32
    %c0_i32_0 = arith.constant 0 : i32
    %c0_i32_1 = arith.constant 0 : i32
    return %c0_i32, %c0_i32_0 : i32, i32
  }
  func.func @transform_3(%arg0: i32) -> (i32, i32, i32) {
    %c0_i32 = arith.constant 0 : i32
    %c0_i32_0 = arith.constant 0 : i32
    %c0_i32_1 = arith.constant 0 : i32
    %c0_i32_2 = arith.constant 0 : i32
    return %c0_i32, %c0_i32_0, %c0_i32_1 : i32, i32, i32
  }
  func.func @transform_4(%arg0: i32) -> (i32, i32) {
    %c0_i32 = arith.constant 0 : i32
    %c0_i32_0 = arith.constant 0 : i32
    %c0_i32_1 = arith.constant 0 : i32
    return %c0_i32, %c0_i32_0 : i32, i32
  }
  func.func @transform_5(%arg0: i32) -> (i32, i32) {
    %c0_i32 = arith.constant 0 : i32
    %c0_i32_0 = arith.constant 0 : i32
    %c0_i32_1 = arith.constant 0 : i32
    return %c0_i32, %c0_i32_0 : i32, i32
  }
  func.func @transform_6(%arg0: i32) -> (i32, i32) {
    %c0_i32 = arith.constant 0 : i32
    %c0_i32_0 = arith.constant 0 : i32
    %c0_i32_1 = arith.constant 0 : i32
    return %c0_i32, %c0_i32_0 : i32, i32
  }
  func.func @transform_7(%arg0: i32) -> (i32, i32) {
    %c0_i32 = arith.constant 0 : i32
    %c0_i32_0 = arith.constant 0 : i32
    %c0_i32_1 = arith.constant 0 : i32
    return %c0_i32, %c0_i32_0 : i32, i32
  }
  func.func @transform_8(%arg0: i32) -> (i32, i32) {
    %c0_i32 = arith.constant 0 : i32
    %c0_i32_0 = arith.constant 0 : i32
    %c0_i32_1 = arith.constant 0 : i32
    return %c0_i32, %c0_i32_0 : i32, i32
  }
  func.func @transform_9(%arg0: i32) -> (i32, i32) {
    %c0_i32 = arith.constant 0 : i32
    %c0_i32_0 = arith.constant 0 : i32
    return %arg0, %c0_i32 : i32, i32
  }
}

</mosaic_0001>

<bundles_post_ra>
// kernel: forward.3
= control target key start
LH: loop header
LB: loop body
LE: loop exit
PB: predicated region body
PF: predicated region fallthrough
CT: control target
= control target key end

     0   :  { %s1053_s12 = smov 0   ;;  %s1055_s13 = smov 0   ;;  %s1177_s0 = inlined_call_operand.vmem [shape: bf16[4,392,100], index: 0, kind: input, shape index: {}]   ;;  %s1178_s1 = inlined_call_operand.vmem [shape: bf16[100,128], index: 1, kind: input, shape index: {}]   ;;  %s1179_s2 = inlined_call_operand.vmem [shape: f32[1,128], index: 2, kind: input, shape index: {}]   ;;  %s1180_s3 = inlined_call_operand.vmem [shape: bf16[392,128], index: 3, kind: output, shape index: {}]  }
   0x1   :  { %s1057_s14 = smov 0  }
   0x2 LB: > { %s806_s15 = sadd.s32 4294967295, %s1031_s14   ;;  %s1070_s16 = sadd.s32 1, %s1031_s14   ;;  %s1031_s14 = sphi %s1057_s14, %s1183_s14   ;;  %s1027_s13 = sphi %s1055_s13, %s1182_s13   ;;  %s1023_s12 = sphi %s1053_s12, %s1181_s12  }
   0x3   : > { %s17_s17 = ssub.s32 %s1031_s14, %s1070_s16  ;;  %s20_s18 = sadd.s32 1, %s1027_s13 }
   0x4   : > { %p18_p0 = scmp.eq.s32.totalorder %s17_s17, 0  ;;  %p27_p1 = scmp.ne.s32.totalorder %s1027_s13, %s1023_s12 }
   0x5   : > { %p28_p2 = scmp.eq.s32.totalorder %s1031_s14, 0  ;;  %p809_p4 = scmp.ge.s32.totalorder %s1031_s14, 7 }
   0x6   : > { %s1079_s19 = scalar_select %p18_p0, %s1027_s13, %s20_s18  }
   0x7   : > { %p29_p3 = por %p28_p2, %p27_p1  ;;  %127 = sbr.rel (%p809_p4) target bundleno = 27 (0x1b), region = 24 }
   0xe   : > { %130 = sbr.rel (!%p29_p3) target bundleno = 27 (0x1b), region = 28  ;;  %s132_s20 = sand.u32 (%p29_p3), 1, %s1027_s13  }
   0xf   : > { %s858_s21 = smul.u32 (%p29_p3), 28, %s1031_s14 }
  0x10   : > { %s962_s22 = smul.u32 (%p29_p3), 112, %s132_s20 }
  0x11   : > { %s1087_s25 = scalar_lea.vmem (%p29_p3), %s1177_s0, %s858_s21 }
  0x12   : > { %v153_v0 = vld [vmem:[%s1087_s25] sm:$0xff] (%p29_p3)   ;;  %v157_v1 = vld [vmem:[%s1087_s25 + $0x8] sm:$0xff] (%p29_p3)   ;;  %v161_v2 = vld [vmem:[%s1087_s25 + $0x10] sm:$0xff] (%p29_p3)   ;;  %s134_s26 = scalar_lea.vmem (%p29_p3), [#allocation2], %s962_s22 }
  0x13   : > { %154 = vst [vmem:[%s134_s26] sm:$0xff] (%p29_p3), %v153_v0   ;;  %158 = vst [vmem:[%s134_s26 + $0x8] sm:$0xff] (%p29_p3), %v157_v1   ;;  %v165_v3 = vld [vmem:[%s1087_s25 + $0x18] sm:$0xf] (%p29_p3)  ;;  %v167_v4 = vld [vmem:[%s1087_s25 + $0xc4] sm:$0xff] (%p29_p3)  }
  0x14   : > { %162 = vst [vmem:[%s134_s26 + $0x10] sm:$0xff] (%p29_p3), %v161_v2   ;;  %v171_v5 = vld [vmem:[%s1087_s25 + $0xcc] sm:$0xff] (%p29_p3)   ;;  %166 = vst [vmem:[%s134_s26 + $0x18] sm:$0xf] (%p29_p3), %v165_v3  ;;  %v175_v6 = vld [vmem:[%s1087_s25 + $0xd4] sm:$0xff] (%p29_p3)  }
  0x15   : > { %168 = vst [vmem:[%s134_s26 + $0x1c] sm:$0xff] %v167_v4   ;;  %172 = vst [vmem:[%s134_s26 + $0x24] sm:$0xff] %v171_v5   ;;  %v179_v7 = vld [vmem:[%s1087_s25 + $0xdc] sm:$0xf]  ;;  %v181_v8 = vld [vmem:[%s1087_s25 + $0x188] sm:$0xff]  }
  0x16   : > { %176 = vst [vmem:[%s134_s26 + $0x2c] sm:$0xff] %v175_v6   ;;  %180 = vst [vmem:[%s134_s26 + $0x34] sm:$0xf] %v179_v7  ;;  %v185_v9 = vld [vmem:[%s1087_s25 + $0x190] sm:$0xff]   ;;  %v189_v10 = vld [vmem:[%s1087_s25 + $0x198] sm:$0xff]  }
  0x17   : > { %182 = vst [vmem:[%s134_s26 + $0x38] sm:$0xff] %v181_v8   ;;  %v193_v11 = vld [vmem:[%s1087_s25 + $0x1a0] sm:$0xf]  ;;  %186 = vst [vmem:[%s134_s26 + $0x40] sm:$0xff] %v185_v9   ;;  %v195_v12 = vld [vmem:[%s1087_s25 + $0x24c] sm:$0xff]  }
  0x18   : > { %190 = vst [vmem:[%s134_s26 + $0x48] sm:$0xff] %v189_v10   ;;  %194 = vst [vmem:[%s134_s26 + $0x50] sm:$0xf] %v193_v11  ;;  %v199_v13 = vld [vmem:[%s1087_s25 + $0x254] sm:$0xff]   ;;  %v203_v14 = vld [vmem:[%s1087_s25 + $0x25c] sm:$0xff]  }
  0x19   : > { %196 = vst [vmem:[%s134_s26 + $0x54] sm:$0xff] %v195_v12   ;;  %200 = vst [vmem:[%s134_s26 + $0x5c] sm:$0xff] %v199_v13   ;;  %v207_v15 = vld [vmem:[%s1087_s25 + $0x264] sm:$0xf] }
  0x1a   : > { %204 = vst [vmem:[%s134_s26 + $0x64] sm:$0xff] %v203_v14   ;;  %208 = vst [vmem:[%s134_s26 + $0x6c] sm:$0xf] %v207_v15 }
  0x1b PF: > { %p811_p5 = scmp.ge.s32.totalorder %s1031_s14, 1  ;;  %p286_p6 = scmp.lt.s32.totalorder %s1031_s14, 8 }
  0x1d   : > { %p287_p7 = pnand %p811_p5, %p286_p6 }
  0x1e   : > { %v988_v16 = vld [vmem:[%s1178_s1] sm:$0xff] (!%p287_p7)   ;;  %v989_v17 = vld [vmem:[%s1178_s1 + $0x8] sm:$0xff] (!%p287_p7)   ;;  %s293_s4 = sand.u32 (!%p287_p7), 1, %s1023_s12   ;;  %v990_v18 = vld [vmem:[%s1178_s1 + $0x10] sm:$0xff] (!%p287_p7)   ;;  %vm474_vm0 = vcmask (!%p287_p7), 818176   ;;  %vm517_vm1 = vcmask (!%p287_p7), 1041408  }
  0x1f   : > { %290 = sbr.rel (%p287_p7) target bundleno = 311 (0x137), region = 69  ;;  %904 = vmatprep.subr.bf16.mxu0 (!%p287_p7), %v988_v16  ;;  %946 = vmatprep.subr.bf16.mxu1 (!%p287_p7), %v988_v16  ;;  %v991_v20 = vld [vmem:[%s1178_s1 + $0x18] sm:$0xff] (!%p287_p7)   ;;  %v992_v22 = vld [vmem:[%s1178_s1 + $0x20] sm:$0xff] (!%p287_p7)   ;;  %v993_v23 = vld [vmem:[%s1178_s1 + $0x28] sm:$0xff] (!%p287_p7)  }
  0x20   : > { %s963_s5 = smul.u32 (!%p287_p7), 112, %s293_s4  ;;  %905 = vmatpush3.bf16.msra.mxu0 (!%p287_p7), %v988_v16  ;;  %953 = vmatpush3.bf16.msra.mxu1 (!%p287_p7), %v988_v16  ;;  %v994_v24 = vld [vmem:[%s1178_s1 + $0x30] ss:$0 sps:$4 sm:$0x33] (!%p287_p7)   ;;  %v848_v4 = vld [vmem:[%s1179_s2] ss:$0 sm:$0xff] (!%p287_p7) }
  0x21   : > { %906 = vmatprep.subr.bf16.mxu0 (!%p287_p7), %v989_v17  ;;  %947 = vmatprep.subr.bf16.mxu1 (!%p287_p7), %v989_v17  ;;  %v519_v25 = vsel (!%p287_p7), %vm517_vm1, %v994_v24, 0  ;;  %s317_s22 = smul.u32 (!%p287_p7), 7, %s806_s15 }
  0x22   : > { %s1117_s8 = scalar_lea.vmem (!%p287_p7), [#allocation2], %s963_s5 }
  0x23   : > { %v995_v19 = vld [vmem:[%s1117_s8] sm:$0xff] (!%p287_p7)   ;;  %v996_v26 = vld [vmem:[%s1117_s8 + $0x8] sm:$0xff] (!%p287_p7)   ;;  %v999_v28 = vld [vmem:[%s1117_s8 + $0x10] sm:$0xff] (!%p287_p7)   ;;  %p318_p8 = scmp.lt.s32.totalorder (!%p287_p7), %s317_s22, 48 }
  0x24   : > { %907 = vmatpush3.bf16.msra.mxu0 (!%p287_p7), %v989_v17  ;;  %954 = vmatpush3.bf16.msra.mxu1 (!%p287_p7), %v989_v17  ;;  %v997_v21 = vld [vmem:[%s1117_s8 + $0x40] sm:$0xff] (!%p287_p7)   ;;  %v998_v27 = vld [vmem:[%s1117_s8 + $0x48] sm:$0xff] (!%p287_p7)   ;;  %v1001_v29 = vld [vmem:[%s1117_s8 + $0x50] sm:$0xff] (!%p287_p7)  }
  0x25   : > { %908 = vmatprep.subr.bf16.mxu0 (!%p287_p7), %v990_v18  ;;  %948 = vmatprep.subr.bf16.mxu1 (!%p287_p7), %v990_v18  ;;  %v1000_v30 = vld [vmem:[%s1117_s8 + $0x18] sm:$0xff] (!%p287_p7)   ;;  %v1003_v32 = vld [vmem:[%s1117_s8 + $0x20] sm:$0xff] (!%p287_p7)   ;;  %v1004_v34 = vld [vmem:[%s1117_s8 + $0x28] sm:$0xff] (!%p287_p7)  }
  0x26   : > { %918 = vmatprep.mubr.msk.bf16.mxu0 %vm474_vm0, %v995_v19  ;;  %934 = vmatprep.mubr.msk.bf16.mxu1 %vm474_vm0, %v997_v21  ;;  %v1002_v31 = vld [vmem:[%s1117_s8 + $0x58] sm:$0xff]   ;;  %v1005_v33 = vld [vmem:[%s1117_s8 + $0x60] sm:$0xff]   ;;  %v1006_v35 = vld [vmem:[%s1117_s8 + $0x68] sm:$0xff]   ;;  %s1185_s22 = smov (!%p318_p8, %s317_s22), 48 }
  0x27   : > { %v1007_v36 = vld [vmem:[%s1117_s8 + $0x30] sm:$0xff]   ;;  %v1008_v37 = vld [vmem:[%s1117_s8 + $0x38] sm:$0xff]   ;;  %s812_s14 = sshll.u32 %s1185_s22, 2 }
  0x28   : > { %909 = vmatpush3.bf16.msra.mxu0 %v990_v18  ;;  %955 = vmatpush3.bf16.msra.mxu1 %v990_v18  ;;  %s321_s26 = scalar_lea.vmem %s1180_s3, %s812_s14 }
  0x29   : > { %910 = vmatprep.subr.bf16.mxu0 %v991_v20  ;;  %949 = vmatprep.subr.bf16.mxu1 %v991_v20 }
  0x2c   : > { %911 = vmatpush3.bf16.msra.mxu0 %v991_v20  ;;  %956 = vmatpush3.bf16.msra.mxu1 %v991_v20 }
  0x2d   : > { %912 = vmatprep.subr.bf16.mxu0 %v992_v22  ;;  %950 = vmatprep.subr.bf16.mxu1 %v992_v22 }
  0x30   : > { %913 = vmatpush3.bf16.msra.mxu0 %v992_v22  ;;  %957 = vmatpush3.bf16.msra.mxu1 %v992_v22 }
  0x31   : > { %914 = vmatprep.subr.bf16.mxu0 %v993_v23  ;;  %951 = vmatprep.subr.bf16.mxu1 %v993_v23 }
  0x34   : > { %915 = vmatpush3.bf16.msra.mxu0 %v993_v23  ;;  %958 = vmatpush3.bf16.msra.mxu1 %v993_v23 }
  0x35   : > { %960 = vmatprep.subr.msk.bf16.mxu0 %vm517_vm1, %v994_v24  ;;  %961 = vmatprep.subr.msk.bf16.mxu1 %vm517_vm1, %v994_v24 }
  0x38   : > { %917 = vmatpush3.bf16.msra.mxu0 %v519_v25  ;;  %959 = vmatpush3.bf16.msra.mxu1 %v519_v25 }
  0x3b   : > { %919 = vmatmul.mubr.msk.bf16.vlgmr.msra.gmra.mrb[0].mxu0 %vm474_vm0, %v996_v26  ;;  %935 = vmatmul.mubr.msk.bf16.vlgmr.msra.gmra.mrb[0].mxu1 %vm474_vm0, %v998_v27 }
  0x3c   : > { %922 = vmatprep.mubr.msk.bf16.mxu0 %vm474_vm0, %v999_v28  ;;  %938 = vmatprep.mubr.msk.bf16.mxu1 %vm474_vm0, %v1001_v29 }
  0x43   : > { %923 = vmatmul.mubr.msk.bf16.gmra.mrb[4].mxu0 %vm474_vm0, %v1000_v30  ;;  %939 = vmatmul.mubr.msk.bf16.gmra.mrb[4].mxu1 %vm474_vm0, %v1002_v31 }
  0x44   : > { %926 = vmatprep.mubr.msk.bf16.mxu0 %vm474_vm0, %v1003_v32  ;;  %942 = vmatprep.mubr.msk.bf16.mxu1 %vm474_vm0, %v1005_v33 }
  0x4b   : > { %927 = vmatmul.mubr.msk.bf16.gmra.mrb[8].mxu0 %vm474_vm0, %v1004_v34  ;;  %943 = vmatmul.mubr.msk.bf16.gmra.mrb[8].mxu1 %vm474_vm0, %v1006_v35 }
  0x4c   : > { %930 = vmatprep.mubr.msk.bf16.mxu0 %vm474_vm0, %v1007_v36 }
  0x53   : > { %931 = vmatmul.mubr.msk.bf16.gmra.mrb[12].mxu0 %vm474_vm0, %v1008_v37 }
 0x10e   : > { %v920_v38 = vpop.f32.mrb[0].mxu0  ;;  %v936_v39 = vpop.f32.mrb[0].mxu1 }
 0x10f   : > { %v555_v40 = vpop.f32.mrb[1].mxu0  ;;  %v619_v41 = vpop.f32.mrb[1].mxu1 }
 0x110   : > { %v921_v42 = vpop.f32.mrb[2].mxu0  ;;  %v937_v43 = vpop.f32.mrb[2].mxu1 }
 0x111   : > { %v558_v44 = vpop.f32.mrb[3].mxu0  ;;  %v622_v45 = vpop.f32.mrb[3].mxu1 }
 0x116   : > { %v924_v46 = vpop.f32.mrb[4].mxu0  ;;  %v940_v47 = vpop.f32.mrb[4].mxu1 }
 0x117   : > { %v571_v48 = vpop.f32.mrb[5].mxu0  ;;  %v635_v49 = vpop.f32.mrb[5].mxu1 }
 0x118   : > { %v925_v50 = vpop.f32.mrb[6].mxu0  ;;  %v941_v51 = vpop.f32.mrb[6].mxu1 }
 0x119   : > { %v666_v52 = vmax.f32 %v555_v40, %v925_v50  ;;  %v574_v53 = vpop.f32.mrb[7].mxu0  ;;  %v638_v54 = vpop.f32.mrb[7].mxu1 }
 0x11e   : > { %v928_v55 = vpop.f32.mrb[8].mxu0  ;;  %v944_v56 = vpop.f32.mrb[8].mxu1 }
 0x11f   : > { %v675_v57 = vmax.f32 %v921_v42, %v928_v55  ;;  %v587_v58 = vpop.f32.mrb[9].mxu0  ;;  %v651_v59 = vpop.f32.mrb[9].mxu1 }
 0x120   : > { %v669_v60 = vmax.f32 %v558_v44, %v587_v58  ;;  %v929_v61 = vpop.f32.mrb[10].mxu0  ;;  %v945_v62 = vpop.f32.mrb[10].mxu1 }
 0x121   : > { %v678_v63 = vmax.f32 %v571_v48, %v929_v61  ;;  %v590_v0 = vpop.f32.mrb[11].mxu0  ;;  %v676_v1 = vmax.f32 %v675_v57, %v622_v45  ;;  %v654_v2 = vpop.f32.mrb[11].mxu1 }
 0x122   : > { %v672_v3 = vmax.f32 %v920_v38, %v590_v0 }
 0x123   : > { %v677_v5 = vmax.f32 %v676_v1, %v651_v59  ;;  %v679_v6 = vmax.f32 %v678_v63, %v936_v39 }
 0x124   : > { %v673_v7 = vmax.f32 %v672_v3, %v619_v41 }
 0x125   : > { %v680_v8 = vmax.f32 %v679_v6, %v654_v2  ;;  %v697_v10 = vadd.f32 %v848_v4, %v677_v5 }
 0x126   : > { %v674_v9 = vmax.f32 %v673_v7, %v941_v51  ;;  %v932_v11 = vpop.f32.mrb[12].mxu0 }
 0x127   : > { %v667_v12 = vmax.f32 %v666_v52, %v932_v11  ;;  %v603_v13 = vpop.f32.mrb[13].mxu0  ;;  %v704_v21 = vmax.f32 %v697_v10, 0.0  ;;  %v698_v27 = vadd.f32 %v848_v4, %v680_v8 }
 0x128   : > { %v696_v14 = vadd.f32 %v848_v4, %v674_v9  ;;  %v681_v15 = vmax.f32 %v574_v53, %v603_v13  ;;  %v933_v16 = vpop.f32.mrb[14].mxu0 }
 0x129   : > { %v668_v17 = vmax.f32 %v667_v12, %v638_v54  ;;  %v670_v18 = vmax.f32 %v669_v60, %v933_v16  ;;  %v606_v19 = vpop.f32.mrb[15].mxu0  ;;  %v705_v35 = vmax.f32 %v698_v27, 0.0 }
 0x12a   : > { %v703_v20 = vmax.f32 %v696_v14, 0.0  ;;  %v682_v22 = vmax.f32 %v681_v15, %v937_v43  ;;  %v684_v23 = vmax.f32 %v924_v46, %v606_v19 }
 0x12b   : > { %v694_v24 = vadd.f32 %v848_v4, %v668_v17  ;;  %v671_v25 = vmax.f32 %v670_v18, %v940_v47 }
 0x12c   : > { %v874_v26 = vpack.c.bf16 %v704_v21, %v703_v20  ;;  %v683_v28 = vmax.f32 %v682_v22, %v944_v56  ;;  %v685_v29 = vmax.f32 %v684_v23, %v635_v49 }
 0x12d   : > { %v695_v30 = vadd.f32 %v848_v4, %v671_v25  ;;  %v701_v33 = vmax.f32 %v694_v24, 0.0 }
 0x12e   : > { %881 = vst [vmem:[%s321_s26 + $0x8] sm:$0xff] %v874_v26   ;;  %v699_v31 = vadd.f32 %v848_v4, %v683_v28  ;;  %v686_v32 = vmax.f32 %v685_v29, %v945_v62 }
 0x12f   : > { %v702_v34 = vmax.f32 %v695_v30, 0.0 }
 0x130   : > { %v706_v36 = vmax.f32 %v699_v31, 0.0  ;;  %v700_v37 = vadd.f32 %v848_v4, %v686_v32 }
 0x131   : > { %v869_v38 = vpack.c.bf16 %v702_v34, %v701_v33 }
 0x132   : > { %v879_v39 = vpack.c.bf16 %v706_v36, %v705_v35  ;;  %v707_v40 = vmax.f32 %v700_v37, 0.0 }
 0x133   : > { %870 = vst [vmem:[%s321_s26] sm:$0xff] %v869_v38  }
 0x134   : > { %882 = vst [vmem:[%s321_s26 + $0x10] sm:$0xff] %v879_v39   ;;  %v865_v41 = vpack.c.bf16 %v707_v40, %v707_v40 }
 0x136   : > { %743 = vst [vmem:[%s321_s26 + $0x18] sm:$0xf] %v865_v41 }
 0x137 PF: > { %p10_p9 = scmp.ge.s32.totalorder %s1070_s16, 9   ;;  %s1181_s12 = smov %s1027_s13 }
 0x138   : > { %s1182_s13 = smov %s1079_s19  ;;  %s1183_s14 = smov %s1070_s16 }
 0x139   :  { %12 = sbr.rel (!%p10_p9) target bundleno = 2 (0x2), region = 108 }

// kernel: forward.4
= control target key start
LH: loop header
LB: loop body
LE: loop exit
PB: predicated region body
PF: predicated region fallthrough
CT: control target
= control target key end

     0   :  { %s4066_s12 = smov 0   ;;  %s4068_s13 = smov 0   ;;  %s5307_s0 = inlined_call_operand.vmem [shape: bf16[4,196,576], index: 0, kind: input, shape index: {}]   ;;  %s5308_s1 = inlined_call_operand.vmem [shape: bf16[576,128], index: 1, kind: input, shape index: {}]   ;;  %s5309_s2 = inlined_call_operand.vmem [shape: f32[1,128], index: 2, kind: input, shape index: {}]   ;;  %s5310_s3 = inlined_call_operand.vmem [shape: bf16[196,128], index: 3, kind: output, shape index: {}]  }
   0x1   :  { %s4070_s14 = smov 0  }
   0x2 LB: > { %s4082_s15 = sadd.s32 4294967295, %s3947_s14   ;;  %s4085_s16 = sadd.s32 1, %s3947_s14   ;;  %s3947_s14 = sphi %s4070_s14, %s5333_s14   ;;  %s3943_s13 = sphi %s4068_s13, %s5332_s13   ;;  %s3939_s12 = sphi %s4066_s12, %s5331_s12  }
   0x3   : > { %s17_s17 = ssub.s32 %s3947_s14, %s4085_s16  ;;  %s20_s18 = sadd.s32 1, %s3943_s13 }
   0x4   : > { %p18_p0 = scmp.eq.s32.totalorder %s17_s17, 0  ;;  %p27_p1 = scmp.ne.s32.totalorder %s3943_s13, %s3939_s12 }
   0x5   : > { %p28_p2 = scmp.eq.s32.totalorder %s3947_s14, 0  ;;  %p99_p3 = scmp.eq.s32.totalorder %s4082_s15, 1 }
   0x6   : > { %s4095_s19 = scalar_select %p18_p0, %s3943_s13, %s20_s18  }
   0x7   : > { %p29_p4 = por %p28_p2, %p27_p1  ;;  %p4097_p5 = por %p99_p3, %p27_p1 }
   0x8   : > { %p2906_p6 = scmp.ge.s32.totalorder %s3947_s14, 2 }
   0xa   : > { %127 = sbr.rel (%p2906_p6) target bundleno = 204 (0xcc), region = 24 }
  0x11   : > { %130 = sbr.rel (!%p29_p4) target bundleno = 204 (0xcc), region = 28  ;;  %s132_s21 = sand.u32 (%p29_p4), 1, %s3943_s13  }
  0x12   : > { %s135_s22 = smul.u32 (%p29_p4), 13, %s3947_s14 }
  0x13   : > { %s3374_s23 = smul.u32 (%p29_p4), 1040, %s132_s21 }
  0x14   : > { %s136_s24 = ssub.s32 (%p29_p4), 25, %s135_s22  ;;  %s3378_s25 = smul.u32 (%p29_p4), 260, %s3947_s14 }
  0x15   : > { %p137_p7 = scmp.lt.s32.totalorder (%p29_p4), %s136_s24, 13  ;;  %s4113_s30 = scalar_lea.vmem (%p29_p4), [#allocation2], %s3374_s23  }
  0x16   : > { %s4108_s28 = scalar_lea.vmem (%p29_p4), %s5307_s0, %s3378_s25  }
  0x18   : > { %s5335_s24 = smov (!%p137_p7, %s136_s24), 13 }
  0x19   : > { %s2908_s29 = smul.u32 1280, %s5335_s24 }
  0x1b   : > { %p2911_p8 = scmp.eq.s32.totalorder %s2908_s29, 0 }
  0x1c   : > { %s150_s4 = scalar_lea.vmem (!%p2911_p8), %s4108_s28, 16   ;;  %s151_s5 = scalar_lea.vmem (!%p2911_p8), %s4113_s30, 16 [#allocation2]  }
  0x1d   : > { %147 = sbr.rel (%p2911_p8) target bundleno = 204 (0xcc), region = 32 }
  0x1e   : > { %3599 = sdivrem.u32 (!%p2911_p8), %s5335_s24, 7 }
  0x27   : > { %s4118_s6 = spop.drf %3599 }
  0x28   : > { %p2912_p9 = scmp.le.s32.totalorder %s4118_s6, 0 }
  0x29   : > { %s5312_s7 = smov (!%p2912_p9), %s4113_s30  ;;  %s5313_s8 = smov (!%p2912_p9), %s4108_s28 }
  0x2a   : > { %2804 = sbr.rel (%p2912_p9) target bundleno = 78 (0x4e), region = 167  ;;  %s4127_s9 = smov (!%p2912_p9), 0  }
  0x2b   : > { %s4129_s10 = smov (!%p2912_p9), 0  }
  0x31 LB: >> { %v163_v0 = vld [vmem:[%s3955_s8] sm:$0xff]  ;;  %v165_v1 = vld [vmem:[%s3955_s8 + $0x14] sm:$0xff]  ;;  %v167_v2 = vld [vmem:[%s3955_s8 + $0x28] sm:$0xff]  ;;  %s275_s11 = sadd.s32 1, %s3959_s9  ;;  %s157_s10 = sadd.s32 1, %s3963_s10   ;;  %s3963_s10 = sphi %s4129_s10, %s157_s10   ;;  %s3959_s9 = sphi %s4127_s9, %s5316_s9   ;;  %s3955_s8 = sphi %s5313_s8, %s5315_s8   ;;  %s3951_s7 = sphi %s5312_s7, %s5314_s7  }
  0x32   : >> { %164 = vst [vmem:[%s3951_s7] sm:$0xff] %v163_v0  ;;  %166 = vst [vmem:[%s3951_s7 + $0x14] sm:$0xff] %v165_v1  ;;  %v169_v3 = vld [vmem:[%s3955_s8 + $0x3c] sm:$0xff]  ;;  %v171_v4 = vld [vmem:[%s3955_s8 + $0x50] sm:$0xff]  ;;  %p276_p10 = scmp.ge.s32.totalorder %s275_s11, %s4118_s6  ;;  %p156_p11 = scmp.ge.s32.totalorder %s157_s10, %s4118_s6 }
  0x33   : >> { %168 = vst [vmem:[%s3951_s7 + $0x28] sm:$0xff] %v167_v2  ;;  %v173_v5 = vld [vmem:[%s3955_s8 + $0x64] sm:$0xff]  ;;  %170 = vst [vmem:[%s3951_s7 + $0x3c] sm:$0xff] %v169_v3  ;;  %v175_v6 = vld [vmem:[%s3955_s8 + $0x78] sm:$0xff] }
  0x34   : >> { %172 = vst [vmem:[%s3951_s7 + $0x50] sm:$0xff] %v171_v4  ;;  %174 = vst [vmem:[%s3951_s7 + $0x64] sm:$0xff] %v173_v5  ;;  %v177_v7 = vld [vmem:[%s3955_s8 + $0x8] sm:$0xff]  ;;  %v179_v8 = vld [vmem:[%s3955_s8 + $0x1c] sm:$0xff]  ;;  %s5337_s11 = smov (%p276_p10, %s275_s11), 0 }
  0x35   : >> { %176 = vst [vmem:[%s3951_s7 + $0x78] sm:$0xff] %v175_v6  ;;  %178 = vst [vmem:[%s3951_s7 + $0x8] sm:$0xff] %v177_v7  ;;  %v181_v9 = vld [vmem:[%s3955_s8 + $0x30] sm:$0xff]  ;;  %v183_v10 = vld [vmem:[%s3955_s8 + $0x44] sm:$0xff]  ;;  %s278_s17 = smul.u32 140, %s5337_s11  ;;  %s5316_s9 = smov %s5337_s11 }
  0x36   : >> { %180 = vst [vmem:[%s3951_s7 + $0x1c] sm:$0xff] %v179_v8  ;;  %v185_v11 = vld [vmem:[%s3955_s8 + $0x58] sm:$0xff]  ;;  %182 = vst [vmem:[%s3951_s7 + $0x30] sm:$0xff] %v181_v9  ;;  %v187_v12 = vld [vmem:[%s3955_s8 + $0x6c] sm:$0xff] }
  0x37   : >> { %184 = vst [vmem:[%s3951_s7 + $0x44] sm:$0xff] %v183_v10  ;;  %186 = vst [vmem:[%s3951_s7 + $0x58] sm:$0xff] %v185_v11  ;;  %v189_v13 = vld [vmem:[%s3955_s8 + $0x80] sm:$0xff]  ;;  %v191_v14 = vld [vmem:[%s3955_s8 + $0x1f4] sm:$0xff]  ;;  %s4191_s18 = scalar_lea.vmem %s4108_s28, %s278_s17   ;;  %s4194_s21 = scalar_lea.vmem %s4113_s30, %s278_s17 [#allocation2]  }
  0x38   : >> { %188 = vst [vmem:[%s3951_s7 + $0x6c] sm:$0xff] %v187_v12  ;;  %190 = vst [vmem:[%s3951_s7 + $0x80] sm:$0xff] %v189_v13  ;;  %v193_v15 = vld [vmem:[%s3955_s8 + $0x208] sm:$0xff]  ;;  %v195_v16 = vld [vmem:[%s3955_s8 + $0x21c] sm:$0xff] }
  0x39   : >> { %192 = vst [vmem:[%s3951_s7 + $0x104] sm:$0xff] %v191_v14  ;;  %v197_v17 = vld [vmem:[%s3955_s8 + $0x230] sm:$0xff]  ;;  %194 = vst [vmem:[%s3951_s7 + $0x118] sm:$0xff] %v193_v15  ;;  %v199_v18 = vld [vmem:[%s3955_s8 + $0x244] sm:$0xff] }
  0x3a   : >> { %196 = vst [vmem:[%s3951_s7 + $0x12c] sm:$0xff] %v195_v16  ;;  %198 = vst [vmem:[%s3951_s7 + $0x140] sm:$0xff] %v197_v17  ;;  %v201_v19 = vld [vmem:[%s3955_s8 + $0x258] sm:$0xff]  ;;  %v203_v20 = vld [vmem:[%s3955_s8 + $0x26c] sm:$0xff] }
  0x3b   : >> { %200 = vst [vmem:[%s3951_s7 + $0x154] sm:$0xff] %v199_v18  ;;  %202 = vst [vmem:[%s3951_s7 + $0x168] sm:$0xff] %v201_v19  ;;  %v205_v21 = vld [vmem:[%s3955_s8 + $0x1fc] sm:$0xff]  ;;  %v207_v22 = vld [vmem:[%s3955_s8 + $0x210] sm:$0xff] }
  0x3c   : >> { %204 = vst [vmem:[%s3951_s7 + $0x17c] sm:$0xff] %v203_v20  ;;  %v209_v23 = vld [vmem:[%s3955_s8 + $0x224] sm:$0xff]  ;;  %206 = vst [vmem:[%s3951_s7 + $0x10c] sm:$0xff] %v205_v21  ;;  %v211_v24 = vld [vmem:[%s3955_s8 + $0x238] sm:$0xff] }
  0x3d   : >> { %208 = vst [vmem:[%s3951_s7 + $0x120] sm:$0xff] %v207_v22  ;;  %210 = vst [vmem:[%s3951_s7 + $0x134] sm:$0xff] %v209_v23  ;;  %v213_v25 = vld [vmem:[%s3955_s8 + $0x24c] sm:$0xff]  ;;  %v215_v26 = vld [vmem:[%s3955_s8 + $0x260] sm:$0xff] }
  0x3e   : >> { %212 = vst [vmem:[%s3951_s7 + $0x148] sm:$0xff] %v211_v24  ;;  %214 = vst [vmem:[%s3951_s7 + $0x15c] sm:$0xff] %v213_v25  ;;  %v217_v27 = vld [vmem:[%s3955_s8 + $0x274] sm:$0xff]  ;;  %v219_v28 = vld [vmem:[%s3955_s8 + $0x3e8] sm:$0xff] }
  0x3f   : >> { %216 = vst [vmem:[%s3951_s7 + $0x170] sm:$0xff] %v215_v26  ;;  %v221_v29 = vld [vmem:[%s3955_s8 + $0x3fc] sm:$0xff]  ;;  %218 = vst [vmem:[%s3951_s7 + $0x184] sm:$0xff] %v217_v27  ;;  %v223_v30 = vld [vmem:[%s3955_s8 + $0x410] sm:$0xff] }
  0x40   : >> { %220 = vst [vmem:[%s3951_s7 + $0x208] sm:$0xff] %v219_v28  ;;  %222 = vst [vmem:[%s3951_s7 + $0x21c] sm:$0xff] %v221_v29  ;;  %v225_v31 = vld [vmem:[%s3955_s8 + $0x424] sm:$0xff]  ;;  %v227_v32 = vld [vmem:[%s3955_s8 + $0x438] sm:$0xff] }
  0x41   : >> { %224 = vst [vmem:[%s3951_s7 + $0x230] sm:$0xff] %v223_v30  ;;  %226 = vst [vmem:[%s3951_s7 + $0x244] sm:$0xff] %v225_v31  ;;  %v229_v33 = vld [vmem:[%s3955_s8 + $0x44c] sm:$0xff]  ;;  %v231_v34 = vld [vmem:[%s3955_s8 + $0x460] sm:$0xff] }
  0x42   : >> { %228 = vst [vmem:[%s3951_s7 + $0x258] sm:$0xff] %v227_v32  ;;  %v233_v35 = vld [vmem:[%s3955_s8 + $0x3f0] sm:$0xff]  ;;  %230 = vst [vmem:[%s3951_s7 + $0x26c] sm:$0xff] %v229_v33  ;;  %v235_v36 = vld [vmem:[%s3955_s8 + $0x404] sm:$0xff] }
  0x43   : >> { %232 = vst [vmem:[%s3951_s7 + $0x280] sm:$0xff] %v231_v34  ;;  %234 = vst [vmem:[%s3951_s7 + $0x210] sm:$0xff] %v233_v35  ;;  %v237_v37 = vld [vmem:[%s3955_s8 + $0x418] sm:$0xff]  ;;  %v239_v38 = vld [vmem:[%s3955_s8 + $0x42c] sm:$0xff] }
  0x44   : >> { %236 = vst [vmem:[%s3951_s7 + $0x224] sm:$0xff] %v235_v36  ;;  %238 = vst [vmem:[%s3951_s7 + $0x238] sm:$0xff] %v237_v37  ;;  %v241_v39 = vld [vmem:[%s3955_s8 + $0x440] sm:$0xff]  ;;  %v243_v40 = vld [vmem:[%s3955_s8 + $0x454] sm:$0xff] }
  0x45   : >> { %240 = vst [vmem:[%s3951_s7 + $0x24c] sm:$0xff] %v239_v38  ;;  %v245_v41 = vld [vmem:[%s3955_s8 + $0x468] sm:$0xff]  ;;  %242 = vst [vmem:[%s3951_s7 + $0x260] sm:$0xff] %v241_v39  ;;  %v247_v42 = vld [vmem:[%s3955_s8 + $0x5dc] sm:$0xff] }
  0x46   : >> { %244 = vst [vmem:[%s3951_s7 + $0x274] sm:$0xff] %v243_v40  ;;  %246 = vst [vmem:[%s3951_s7 + $0x288] sm:$0xff] %v245_v41  ;;  %v249_v43 = vld [vmem:[%s3955_s8 + $0x5f0] sm:$0xff]  ;;  %v251_v44 = vld [vmem:[%s3955_s8 + $0x604] sm:$0xff] }
  0x47   : >> { %248 = vst [vmem:[%s3951_s7 + $0x30c] sm:$0xff] %v247_v42  ;;  %250 = vst [vmem:[%s3951_s7 + $0x320] sm:$0xff] %v249_v43  ;;  %v253_v45 = vld [vmem:[%s3955_s8 + $0x618] sm:$0xff]  ;;  %v255_v46 = vld [vmem:[%s3955_s8 + $0x62c] sm:$0xff]  ;;  %159 = sbr.rel (!%p156_p11) target bundleno = 49 (0x31), region = 173 }
  0x48   : >> { %252 = vst [vmem:[%s3951_s7 + $0x334] sm:$0xff] %v251_v44  ;;  %v257_v47 = vld [vmem:[%s3955_s8 + $0x640] sm:$0xff]  ;;  %254 = vst [vmem:[%s3951_s7 + $0x348] sm:$0xff] %v253_v45  ;;  %v259_v48 = vld [vmem:[%s3955_s8 + $0x654] sm:$0xff] }
  0x49   : >> { %256 = vst [vmem:[%s3951_s7 + $0x35c] sm:$0xff] %v255_v46  ;;  %258 = vst [vmem:[%s3951_s7 + $0x370] sm:$0xff] %v257_v47  ;;  %v261_v49 = vld [vmem:[%s3955_s8 + $0x5e4] sm:$0xff]  ;;  %v263_v50 = vld [vmem:[%s3955_s8 + $0x5f8] sm:$0xff] }
  0x4a   : >> { %260 = vst [vmem:[%s3951_s7 + $0x384] sm:$0xff] %v259_v48  ;;  %262 = vst [vmem:[%s3951_s7 + $0x314] sm:$0xff] %v261_v49  ;;  %v265_v51 = vld [vmem:[%s3955_s8 + $0x60c] sm:$0xff]  ;;  %v267_v52 = vld [vmem:[%s3955_s8 + $0x620] sm:$0xff] }
  0x4b   : >> { %264 = vst [vmem:[%s3951_s7 + $0x328] sm:$0xff] %v263_v50  ;;  %v269_v53 = vld [vmem:[%s3955_s8 + $0x634] sm:$0xff]  ;;  %266 = vst [vmem:[%s3951_s7 + $0x33c] sm:$0xff] %v265_v51  ;;  %v271_v54 = vld [vmem:[%s3955_s8 + $0x648] sm:$0xff] }
  0x4c   : >> { %268 = vst [vmem:[%s3951_s7 + $0x350] sm:$0xff] %v267_v52  ;;  %270 = vst [vmem:[%s3951_s7 + $0x364] sm:$0xff] %v269_v53  ;;  %v273_v55 = vld [vmem:[%s3955_s8 + $0x65c] sm:$0xff]  ;;  %s5315_s8 = smov %s4191_s18 }
  0x4d   : >> { %272 = vst [vmem:[%s3951_s7 + $0x378] sm:$0xff] %v271_v54  ;;  %274 = vst [vmem:[%s3951_s7 + $0x38c] sm:$0xff] %v273_v55  ;;  %s5314_s7 = smov %s4194_s21 }
  0x4e PF: > { %3601 = sdivrem.u32 %s5335_s24, 7 }
  0x4f   : > { %s2913_s22 = smul.u32 140, %s4118_s6 }
  0x51   : > { %s4279_s23 = scalar_lea.vmem %s4108_s28, %s2913_s22   ;;  %s4282_s25 = scalar_lea.vmem %s4113_s30, %s2913_s22 [#allocation2]  }
  0x57   : > { %s4284_s26 = spop.drf %3601 }
  0x58   : > { %p2915_p12 = scmp.le.s32.totalorder %s4284_s26, 0 }
  0x59   : > { %s5317_s27 = smov (!%p2915_p12), %s4282_s25  ;;  %s5318_s29 = smov (!%p2915_p12), %s4279_s23 }
  0x5a   : > { %2818 = sbr.rel (%p2915_p12) target bundleno = 107 (0x6b), region = 178  ;;  %s4293_s7 = smov (!%p2915_p12), 0  }
  0x5b   : > { %s4295_s8 = smov (!%p2915_p12), 0  }
  0x61 LB: >> { %v298_v56 = vld [vmem:[%s3971_s29] sm:$0xff]  ;;  %v300_v57 = vld [vmem:[%s3971_s29 + $0x8] sm:$0xff]  ;;  %v302_v58 = vld [vmem:[%s3971_s29 + $0x1f4] sm:$0xff]  ;;  %s314_s6 = sadd.s32 1, %s3975_s7  ;;  %s292_s8 = sadd.s32 1, %s3979_s8   ;;  %s3979_s8 = sphi %s4295_s8, %s292_s8   ;;  %s3975_s7 = sphi %s4293_s7, %s5319_s7   ;;  %s3971_s29 = sphi %s5318_s29, %s319_s29   ;;  %s3967_s27 = sphi %s5317_s27, %s320_s27  }
  0x62   : >> { %299 = vst [vmem:[%s3967_s27] sm:$0xff] %v298_v56  ;;  %301 = vst [vmem:[%s3967_s27 + $0x8] sm:$0xff] %v300_v57  ;;  %v304_v59 = vld [vmem:[%s3971_s29 + $0x1fc] sm:$0xff]  ;;  %v306_v60 = vld [vmem:[%s3971_s29 + $0x3e8] sm:$0xff]  ;;  %p315_p13 = scmp.ge.s32.totalorder %s314_s6, %s4284_s26  ;;  %p291_p0 = scmp.ge.s32.totalorder %s292_s8, %s4284_s26 }
  0x63   : >> { %303 = vst [vmem:[%s3967_s27 + $0x104] sm:$0xff] %v302_v58  ;;  %v308_v61 = vld [vmem:[%s3971_s29 + $0x3f0] sm:$0xff]  ;;  %305 = vst [vmem:[%s3967_s27 + $0x10c] sm:$0xff] %v304_v59  ;;  %v310_v62 = vld [vmem:[%s3971_s29 + $0x5dc] sm:$0xff] }
  0x64   : >> { %307 = vst [vmem:[%s3967_s27 + $0x208] sm:$0xff] %v306_v60  ;;  %309 = vst [vmem:[%s3967_s27 + $0x210] sm:$0xff] %v308_v61  ;;  %v312_v63 = vld [vmem:[%s3971_s29 + $0x5e4] sm:$0xff]  ;;  %s5339_s6 = smov (%p315_p13, %s314_s6), 0  ;;  %294 = sbr.rel (!%p291_p0) target bundleno = 97 (0x61), region = 184 }
  0x65   : >> { %311 = vst [vmem:[%s3967_s27 + $0x30c] sm:$0xff] %v310_v62  ;;  %313 = vst [vmem:[%s3967_s27 + $0x314] sm:$0xff] %v312_v63  ;;  %s317_s9 = smul.u32 20, %s5339_s6  ;;  %s5319_s7 = smov %s5339_s6 }
  0x67   : >> { %s319_s29 = scalar_lea.vmem %s4279_s23, %s317_s9   ;;  %s320_s27 = scalar_lea.vmem %s4282_s25, %s317_s9 [#allocation2]  }
  0x6b PF: > { %3603 = sdivrem.u32 %s5335_s24, 13 }
  0x74   : > { %s4314_s10 = spop.drf %3603 }
  0x75   : > { %p2916_p1 = scmp.le.s32.totalorder %s4314_s10, 0 }
  0x76   : > { %s4325_s11 = smov (!%p2916_p1), 0   ;;  %s4327_s17 = smov (!%p2916_p1), 0  }
  0x77   : > { %2832 = sbr.rel (%p2916_p1) target bundleno = 172 (0xac), region = 189 }
  0x7e LB: >> { %v333_v0 = vld [vmem:[%s3987_s4] sm:$0xf]  ;;  %v335_v1 = vld [vmem:[%s3987_s4 + $0x14] sm:$0xf]  ;;  %v337_v2 = vld [vmem:[%s3987_s4 + $0x28] sm:$0xf]  ;;  %s3995_s17 = sphi %s4327_s17, %s327_s17   ;;  %s3991_s11 = sphi %s4325_s11, %s5320_s11   ;;  %s3987_s4 = sphi %s150_s4, %s2747_s4   ;;  %s3983_s5 = sphi %s151_s5, %s2750_s5  }
  0x7f   : >> { %334 = vst [vmem:[%s3983_s5] sm:$0xf] %v333_v0  ;;  %336 = vst [vmem:[%s3983_s5 + $0x14] sm:$0xf] %v335_v1  ;;  %v339_v3 = vld [vmem:[%s3987_s4 + $0x3c] sm:$0xf]  ;;  %s437_s18 = sadd.s32 1, %s3991_s11 }
  0x80   : >> { %338 = vst [vmem:[%s3983_s5 + $0x28] sm:$0xf] %v337_v2  ;;  %v341_v4 = vld [vmem:[%s3987_s4 + $0x50] sm:$0xf]  ;;  %v343_v5 = vld [vmem:[%s3987_s4 + $0x64] sm:$0xf]  ;;  %p438_p2 = scmp.ge.s32.totalorder %s437_s18, %s4314_s10 }
  0x81   : >> { %340 = vst [vmem:[%s3983_s5 + $0x3c] sm:$0xf] %v339_v3  ;;  %342 = vst [vmem:[%s3983_s5 + $0x50] sm:$0xf] %v341_v4  ;;  %v345_v6 = vld [vmem:[%s3987_s4 + $0x78] sm:$0xf] }
  0x82   : >> { %344 = vst [vmem:[%s3983_s5 + $0x64] sm:$0xf] %v343_v5  ;;  %v347_v7 = vld [vmem:[%s3987_s4 + $0x8c] sm:$0xf]  ;;  %v349_v8 = vld [vmem:[%s3987_s4 + $0xa0] sm:$0xf] }
  0x83   : >> { %346 = vst [vmem:[%s3983_s5 + $0x78] sm:$0xf] %v345_v6  ;;  %348 = vst [vmem:[%s3983_s5 + $0x8c] sm:$0xf] %v347_v7  ;;  %v351_v9 = vld [vmem:[%s3987_s4 + $0xb4] sm:$0xf] }
  0x84   : >> { %350 = vst [vmem:[%s3983_s5 + $0xa0] sm:$0xf] %v349_v8  ;;  %v353_v10 = vld [vmem:[%s3987_s4 + $0xc8] sm:$0xf]  ;;  %v355_v11 = vld [vmem:[%s3987_s4 + $0xdc] sm:$0xf] }
  0x85   : >> { %352 = vst [vmem:[%s3983_s5 + $0xb4] sm:$0xf] %v351_v9  ;;  %354 = vst [vmem:[%s3983_s5 + $0xc8] sm:$0xf] %v353_v10  ;;  %v357_v12 = vld [vmem:[%s3987_s4 + $0xf0] sm:$0xf] }
  0x86   : >> { %356 = vst [vmem:[%s3983_s5 + $0xdc] sm:$0xf] %v355_v11  ;;  %v359_v13 = vld [vmem:[%s3987_s4 + $0x1f4] sm:$0xf]  ;;  %v361_v14 = vld [vmem:[%s3987_s4 + $0x208] sm:$0xf] }
  0x87   : >> { %358 = vst [vmem:[%s3983_s5 + $0xf0] sm:$0xf] %v357_v12  ;;  %360 = vst [vmem:[%s3983_s5 + $0x104] sm:$0xf] %v359_v13  ;;  %v363_v15 = vld [vmem:[%s3987_s4 + $0x21c] sm:$0xf] }
  0x88   : >> { %362 = vst [vmem:[%s3983_s5 + $0x118] sm:$0xf] %v361_v14  ;;  %v365_v16 = vld [vmem:[%s3987_s4 + $0x230] sm:$0xf]  ;;  %v367_v17 = vld [vmem:[%s3987_s4 + $0x244] sm:$0xf] }
  0x89   : >> { %364 = vst [vmem:[%s3983_s5 + $0x12c] sm:$0xf] %v363_v15  ;;  %366 = vst [vmem:[%s3983_s5 + $0x140] sm:$0xf] %v365_v16  ;;  %v369_v18 = vld [vmem:[%s3987_s4 + $0x258] sm:$0xf] }
  0x8a   : >> { %368 = vst [vmem:[%s3983_s5 + $0x154] sm:$0xf] %v367_v17  ;;  %v371_v19 = vld [vmem:[%s3987_s4 + $0x26c] sm:$0xf]  ;;  %v373_v20 = vld [vmem:[%s3987_s4 + $0x280] sm:$0xf] }
  0x8b   : >> { %370 = vst [vmem:[%s3983_s5 + $0x168] sm:$0xf] %v369_v18  ;;  %372 = vst [vmem:[%s3983_s5 + $0x17c] sm:$0xf] %v371_v19  ;;  %v375_v21 = vld [vmem:[%s3987_s4 + $0x294] sm:$0xf] }
  0x8c   : >> { %374 = vst [vmem:[%s3983_s5 + $0x190] sm:$0xf] %v373_v20  ;;  %v377_v22 = vld [vmem:[%s3987_s4 + $0x2a8] sm:$0xf]  ;;  %v379_v23 = vld [vmem:[%s3987_s4 + $0x2bc] sm:$0xf] }
  0x8d   : >> { %376 = vst [vmem:[%s3983_s5 + $0x1a4] sm:$0xf] %v375_v21  ;;  %378 = vst [vmem:[%s3983_s5 + $0x1b8] sm:$0xf] %v377_v22  ;;  %v381_v24 = vld [vmem:[%s3987_s4 + $0x2d0] sm:$0xf] }
  0x8e   : >> { %380 = vst [vmem:[%s3983_s5 + $0x1cc] sm:$0xf] %v379_v23  ;;  %v383_v25 = vld [vmem:[%s3987_s4 + $0x2e4] sm:$0xf]  ;;  %v385_v26 = vld [vmem:[%s3987_s4 + $0x3e8] sm:$0xf] }
  0x8f   : >> { %382 = vst [vmem:[%s3983_s5 + $0x1e0] sm:$0xf] %v381_v24  ;;  %384 = vst [vmem:[%s3983_s5 + $0x1f4] sm:$0xf] %v383_v25  ;;  %v387_v27 = vld [vmem:[%s3987_s4 + $0x3fc] sm:$0xf] }
  0x90   : >> { %386 = vst [vmem:[%s3983_s5 + $0x208] sm:$0xf] %v385_v26  ;;  %v389_v28 = vld [vmem:[%s3987_s4 + $0x410] sm:$0xf]  ;;  %v391_v29 = vld [vmem:[%s3987_s4 + $0x424] sm:$0xf] }
  0x91   : >> { %388 = vst [vmem:[%s3983_s5 + $0x21c] sm:$0xf] %v387_v27  ;;  %390 = vst [vmem:[%s3983_s5 + $0x230] sm:$0xf] %v389_v28  ;;  %v393_v30 = vld [vmem:[%s3987_s4 + $0x438] sm:$0xf] }
  0x92   : >> { %392 = vst [vmem:[%s3983_s5 + $0x244] sm:$0xf] %v391_v29  ;;  %v395_v31 = vld [vmem:[%s3987_s4 + $0x44c] sm:$0xf]  ;;  %v397_v32 = vld [vmem:[%s3987_s4 + $0x460] sm:$0xf] }
  0x93   : >> { %394 = vst [vmem:[%s3983_s5 + $0x258] sm:$0xf] %v393_v30  ;;  %396 = vst [vmem:[%s3983_s5 + $0x26c] sm:$0xf] %v395_v31  ;;  %v399_v33 = vld [vmem:[%s3987_s4 + $0x474] sm:$0xf] }
  0x94   : >> { %398 = vst [vmem:[%s3983_s5 + $0x280] sm:$0xf] %v397_v32  ;;  %v401_v34 = vld [vmem:[%s3987_s4 + $0x488] sm:$0xf]  ;;  %v403_v35 = vld [vmem:[%s3987_s4 + $0x49c] sm:$0xf] }
  0x95   : >> { %400 = vst [vmem:[%s3983_s5 + $0x294] sm:$0xf] %v399_v33  ;;  %402 = vst [vmem:[%s3983_s5 + $0x2a8] sm:$0xf] %v401_v34  ;;  %v405_v36 = vld [vmem:[%s3987_s4 + $0x4b0] sm:$0xf] }
  0x96   : >> { %404 = vst [vmem:[%s3983_s5 + $0x2bc] sm:$0xf] %v403_v35  ;;  %v407_v37 = vld [vmem:[%s3987_s4 + $0x4c4] sm:$0xf]  ;;  %v409_v38 = vld [vmem:[%s3987_s4 + $0x4d8] sm:$0xf] }
  0x97   : >> { %406 = vst [vmem:[%s3983_s5 + $0x2d0] sm:$0xf] %v405_v36  ;;  %408 = vst [vmem:[%s3983_s5 + $0x2e4] sm:$0xf] %v407_v37  ;;  %v411_v39 = vld [vmem:[%s3987_s4 + $0x5dc] sm:$0xf] }
  0x98   : >> { %410 = vst [vmem:[%s3983_s5 + $0x2f8] sm:$0xf] %v409_v38  ;;  %v413_v40 = vld [vmem:[%s3987_s4 + $0x5f0] sm:$0xf]  ;;  %v415_v41 = vld [vmem:[%s3987_s4 + $0x604] sm:$0xf] }
  0x99   : >> { %412 = vst [vmem:[%s3983_s5 + $0x30c] sm:$0xf] %v411_v39  ;;  %414 = vst [vmem:[%s3983_s5 + $0x320] sm:$0xf] %v413_v40  ;;  %v417_v42 = vld [vmem:[%s3987_s4 + $0x618] sm:$0xf] }
  0x9a   : >> { %416 = vst [vmem:[%s3983_s5 + $0x334] sm:$0xf] %v415_v41  ;;  %v419_v43 = vld [vmem:[%s3987_s4 + $0x62c] sm:$0xf]  ;;  %v421_v44 = vld [vmem:[%s3987_s4 + $0x640] sm:$0xf] }
  0x9b   : >> { %418 = vst [vmem:[%s3983_s5 + $0x348] sm:$0xf] %v417_v42  ;;  %420 = vst [vmem:[%s3983_s5 + $0x35c] sm:$0xf] %v419_v43  ;;  %v423_v45 = vld [vmem:[%s3987_s4 + $0x654] sm:$0xf] }
  0x9c   : >> { %422 = vst [vmem:[%s3983_s5 + $0x370] sm:$0xf] %v421_v44  ;;  %v425_v46 = vld [vmem:[%s3987_s4 + $0x668] sm:$0xf]  ;;  %v427_v47 = vld [vmem:[%s3987_s4 + $0x67c] sm:$0xf] }
  0x9d   : >> { %424 = vst [vmem:[%s3983_s5 + $0x384] sm:$0xf] %v423_v45  ;;  %426 = vst [vmem:[%s3983_s5 + $0x398] sm:$0xf] %v425_v46  ;;  %v429_v48 = vld [vmem:[%s3987_s4 + $0x690] sm:$0xf] }
  0x9e   : >> { %428 = vst [vmem:[%s3983_s5 + $0x3ac] sm:$0xf] %v427_v47  ;;  %v431_v49 = vld [vmem:[%s3987_s4 + $0x6a4] sm:$0xf]  ;;  %v433_v50 = vld [vmem:[%s3987_s4 + $0x6b8] sm:$0xf] }
  0x9f   : >> { %430 = vst [vmem:[%s3983_s5 + $0x3c0] sm:$0xf] %v429_v48  ;;  %432 = vst [vmem:[%s3983_s5 + $0x3d4] sm:$0xf] %v431_v49  ;;  %v435_v51 = vld [vmem:[%s3987_s4 + $0x6cc] sm:$0xf] }
  0xa0   : >> { %434 = vst [vmem:[%s3983_s5 + $0x3e8] sm:$0xf] %v433_v50  ;;  %436 = vst [vmem:[%s3983_s5 + $0x3fc] sm:$0xf] %v435_v51  ;;  %s5341_s18 = smov (%p438_p2, %s437_s18), 0  ;;  %s327_s17 = sadd.s32 1, %s3995_s17  }
  0xa1   : >> { %s2745_s21 = smul.u32 260, %s5341_s18  ;;  %p326_p3 = scmp.ge.s32.totalorder %s327_s17, %s4314_s10 }
  0xa2   : >> { %s5320_s11 = smov %s5341_s18 }
  0xa3   : >> { %s2746_s22 = scalar_lea.vmem %s4108_s28, %s2745_s21  ;;  %s2749_s23 = scalar_lea.vmem %s4113_s30, %s2745_s21 [#allocation2] }
  0xa4   : >> { %s2747_s4 = scalar_lea.vmem %s2746_s22, 16   ;;  %s2750_s5 = scalar_lea.vmem %s2749_s23, 16 [#allocation2]  }
  0xa5   : > { %329 = sbr.rel (!%p326_p3) target bundleno = 126 (0x7e), region = 195 }
  0xac PF: > { %3605 = sdivrem.u32 %s5335_s24, 13 }
  0xad   : > { %s2751_s25 = smul.u32 260, %s4314_s10 }
  0xaf   : > { %s4462_s26 = scalar_lea.vmem %s4108_s28, %s2751_s25  ;;  %s4465_s27 = scalar_lea.vmem %s4113_s30, %s2751_s25 [#allocation2] }
  0xb0   : > { %s2753_s29 = scalar_lea.vmem %s4462_s26, 16   ;;  %s2756_s7 = scalar_lea.vmem %s4465_s27, 16 [#allocation2]  }
  0xb5   : > { %s4469_s8 = spop.drf %3605 }
  0xb6   : > { %p2917_p4 = scmp.le.s32.totalorder %s4469_s8, 0 }
  0xb7   : > { %s4476_s4 = smov (!%p2917_p4), 0   ;;  %s4009_s24 = smov (!%p2917_p4), 0  }
  0xb8   : > { %2846 = sbr.rel (%p2917_p4) target bundleno = 204 (0xcc), region = 200 }
  0xbf LB: >> { %v460_v52 = vld [vmem:[%s4003_s29] sm:$0xf]  ;;  %v462_v53 = vld [vmem:[%s4003_s29 + $0x1f4] sm:$0xf]  ;;  %v464_v54 = vld [vmem:[%s4003_s29 + $0x3e8] sm:$0xf]  ;;  %s4011_s24 = sphi %s4009_s24, %s454_s24   ;;  %s4007_s4 = sphi %s4476_s4, %s5321_s4   ;;  %s4003_s29 = sphi %s2753_s29, %s2759_s29   ;;  %s3999_s7 = sphi %s2756_s7, %s2762_s7  }
  0xc0   : >> { %461 = vst [vmem:[%s3999_s7] sm:$0xf] %v460_v52  ;;  %463 = vst [vmem:[%s3999_s7 + $0x104] sm:$0xf] %v462_v53  ;;  %v466_v55 = vld [vmem:[%s4003_s29 + $0x5dc] sm:$0xf]  ;;  %s468_s28 = sadd.s32 1, %s4007_s4 }
  0xc1   : >> { %465 = vst [vmem:[%s3999_s7 + $0x208] sm:$0xf] %v464_v54  ;;  %467 = vst [vmem:[%s3999_s7 + $0x30c] sm:$0xf] %v466_v55  ;;  %p469_p6 = scmp.ge.s32.totalorder %s468_s28, %s4469_s8  ;;  %s454_s24 = sadd.s32 1, %s4011_s24  }
  0xc2   : >> { %p453_p7 = scmp.ge.s32.totalorder %s454_s24, %s4469_s8 }
  0xc3   : >> { %s5343_s28 = smov (%p469_p6, %s468_s28), 0 }
  0xc4   : >> { %s2757_s30 = smul.u32 20, %s5343_s28  ;;  %s5321_s4 = smov %s5343_s28 }
  0xc5   : > { %456 = sbr.rel (!%p453_p7) target bundleno = 191 (0xbf), region = 206 }
  0xc6   : >> { %s2758_s5 = scalar_lea.vmem %s4462_s26, %s2757_s30  ;;  %s2761_s6 = scalar_lea.vmem %s4465_s27, %s2757_s30 [#allocation2] }
  0xc7   : >> { %s2759_s29 = scalar_lea.vmem %s2758_s5, 16   ;;  %s2762_s7 = scalar_lea.vmem %s2761_s6, 16 [#allocation2]  }
  0xcc PF: > { %p2918_p8 = scmp.ge.s32.totalorder %s3947_s14, 1  ;;  %p477_p9 = scmp.lt.s32.totalorder %s3947_s14, 3 }
  0xce   : > { %p478_p10 = pnand %p2918_p8, %p477_p9 }
  0xd0   : > { %481 = sbr.rel (%p478_p10) target bundleno = 835 (0x343), region = 68 }
  0xd7   : > { %v3607_v56 = vld [vmem:[%s5308_s1] sm:$0xff]   ;;  %v4045_v57 = vmov 0   ;;  %v3609_v59 = vld [vmem:[%s5308_s1 + $0x8] sm:$0xff]   ;;  %v3611_v61 = vld [vmem:[%s5308_s1 + $0x10] sm:$0xff]   ;;  %s484_s22 = sand.u32 1, %s3939_s12   ;;  %vm1612_vm0 = vcmask 523264  }
  0xd8   : > { %1691 = vmatprep.subr.bf16.mxu0 %v4045_v57  ;;  %3276 = vmatprep.subr.bf16.mxu1 %v4045_v57  ;;  %v4501_v58 = vld [vmem:[%s5308_s1 + $0x80] sm:$0xff]   ;;  %v4511_v60 = vld [vmem:[%s5308_s1 + $0x88] sm:$0xff]   ;;  %v4522_v62 = vld [vmem:[%s5308_s1 + $0x90] sm:$0xff]   ;;  %s3376_s26 = smul.u32 1040, %s484_s22 }
  0xd9   : > { %1692 = vmatpush1.bf16.msra.mxu0 %v3607_v56  ;;  %3292 = vmatpush1.bf16.msra.mxu1 %v4501_v58  ;;  %v3613_v63 = vld [vmem:[%s5308_s1 + $0x18] sm:$0xff]   ;;  %v3615_v1 = vld [vmem:[%s5308_s1 + $0x20] sm:$0xff]   ;;  %v3617_v3 = vld [vmem:[%s5308_s1 + $0x28] sm:$0xff]   ;;  %s3377_s24 = smul.u32 52, %s484_s22 }
  0xda   : > { %1693 = vmatprep.subr.bf16.mxu0 %v4045_v57  ;;  %3277 = vmatprep.subr.bf16.mxu1 %v4045_v57  ;;  %v4533_v0 = vld [vmem:[%s5308_s1 + $0x98] sm:$0xff]   ;;  %v4544_v2 = vld [vmem:[%s5308_s1 + $0xa0] sm:$0xff]   ;;  %v4555_v4 = vld [vmem:[%s5308_s1 + $0xa8] sm:$0xff]   ;;  %s4594_s28 = scalar_lea.vmem [#allocation2], %s3376_s26  ;;  %s2559_s22 = smul.u32 (%p4097_p5), 13, %s4082_s15 }
  0xdb   : > { %v3619_v5 = vld [vmem:[%s5308_s1 + $0x30] sm:$0xff]   ;;  %v3621_v7 = vld [vmem:[%s5308_s1 + $0x38] sm:$0xff]   ;;  %v3623_v9 = vld [vmem:[%s5308_s1 + $0x40] sm:$0xff]   ;;  %s5190_s12 = scalar_lea.vmem [#allocation3], %s3377_s24   ;;  %s3150_s30 = smul.u32 (%p4097_p5), 52, %s4082_s15 }
  0xdc   : > { %v4566_v6 = vld [vmem:[%s5308_s1 + $0xb0] sm:$0xff]   ;;  %v4580_v8 = vld [vmem:[%s5308_s1 + $0xb8] sm:$0xff]   ;;  %v4591_v10 = vld [vmem:[%s5308_s1 + $0xc0] sm:$0xff]   ;;  %s2560_s5 = ssub.s32 (%p4097_p5), 25, %s2559_s22 }
  0xdd   : > { %1694 = vmatpush1.bf16.msra.mxu0 %v3609_v59  ;;  %3293 = vmatpush1.bf16.msra.mxu1 %v4511_v60  ;;  %v3641_v11 = vld [vmem:[%s4594_s28 + $0x4] ss:$20 sps:$4 sm:$0xff]   ;;  %v3639_v28 = vld [vmem:[%s4594_s28] ss:$20 sps:$4 sm:$0xff]   ;;  %v3649_v33 = vld [vmem:[%s4594_s28 + $0x28] ss:$20 sps:$4 sm:$0xff]   ;;  %s5237_s10 = scalar_lea.vmem (%p4097_p5), %s5310_s3, %s3150_s30  }
  0xde   : > { %1695 = vmatprep.subr.bf16.mxu0 %v4045_v57  ;;  %3278 = vmatprep.subr.bf16.mxu1 %v4045_v57  ;;  %v3625_v12 = vld [vmem:[%s5308_s1 + $0x48] sm:$0xff]   ;;  %v3627_v15 = vld [vmem:[%s5308_s1 + $0x50] sm:$0xff]   ;;  %v3629_v17 = vld [vmem:[%s5308_s1 + $0x58] sm:$0xff]   ;;  %p2561_p11 = scmp.lt.s32.totalorder (%p4097_p5), %s2560_s5, 13 }
  0xdf   : > { %v3644_v13 = vld [vmem:[%s4594_s28 + $0x124] ss:$20 sps:$4 sm:$0xff]   ;;  %1723 = vmatprep.mubr.bf16.mxu0 %v3641_v11  ;;  %v3642_v29 = vld [vmem:[%s4594_s28 + $0x120] ss:$20 sps:$4 sm:$0xff]   ;;  %v3650_v34 = vld [vmem:[%s4594_s28 + $0x148] ss:$20 sps:$4 sm:$0xff]  }
  0xe0   : > { %v4606_v14 = vld [vmem:[%s5308_s1 + $0xc8] sm:$0xff]   ;;  %2020 = vmatprep.mubr.bf16.mxu1 %v3644_v13  ;;  %v4617_v16 = vld [vmem:[%s5308_s1 + $0xd0] sm:$0xff]   ;;  %v4628_v18 = vld [vmem:[%s5308_s1 + $0xd8] sm:$0xff]  }
  0xe1   : > { %1696 = vmatpush1.bf16.msra.mxu0 %v3611_v61  ;;  %3294 = vmatpush1.bf16.msra.mxu1 %v4522_v62  ;;  %v3631_v19 = vld [vmem:[%s5308_s1 + $0x60] sm:$0xff]   ;;  %v3633_v21 = vld [vmem:[%s5308_s1 + $0x68] sm:$0xff]   ;;  %v3635_v23 = vld [vmem:[%s5308_s1 + $0x70] sm:$0xff]  }
  0xe2   : > { %1697 = vmatprep.subr.bf16.mxu0 %v4045_v57  ;;  %3279 = vmatprep.subr.bf16.mxu1 %v4045_v57  ;;  %v4639_v20 = vld [vmem:[%s5308_s1 + $0xe0] sm:$0xff]   ;;  %v4650_v22 = vld [vmem:[%s5308_s1 + $0xe8] sm:$0xff]   ;;  %v4661_v24 = vld [vmem:[%s5308_s1 + $0xf0] sm:$0xff]  }
  0xe3   : > { %v3637_v25 = vld [vmem:[%s5308_s1 + $0x78] sm:$0xff]   ;;  %v3651_v27 = vld [vmem:[%s5308_s1 + $0x100] sm:$0xff]   ;;  %v3682_v32 = vld [vmem:[%s5308_s1 + $0x108] sm:$0xff]  }
  0xe4   : > { %v4672_v26 = vld [vmem:[%s5308_s1 + $0xf8] sm:$0xff]   ;;  %v3711_v35 = vld [vmem:[%s5308_s1 + $0x110] sm:$0xff]  }
  0xe5   : > { %1698 = vmatpush1.bf16.msra.mxu0 %v3613_v63  ;;  %3295 = vmatpush1.bf16.msra.mxu1 %v4533_v0  ;;  %v3645_v30 = vld [vmem:[%s4594_s28 + $0x2c] ss:$20 sps:$4 sm:$0xff]   ;;  %v3652_v36 = vld [vmem:[%s4594_s28 + $0x54] ss:$20 sps:$4 sm:$0xff]   ;;  %v3656_v38 = vld [vmem:[%s4594_s28 + $0x50] ss:$20 sps:$4 sm:$0xff]  }
  0xe6   : > { %1699 = vmatprep.subr.bf16.mxu0 %v4045_v57  ;;  %3280 = vmatprep.subr.bf16.mxu1 %v4045_v57  ;;  %v3647_v31 = vld [vmem:[%s4594_s28 + $0x14c] ss:$20 sps:$4 sm:$0xff]   ;;  %v3654_v37 = vld [vmem:[%s4594_s28 + $0x174] ss:$20 sps:$4 sm:$0xff]   ;;  %v3657_v39 = vld [vmem:[%s4594_s28 + $0x170] ss:$20 sps:$4 sm:$0xff]  }
  0xe7   : > { %v3658_v40 = vld [vmem:[%s4594_s28 + $0x7c] ss:$20 sps:$4 sm:$0xff]   ;;  %v3662_v43 = vld [vmem:[%s4594_s28 + $0x78] ss:$20 sps:$4 sm:$0xff]   ;;  %v3668_v47 = vld [vmem:[%s4594_s28 + $0xa0] ss:$20 sps:$4 sm:$0xff]  }
  0xe8   : > { %v3738_v41 = vld [vmem:[%s5308_s1 + $0x118] sm:$0xff]   ;;  %v3669_v48 = vld [vmem:[%s4594_s28 + $0x1c0] ss:$20 sps:$4 sm:$0xff]   ;;  %v3680_v55 = vld [vmem:[%s4594_s28 + $0xf0] ss:$20 sps:$4 sm:$0xff]  }
  0xe9   : > { %1700 = vmatpush1.bf16.msra.mxu0 %v3615_v1  ;;  %3296 = vmatpush1.bf16.msra.mxu1 %v4544_v2  ;;  %v3660_v42 = vld [vmem:[%s4594_s28 + $0x19c] ss:$20 sps:$4 sm:$0xff]   ;;  %v3663_v44 = vld [vmem:[%s4594_s28 + $0x198] ss:$20 sps:$4 sm:$0xff]   ;;  %v3676_v53 = vld [vmem:[%s4594_s28 + $0xf4] ss:$20 sps:$4 sm:$0xff]  }
  0xea   : > { %1701 = vmatprep.subr.bf16.mxu0 %v4045_v57  ;;  %3281 = vmatprep.subr.bf16.mxu1 %v4045_v57  ;;  %v3664_v45 = vld [vmem:[%s4594_s28 + $0xa4] ss:$20 sps:$4 sm:$0xff]   ;;  %v3670_v49 = vld [vmem:[%s4594_s28 + $0xcc] ss:$20 sps:$4 sm:$0xff]   ;;  %v3674_v51 = vld [vmem:[%s4594_s28 + $0xc8] ss:$20 sps:$4 sm:$0xff]  }
  0xeb   : > { %v3666_v46 = vld [vmem:[%s4594_s28 + $0x1c4] ss:$20 sps:$4 sm:$0xff]   ;;  %v3672_v50 = vld [vmem:[%s4594_s28 + $0x1ec] ss:$20 sps:$4 sm:$0xff]   ;;  %v3675_v52 = vld [vmem:[%s4594_s28 + $0x1e8] ss:$20 sps:$4 sm:$0xff]  }
  0xec   : > { %v3678_v54 = vld [vmem:[%s4594_s28 + $0x214] ss:$20 sps:$4 sm:$0xff]   ;;  %v3681_v56 = vld [vmem:[%s4594_s28 + $0x210] ss:$20 sps:$4 sm:$0xff]   ;;  %v3688_v61 = vld [vmem:[%s4594_s28 + $0x238] ss:$20 sps:$4 sm:$0xff]  }
  0xed   : > { %1702 = vmatpush1.bf16.msra.mxu0 %v3617_v3  ;;  %3297 = vmatpush1.bf16.msra.mxu1 %v4555_v4  ;;  %v3685_v59 = vld [vmem:[%s4594_s28 + $0x23c] ss:$20 sps:$4 sm:$0xff]   ;;  %v3691_v63 = vld [vmem:[%s4594_s28 + $0x264] ss:$20 sps:$4 sm:$0xff]   ;;  %v3694_v1 = vld [vmem:[%s4594_s28 + $0x260] ss:$20 sps:$4 sm:$0xff]  }
  0xee   : > { %1703 = vmatprep.subr.bf16.mxu0 %v4045_v57  ;;  %3282 = vmatprep.subr.bf16.mxu1 %v4045_v57  ;;  %v3697_v3 = vld [vmem:[%s4594_s28 + $0x28c] ss:$20 sps:$4 sm:$0xff]   ;;  %v3714_v13 = vld [vmem:[%s4594_s28 + $0x1e4] ss:$20 sps:$4 sm:$0xff]  }
  0xef   : > { %v3712_v11 = vld [vmem:[%s4594_s28 + $0x1b8] ss:$20 sps:$4 sm:$0xff]  }
  0xf1   : > { %1704 = vmatpush1.bf16.msra.mxu0 %v3619_v5  ;;  %3298 = vmatpush1.bf16.msra.mxu1 %v4566_v6  ;;  %v3700_v5 = vld [vmem:[%s4594_s28 + $0x288] ss:$20 sps:$4 sm:$0xff]  }
  0xf2   : > { %1705 = vmatprep.subr.bf16.mxu0 %v4045_v57  ;;  %3283 = vmatprep.subr.bf16.mxu1 %v4045_v57 }
  0xf5   : > { %1706 = vmatpush1.bf16.msra.mxu0 %v3621_v7  ;;  %3299 = vmatpush1.bf16.msra.mxu1 %v4580_v8  ;;  %v3705_v7 = vld [vmem:[%s4594_s28 + $0x190] ss:$20 sps:$4 sm:$0xff]  }
  0xf6   : > { %1707 = vmatprep.subr.bf16.mxu0 %v4045_v57  ;;  %3284 = vmatprep.subr.bf16.mxu1 %v4045_v57 }
  0xf9   : > { %1708 = vmatpush1.bf16.msra.mxu0 %v3623_v9  ;;  %3300 = vmatpush1.bf16.msra.mxu1 %v4591_v10  ;;  %v3707_v9 = vld [vmem:[%s4594_s28 + $0x1bc] ss:$20 sps:$4 sm:$0xff]  }
  0xfa   : > { %1709 = vmatprep.subr.bf16.mxu0 %v4045_v57  ;;  %3285 = vmatprep.subr.bf16.mxu1 %v4045_v57 }
  0xfd   : > { %1710 = vmatpush1.bf16.msra.mxu0 %v3625_v12  ;;  %3301 = vmatpush1.bf16.msra.mxu1 %v4606_v14  ;;  %v3713_v12 = vld [vmem:[%s4594_s28 + $0x2d8] ss:$20 sps:$4 sm:$0xff]  }
  0xfe   : > { %1711 = vmatprep.subr.bf16.mxu0 %v4045_v57  ;;  %3286 = vmatprep.subr.bf16.mxu1 %v4045_v57 }
 0x101   : > { %1712 = vmatpush1.bf16.msra.mxu0 %v3627_v15  ;;  %3302 = vmatpush1.bf16.msra.mxu1 %v4617_v16  ;;  %v3718_v15 = vld [vmem:[%s4594_s28 + $0x1e0] ss:$20 sps:$4 sm:$0xff]  }
 0x102   : > { %1713 = vmatprep.subr.bf16.mxu0 %v4045_v57  ;;  %3287 = vmatprep.subr.bf16.mxu1 %v4045_v57 }
 0x105   : > { %1714 = vmatpush1.bf16.msra.mxu0 %v3629_v17  ;;  %3303 = vmatpush1.bf16.msra.mxu1 %v4628_v18  ;;  %v3720_v17 = vld [vmem:[%s4594_s28 + $0x20c] ss:$20 sps:$4 sm:$0xff]  }
 0x106   : > { %1715 = vmatprep.subr.bf16.mxu0 %v4045_v57  ;;  %3288 = vmatprep.subr.bf16.mxu1 %v4045_v57 }
 0x109   : > { %1716 = vmatpush1.bf16.msra.mxu0 %v3631_v19  ;;  %3304 = vmatpush1.bf16.msra.mxu1 %v4639_v20  ;;  %v3724_v19 = vld [vmem:[%s4594_s28 + $0x208] ss:$20 sps:$4 sm:$0xff]  }
 0x10a   : > { %1717 = vmatprep.subr.bf16.mxu0 %v4045_v57  ;;  %3289 = vmatprep.subr.bf16.mxu1 %v4045_v57 }
 0x10d   : > { %1718 = vmatpush1.bf16.msra.mxu0 %v3633_v21  ;;  %3305 = vmatpush1.bf16.msra.mxu1 %v4650_v22  ;;  %v3726_v21 = vld [vmem:[%s4594_s28 + $0x234] ss:$20 sps:$4 sm:$0xff]  }
 0x10e   : > { %1719 = vmatprep.subr.bf16.mxu0 %v4045_v57  ;;  %3290 = vmatprep.subr.bf16.mxu1 %v4045_v57 }
 0x111   : > { %1720 = vmatpush1.bf16.msra.mxu0 %v3635_v23  ;;  %3306 = vmatpush1.bf16.msra.mxu1 %v4661_v24  ;;  %v3730_v23 = vld [vmem:[%s4594_s28 + $0x230] ss:$20 sps:$4 sm:$0xff]  }
 0x112   : > { %1721 = vmatprep.subr.bf16.mxu0 %v4045_v57  ;;  %3291 = vmatprep.subr.bf16.mxu1 %v4045_v57 }
 0x115   : > { %1722 = vmatpush1.bf16.msra.mxu0 %v3637_v25  ;;  %3307 = vmatpush1.bf16.msra.mxu1 %v4672_v26  ;;  %v3732_v25 = vld [vmem:[%s4594_s28 + $0x25c] ss:$20 sps:$4 sm:$0xff]  }
 0x116   : > { %1932 = vmatprep.subr.bf16.mxu0 %v4045_v57  ;;  %3216 = vmatprep.subr.bf16.mxu1 %v3651_v27 }
 0x118   : > { %1724 = vmatmul.mubr.bf16.vlgmr.msra.gmra.mrb[0].mxu0 %v3639_v28  ;;  %2021 = vmatmul.mubr.bf16.vlgmr.msra.gmra.mrb[0].mxu1 %v3642_v29  ;;  %v3737_v28 = vld [vmem:[%s4594_s28 + $0x378] ss:$20 sps:$4 sm:$0xff]  }
 0x119   : > { %1933 = vmatpush1.bf16.msra.mxu0 %v4501_v58  ;;  %1731 = vmatprep.mubr.bf16.mxu0 %v3645_v30  ;;  %v3683_v58 = vld [vmem:[%s4594_s28 + $0x11c] ss:$20 sps:$4 sm:$0xff]   ;;  %v3739_v29 = vld [vmem:[%s4594_s28 + $0x284] ss:$20 sps:$4 sm:$0xff]  }
 0x11a   : > { %2028 = vmatprep.mubr.bf16.mxu1 %v3647_v31  ;;  %3217 = vmatpush3.bf16.msra.mxu1 %v3651_v27  ;;  %v3736_v27 = vld [vmem:[%s4594_s28 + $0x258] ss:$20 sps:$4 sm:$0xff]   ;;  %v3743_v31 = vld [vmem:[%s4594_s28 + $0x280] ss:$20 sps:$4 sm:$0xff]  }
 0x11b   : > { %1934 = vmatprep.subr.bf16.mxu0 %v4045_v57  ;;  %3218 = vmatprep.subr.bf16.mxu1 %v3682_v32  ;;  %v3741_v30 = vld [vmem:[%s4594_s28 + $0x3a4] ss:$20 sps:$4 sm:$0xff]  }
 0x11d   : > { %1935 = vmatpush1.bf16.msra.mxu0 %v4511_v60  ;;  %v3687_v60 = vld [vmem:[%s4594_s28 + $0x118] ss:$20 sps:$4 sm:$0xff]  }
 0x11e   : > { %1936 = vmatprep.subr.bf16.mxu0 %v4045_v57  ;;  %3219 = vmatpush3.bf16.msra.mxu1 %v3682_v32  ;;  %v3744_v32 = vld [vmem:[%s4594_s28 + $0x3a0] ss:$20 sps:$4 sm:$0xff]  }
 0x11f   : > { %3220 = vmatprep.subr.bf16.mxu1 %v3711_v35 }
 0x120   : > { %1732 = vmatmul.mubr.bf16.gmra.mrb[4].mxu0 %v3649_v33  ;;  %2029 = vmatmul.mubr.bf16.gmra.mrb[4].mxu1 %v3650_v34  ;;  %v3745_v33 = vld [vmem:[%s4594_s28 + $0x2ac] ss:$20 sps:$4 sm:$0xff]  }
 0x121   : > { %1739 = vmatprep.mubr.bf16.mxu0 %v3652_v36  ;;  %2036 = vmatprep.mubr.bf16.mxu1 %v3654_v37  ;;  %v3747_v34 = vld [vmem:[%s4594_s28 + $0x3cc] ss:$20 sps:$4 sm:$0xff]   ;;  %v3750_v36 = vld [vmem:[%s4594_s28 + $0x3c8] ss:$20 sps:$4 sm:$0xff]  }
 0x122   : > { %1937 = vmatpush1.bf16.msra.mxu0 %v4522_v62  ;;  %3221 = vmatpush3.bf16.msra.mxu1 %v3711_v35  ;;  %v3689_v62 = vld [vmem:[%s4594_s28 + $0x144] ss:$20 sps:$4 sm:$0xff]   ;;  %v3749_v35 = vld [vmem:[%s4594_s28 + $0x2a8] ss:$20 sps:$4 sm:$0xff]  }
 0x123   : > { %1938 = vmatprep.subr.bf16.mxu0 %v4045_v57  ;;  %3222 = vmatprep.subr.bf16.mxu1 %v3738_v41  ;;  %v3751_v37 = vld [vmem:[%s4594_s28 + $0x2d4] ss:$20 sps:$4 sm:$0xff]  }
 0x126   : > { %1939 = vmatpush1.bf16.msra.mxu0 %v4533_v0  ;;  %3223 = vmatpush3.bf16.msra.mxu1 %v3738_v41  ;;  %v3693_v0 = vld [vmem:[%s4594_s28 + $0x140] ss:$20 sps:$4 sm:$0xff]   ;;  %v3757_v41 = vld [vmem:[%s4594_s28 + $0x2fc] ss:$20 sps:$4 sm:$0xff]  }
 0x127   : > { %1940 = vmatprep.subr.bf16.mxu0 %v4045_v57 }
 0x128   : > { %1740 = vmatmul.mubr.bf16.gmra.mrb[8].mxu0 %v3656_v38  ;;  %2037 = vmatmul.mubr.bf16.gmra.mrb[8].mxu1 %v3657_v39  ;;  %v3753_v38 = vld [vmem:[%s4594_s28 + $0x3f4] ss:$20 sps:$4 sm:$0xff]   ;;  %v3755_v39 = vld [vmem:[%s4594_s28 + $0x2d0] ss:$20 sps:$4 sm:$0xff]  }
 0x129   : > { %1747 = vmatprep.mubr.bf16.mxu0 %v3658_v40  ;;  %2044 = vmatprep.mubr.bf16.mxu1 %v3660_v42  ;;  %v3756_v40 = vld [vmem:[%s4594_s28 + $0x3f0] ss:$20 sps:$4 sm:$0xff]  }
 0x12a   : > { %1941 = vmatpush1.bf16.msra.mxu0 %v4544_v2  ;;  %v3695_v2 = vld [vmem:[%s4594_s28 + $0x16c] ss:$20 sps:$4 sm:$0xff]   ;;  %v3759_v42 = vld [vmem:[%s4594_s28 + $0x10] ss:$20 sps:$4 sm:$0xff]  }
 0x12b   : > { %1942 = vmatprep.subr.bf16.mxu0 %v4045_v57 }
 0x12e   : > { %1943 = vmatpush1.bf16.msra.mxu0 %v4555_v4  ;;  %v3699_v4 = vld [vmem:[%s4594_s28 + $0x168] ss:$20 sps:$4 sm:$0xff]  }
 0x12f   : > { %1944 = vmatprep.subr.bf16.mxu0 %v4045_v57 }
 0x130   : > { %1748 = vmatmul.mubr.bf16.gmra.mrb[12].mxu0 %v3662_v43  ;;  %2045 = vmatmul.mubr.bf16.gmra.mrb[12].mxu1 %v3663_v44  ;;  %v3760_v43 = vld [vmem:[%s4594_s28 + $0x2f8] ss:$20 sps:$4 sm:$0xff]  }
 0x131   : > { %1755 = vmatprep.mubr.bf16.mxu0 %v3664_v45  ;;  %2052 = vmatprep.mubr.bf16.mxu1 %v3666_v46  ;;  %v3761_v44 = vld [vmem:[%s4594_s28 + $0x38] ss:$20 sps:$4 sm:$0xff]   ;;  %v3764_v46 = vld [vmem:[%s4594_s28 + $0x60] ss:$20 sps:$4 sm:$0xff]  }
 0x132   : > { %1945 = vmatpush1.bf16.msra.mxu0 %v4566_v6  ;;  %v3701_v6 = vld [vmem:[%s4594_s28 + $0x194] ss:$20 sps:$4 sm:$0xff]   ;;  %v3762_v45 = vld [vmem:[%s4594_s28 + $0x324] ss:$20 sps:$4 sm:$0xff]  }
 0x133   : > { %1946 = vmatprep.subr.bf16.mxu0 %v4045_v57 }
 0x136   : > { %1947 = vmatpush1.bf16.msra.mxu0 %v4580_v8  ;;  %v3706_v8 = vld [vmem:[%s4594_s28 + $0x2b0] ss:$20 sps:$4 sm:$0xff]  }
 0x137   : > { %1948 = vmatprep.subr.bf16.mxu0 %v4045_v57 }
 0x138   : > { %1756 = vmatmul.mubr.bf16.gmra.mrb[16].mxu0 %v3668_v47  ;;  %2053 = vmatmul.mubr.bf16.gmra.mrb[16].mxu1 %v3669_v48  ;;  %v3765_v47 = vld [vmem:[%s4594_s28 + $0x320] ss:$20 sps:$4 sm:$0xff]   ;;  %v3766_v48 = vld [vmem:[%s4594_s28 + $0x88] ss:$20 sps:$4 sm:$0xff]  }
 0x139   : > { %1763 = vmatprep.mubr.bf16.mxu0 %v3670_v49  ;;  %2060 = vmatprep.mubr.bf16.mxu1 %v3672_v50  ;;  %v3767_v49 = vld [vmem:[%s4594_s28 + $0x34c] ss:$20 sps:$4 sm:$0xff]   ;;  %v3769_v50 = vld [vmem:[%s4594_s28 + $0xb0] ss:$20 sps:$4 sm:$0xff]  }
 0x13a   : > { %1949 = vmatpush1.bf16.msra.mxu0 %v4591_v10  ;;  %v3709_v10 = vld [vmem:[%s4594_s28 + $0x2dc] ss:$20 sps:$4 sm:$0xff]  }
 0x13b   : > { %1950 = vmatprep.subr.bf16.mxu0 %v4045_v57 }
 0x13e   : > { %1951 = vmatpush1.bf16.msra.mxu0 %v4606_v14  ;;  %v3716_v14 = vld [vmem:[%s4594_s28 + $0x304] ss:$20 sps:$4 sm:$0xff]  }
 0x13f   : > { %1952 = vmatprep.subr.bf16.mxu0 %v4045_v57 }
 0x140   : > { %1764 = vmatmul.mubr.bf16.gmra.mrb[20].mxu0 %v3674_v51  ;;  %2061 = vmatmul.mubr.bf16.gmra.mrb[20].mxu1 %v3675_v52  ;;  %v3770_v51 = vld [vmem:[%s4594_s28 + $0x348] ss:$20 sps:$4 sm:$0xff]   ;;  %v3771_v52 = vld [vmem:[%s4594_s28 + $0xd8] ss:$20 sps:$4 sm:$0xff]  }
 0x141   : > { %1771 = vmatprep.mubr.bf16.mxu0 %v3676_v53  ;;  %2068 = vmatprep.mubr.bf16.mxu1 %v3678_v54  ;;  %v3772_v53 = vld [vmem:[%s4594_s28 + $0x374] ss:$20 sps:$4 sm:$0xff]  }
 0x142   : > { %1953 = vmatpush1.bf16.msra.mxu0 %v4617_v16  ;;  %v3719_v16 = vld [vmem:[%s4594_s28 + $0x300] ss:$20 sps:$4 sm:$0xff]  }
 0x143   : > { %1954 = vmatprep.subr.bf16.mxu0 %v4045_v57  ;;  %v3774_v54 = vld [vmem:[%s4594_s28 + $0x100] ss:$20 sps:$4 sm:$0xff]  }
 0x146   : > { %1955 = vmatpush1.bf16.msra.mxu0 %v4628_v18  ;;  %v3722_v18 = vld [vmem:[%s4594_s28 + $0x32c] ss:$20 sps:$4 sm:$0xff]  }
 0x147   : > { %1956 = vmatprep.subr.bf16.mxu0 %v4045_v57 }
 0x148   : > { %1772 = vmatmul.mubr.bf16.gmra.mrb[24].mxu0 %v3680_v55  ;;  %2069 = vmatmul.mubr.bf16.gmra.mrb[24].mxu1 %v3681_v56  ;;  %v3775_v55 = vld [vmem:[%s4594_s28 + $0x370] ss:$20 sps:$4 sm:$0xff]   ;;  %v3776_v56 = vld [vmem:[%s4594_s28 + $0x128] ss:$20 sps:$4 sm:$0xff]  }
 0x149   : > { %1779 = vmatprep.mubr.bf16.mxu0 %v3683_v58  ;;  %2076 = vmatprep.mubr.bf16.mxu1 %v3685_v59  ;;  %v3777_v58 = vld [vmem:[%s4594_s28 + $0x39c] ss:$20 sps:$4 sm:$0xff]  }
 0x14a   : > { %1957 = vmatpush1.bf16.msra.mxu0 %v4639_v20  ;;  %v3725_v20 = vld [vmem:[%s4594_s28 + $0x328] ss:$20 sps:$4 sm:$0xff]   ;;  %v3779_v59 = vld [vmem:[%s4594_s28 + $0x150] ss:$20 sps:$4 sm:$0xff]  }
 0x14b   : > { %1958 = vmatprep.subr.bf16.mxu0 %v4045_v57 }
 0x14e   : > { %1959 = vmatpush1.bf16.msra.mxu0 %v4650_v22  ;;  %v3728_v22 = vld [vmem:[%s4594_s28 + $0x354] ss:$20 sps:$4 sm:$0xff]  }
 0x14f   : > { %1960 = vmatprep.subr.bf16.mxu0 %v4045_v57 }
 0x150   : > { %1780 = vmatmul.mubr.bf16.gmra.mrb[28].mxu0 %v3687_v60  ;;  %2077 = vmatmul.mubr.bf16.gmra.mrb[28].mxu1 %v3688_v61  ;;  %v3780_v60 = vld [vmem:[%s4594_s28 + $0x398] ss:$20 sps:$4 sm:$0xff]  }
 0x151   : > { %1787 = vmatprep.mubr.bf16.mxu0 %v3689_v62  ;;  %2084 = vmatprep.mubr.bf16.mxu1 %v3691_v63  ;;  %v3781_v61 = vld [vmem:[%s4594_s28 + $0x178] ss:$20 sps:$4 sm:$0xff]   ;;  %v3784_v63 = vld [vmem:[%s4594_s28 + $0x1a0] ss:$20 sps:$4 sm:$0xff]  }
 0x152   : > { %1961 = vmatpush1.bf16.msra.mxu0 %v4661_v24  ;;  %v3731_v24 = vld [vmem:[%s4594_s28 + $0x350] ss:$20 sps:$4 sm:$0xff]  }
 0x153   : > { %1962 = vmatprep.subr.bf16.mxu0 %v4045_v57  ;;  %v3703_v57 = vld [vmem:[%s4594_s28 + $0x2b4] ss:$20 sps:$4 sm:$0xff]   ;;  %v3782_v62 = vld [vmem:[%s4594_s28 + $0x3c4] ss:$20 sps:$4 sm:$0xff]  }
 0x156   : > { %1963 = vmatpush1.bf16.msra.mxu0 %v4672_v26  ;;  %v3734_v26 = vld [vmem:[%s4594_s28 + $0x37c] ss:$20 sps:$4 sm:$0xff]  }
 0x158   : > { %1788 = vmatmul.mubr.bf16.gmra.mrb[32].mxu0 %v3693_v0  ;;  %2085 = vmatmul.mubr.bf16.gmra.mrb[32].mxu1 %v3694_v1  ;;  %v3785_v0 = vld [vmem:[%s4594_s28 + $0x3c0] ss:$20 sps:$4 sm:$0xff]   ;;  %v3786_v1 = vld [vmem:[%s4594_s28 + $0x1c8] ss:$20 sps:$4 sm:$0xff]  }
 0x159   : > { %1795 = vmatprep.mubr.bf16.mxu0 %v3695_v2  ;;  %2092 = vmatprep.mubr.bf16.mxu1 %v3697_v3  ;;  %v3787_v2 = vld [vmem:[%s4594_s28 + $0x3ec] ss:$20 sps:$4 sm:$0xff]   ;;  %v3789_v3 = vld [vmem:[%s4594_s28 + $0x1f0] ss:$20 sps:$4 sm:$0xff]  }
 0x160   : > { %1796 = vmatmul.mubr.bf16.gmra.mrb[36].mxu0 %v3699_v4  ;;  %2093 = vmatmul.mubr.bf16.gmra.mrb[36].mxu1 %v3700_v5  ;;  %v3790_v4 = vld [vmem:[%s4594_s28 + $0x3e8] ss:$20 sps:$4 sm:$0xff]   ;;  %v3791_v5 = vld [vmem:[%s4594_s28 + $0x218] ss:$20 sps:$4 sm:$0xff]  }
 0x161   : > { %1803 = vmatprep.mubr.bf16.mxu0 %v3701_v6  ;;  %2100 = vmatprep.mubr.bf16.mxu1 %v3703_v57  ;;  %v3794_v6 = vld [vmem:[%s4594_s28 + $0xc] ss:$20 sps:$4 sm:$0xff]  }
 0x162   : > { %v3795_v57 = vld [vmem:[%s4594_s28 + $0x240] ss:$20 sps:$4 sm:$0xff]  }
 0x168   : > { %1804 = vmatmul.mubr.bf16.gmra.mrb[40].mxu0 %v3705_v7  ;;  %2101 = vmatmul.mubr.bf16.gmra.mrb[40].mxu1 %v3706_v8  ;;  %v3792_v7 = vld [vmem:[%s4594_s28 + $0x8] ss:$20 sps:$4 sm:$0xff]  }
 0x169   : > { %1811 = vmatprep.mubr.bf16.mxu0 %v3707_v9  ;;  %2108 = vmatprep.mubr.bf16.mxu1 %v3709_v10  ;;  %v3796_v8 = vld [vmem:[%s4594_s28 + $0x268] ss:$20 sps:$4 sm:$0xff]   ;;  %v3799_v10 = vld [vmem:[%s4594_s28 + $0x290] ss:$20 sps:$4 sm:$0xff]  }
 0x16a   : > { %v3797_v9 = vld [vmem:[%s4594_s28 + $0x34] ss:$20 sps:$4 sm:$0xff]  }
 0x170   : > { %1812 = vmatmul.mubr.bf16.gmra.mrb[44].mxu0 %v3712_v11  ;;  %2109 = vmatmul.mubr.bf16.gmra.mrb[44].mxu1 %v3713_v12  ;;  %v3800_v11 = vld [vmem:[%s4594_s28 + $0x30] ss:$20 sps:$4 sm:$0xff]  }
 0x171   : > { %1819 = vmatprep.mubr.bf16.mxu0 %v3714_v13  ;;  %2116 = vmatprep.mubr.bf16.mxu1 %v3716_v14  ;;  %v3801_v13 = vld [vmem:[%s4594_s28 + $0x2b8] ss:$20 sps:$4 sm:$0xff]  }
 0x178   : > { %1820 = vmatmul.mubr.bf16.gmra.mrb[48].mxu0 %v3718_v15  ;;  %2117 = vmatmul.mubr.bf16.gmra.mrb[48].mxu1 %v3719_v16  ;;  %v3802_v15 = vld [vmem:[%s4594_s28 + $0x5c] ss:$20 sps:$4 sm:$0xff]  }
 0x179   : > { %1827 = vmatprep.mubr.bf16.mxu0 %v3720_v17  ;;  %2124 = vmatprep.mubr.bf16.mxu1 %v3722_v18  ;;  %v3804_v17 = vld [vmem:[%s4594_s28 + $0x2e0] ss:$20 sps:$4 sm:$0xff]  }
 0x180   : > { %1828 = vmatmul.mubr.bf16.gmra.mrb[52].mxu0 %v3724_v19  ;;  %2125 = vmatmul.mubr.bf16.gmra.mrb[52].mxu1 %v3725_v20  ;;  %v3805_v19 = vld [vmem:[%s4594_s28 + $0x58] ss:$20 sps:$4 sm:$0xff]  }
 0x181   : > { %1835 = vmatprep.mubr.bf16.mxu0 %v3726_v21  ;;  %2132 = vmatprep.mubr.bf16.mxu1 %v3728_v22  ;;  %v3806_v21 = vld [vmem:[%s4594_s28 + $0x308] ss:$20 sps:$4 sm:$0xff]  }
 0x188   : > { %1836 = vmatmul.mubr.bf16.gmra.mrb[56].mxu0 %v3730_v23  ;;  %2133 = vmatmul.mubr.bf16.gmra.mrb[56].mxu1 %v3731_v24  ;;  %v3807_v23 = vld [vmem:[%s4594_s28 + $0x84] ss:$20 sps:$4 sm:$0xff]  }
 0x189   : > { %1843 = vmatprep.mubr.bf16.mxu0 %v3732_v25  ;;  %2140 = vmatprep.mubr.bf16.mxu1 %v3734_v26  ;;  %v3809_v25 = vld [vmem:[%s4594_s28 + $0x330] ss:$20 sps:$4 sm:$0xff]  }
 0x190   : > { %1844 = vmatmul.mubr.bf16.gmra.mrb[60].mxu0 %v3736_v27  ;;  %2141 = vmatmul.mubr.bf16.gmra.mrb[60].mxu1 %v3737_v28  ;;  %v3810_v27 = vld [vmem:[%s4594_s28 + $0x80] ss:$20 sps:$4 sm:$0xff]  }
 0x191   : > { %1851 = vmatprep.mubr.bf16.mxu0 %v3739_v29  ;;  %2148 = vmatprep.mubr.bf16.mxu1 %v3741_v30  ;;  %v3811_v29 = vld [vmem:[%s4594_s28 + $0x358] ss:$20 sps:$4 sm:$0xff]  }
 0x198   : > { %1852 = vmatmul.mubr.bf16.gmra.mrb[64].mxu0 %v3743_v31  ;;  %2149 = vmatmul.mubr.bf16.gmra.mrb[64].mxu1 %v3744_v32  ;;  %v3812_v31 = vld [vmem:[%s4594_s28 + $0xac] ss:$20 sps:$4 sm:$0xff]  }
 0x199   : > { %1859 = vmatprep.mubr.bf16.mxu0 %v3745_v33  ;;  %2156 = vmatprep.mubr.bf16.mxu1 %v3747_v34  ;;  %v3814_v33 = vld [vmem:[%s4594_s28 + $0x380] ss:$20 sps:$4 sm:$0xff]  }
 0x1a0   : > { %1860 = vmatmul.mubr.bf16.gmra.mrb[68].mxu0 %v3749_v35  ;;  %2157 = vmatmul.mubr.bf16.gmra.mrb[68].mxu1 %v3750_v36  ;;  %v3815_v35 = vld [vmem:[%s4594_s28 + $0xa8] ss:$20 sps:$4 sm:$0xff]  }
 0x1a1   : > { %1867 = vmatprep.mubr.bf16.mxu0 %v3751_v37  ;;  %2164 = vmatprep.mubr.bf16.mxu1 %v3753_v38  ;;  %v3816_v37 = vld [vmem:[%s4594_s28 + $0x3a8] ss:$20 sps:$4 sm:$0xff]  }
 0x1a8   : > { %1868 = vmatmul.mubr.bf16.gmra.mrb[72].mxu0 %v3755_v39  ;;  %2165 = vmatmul.mubr.bf16.gmra.mrb[72].mxu1 %v3756_v40  ;;  %v3817_v39 = vld [vmem:[%s4594_s28 + $0xd4] ss:$20 sps:$4 sm:$0xff]  }
 0x1a9   : > { %1875 = vmatprep.mubr.bf16.mxu0 %v3757_v41  ;;  %3224 = vmatprep.mubr.msk.bf16.mxu1 %vm1612_vm0, %v3759_v42  ;;  %v3819_v41 = vld [vmem:[%s4594_s28 + $0x3d0] ss:$20 sps:$4 sm:$0xff]  }
 0x1b0   : > { %1876 = vmatmul.mubr.bf16.gmra.mrb[76].mxu0 %v3760_v43  ;;  %3225 = vmatmul.mubr.msk.bf16.vlgmr.msra.gmra.mrb[76].mxu1 %vm1612_vm0, %v3761_v44  ;;  %v3820_v43 = vld [vmem:[%s4594_s28 + $0xd0] ss:$20 sps:$4 sm:$0xff]  }
 0x1b1   : > { %1883 = vmatprep.mubr.bf16.mxu0 %v3762_v45  ;;  %3228 = vmatprep.mubr.msk.bf16.mxu1 %vm1612_vm0, %v3764_v46  ;;  %v3821_v45 = vld [vmem:[%s4594_s28 + $0x3f8] ss:$20 sps:$4 sm:$0xff]  }
 0x1b8   : > { %1884 = vmatmul.mubr.bf16.gmra.mrb[80].mxu0 %v3765_v47  ;;  %3229 = vmatmul.mubr.msk.bf16.gmra.mrb[80].mxu1 %vm1612_vm0, %v3766_v48  ;;  %v3822_v47 = vld [vmem:[%s4594_s28 + $0xfc] ss:$20 sps:$4 sm:$0xff]  }
 0x1b9   : > { %1891 = vmatprep.mubr.bf16.mxu0 %v3767_v49  ;;  %3232 = vmatprep.mubr.msk.bf16.mxu1 %vm1612_vm0, %v3769_v50  ;;  %v3824_v50 = vld [vmem:[%s4594_s28 + $0xf8] ss:$20 sps:$4 sm:$0xff]  }
 0x1c0   : > { %1892 = vmatmul.mubr.bf16.gmra.mrb[84].mxu0 %v3770_v51  ;;  %3233 = vmatmul.mubr.msk.bf16.gmra.mrb[84].mxu1 %vm1612_vm0, %v3771_v52 }
 0x1c1   : > { %1899 = vmatprep.mubr.bf16.mxu0 %v3772_v53  ;;  %3236 = vmatprep.mubr.msk.bf16.mxu1 %vm1612_vm0, %v3774_v54 }
 0x1c8   : > { %1900 = vmatmul.mubr.bf16.gmra.mrb[88].mxu0 %v3775_v55  ;;  %3237 = vmatmul.mubr.msk.bf16.gmra.mrb[88].mxu1 %vm1612_vm0, %v3776_v56 }
 0x1c9   : > { %1907 = vmatprep.mubr.bf16.mxu0 %v3777_v58  ;;  %3240 = vmatprep.mubr.msk.bf16.mxu1 %vm1612_vm0, %v3779_v59 }
 0x1d0   : > { %1908 = vmatmul.mubr.bf16.gmra.mrb[92].mxu0 %v3780_v60  ;;  %3241 = vmatmul.mubr.msk.bf16.gmra.mrb[92].mxu1 %vm1612_vm0, %v3781_v61 }
 0x1d1   : > { %1915 = vmatprep.mubr.bf16.mxu0 %v3782_v62  ;;  %3244 = vmatprep.mubr.msk.bf16.mxu1 %vm1612_vm0, %v3784_v63 }
 0x1d8   : > { %1916 = vmatmul.mubr.bf16.gmra.mrb[96].mxu0 %v3785_v0  ;;  %3245 = vmatmul.mubr.msk.bf16.gmra.mrb[96].mxu1 %vm1612_vm0, %v3786_v1 }
 0x1d9   : > { %1923 = vmatprep.mubr.bf16.mxu0 %v3787_v2  ;;  %3248 = vmatprep.mubr.msk.bf16.mxu1 %vm1612_vm0, %v3789_v3 }
 0x1e0   : > { %1924 = vmatmul.mubr.bf16.gmra.mrb[100].mxu0 %v3790_v4  ;;  %3249 = vmatmul.mubr.msk.bf16.gmra.mrb[100].mxu1 %vm1612_vm0, %v3791_v5 }
 0x1e1   : > { %1964 = vmatprep.mubr.bf16.mxu0 %v3794_v6  ;;  %3252 = vmatprep.mubr.msk.bf16.mxu1 %vm1612_vm0, %v3795_v57 }
 0x1e8   : > { %1965 = vmatmul.mubr.bf16.vlgmr.msra.gmra.mrb[0].mxu0 %v3792_v7  ;;  %3253 = vmatmul.mubr.msk.bf16.gmra.mrb[104].mxu1 %vm1612_vm0, %v3796_v8 }
 0x1e9   : > { %1972 = vmatprep.mubr.bf16.mxu0 %v3797_v9  ;;  %3256 = vmatprep.mubr.msk.bf16.mxu1 %vm1612_vm0, %v3799_v10 }
 0x1eb   : > { %v4846_v12 = vpop.f32.mrb[0].mxu1 }
 0x1ec   : > { %v2024_v14 = vpop.f32.mrb[1].mxu1 }
 0x1ed   : > { %v4850_v16 = vpop.f32.mrb[2].mxu1 }
 0x1ee   : > { %v2027_v18 = vpop.f32.mrb[3].mxu1 }
 0x1f0   : > { %1973 = vmatmul.mubr.bf16.gmra.mrb[4].mxu0 %v3800_v11  ;;  %3257 = vmatmul.mubr.msk.bf16.gmra.mrb[108].mxu1 %vm1612_vm0, %v3801_v13 }
 0x1f1   : > { %1980 = vmatprep.mubr.bf16.mxu0 %v3802_v15  ;;  %3260 = vmatprep.mubr.msk.bf16.mxu1 %vm1612_vm0, %v3804_v17 }
 0x1f3   : > { %v4856_v20 = vpop.f32.mrb[4].mxu1 }
 0x1f4   : > { %v2032_v22 = vpop.f32.mrb[5].mxu1 }
 0x1f5   : > { %v4860_v24 = vpop.f32.mrb[6].mxu1 }
 0x1f6   : > { %v2035_v26 = vpop.f32.mrb[7].mxu1 }
 0x1f8   : > { %1981 = vmatmul.mubr.bf16.gmra.mrb[8].mxu0 %v3805_v19  ;;  %3261 = vmatmul.mubr.msk.bf16.gmra.mrb[112].mxu1 %vm1612_vm0, %v3806_v21 }
 0x1f9   : > { %1988 = vmatprep.mubr.bf16.mxu0 %v3807_v23  ;;  %3264 = vmatprep.mubr.msk.bf16.mxu1 %vm1612_vm0, %v3809_v25 }
 0x1fb   : > { %v4866_v28 = vpop.f32.mrb[8].mxu1 }
 0x1fc   : > { %v2040_v30 = vpop.f32.mrb[9].mxu1 }
 0x1fd   : > { %v4870_v32 = vpop.f32.mrb[10].mxu1 }
 0x1fe   : > { %v2043_v34 = vpop.f32.mrb[11].mxu1 }
 0x200   : > { %1989 = vmatmul.mubr.bf16.gmra.mrb[12].mxu0 %v3810_v27  ;;  %3265 = vmatmul.mubr.msk.bf16.gmra.mrb[116].mxu1 %vm1612_vm0, %v3811_v29 }
 0x201   : > { %1996 = vmatprep.mubr.bf16.mxu0 %v3812_v31  ;;  %3268 = vmatprep.mubr.msk.bf16.mxu1 %vm1612_vm0, %v3814_v33 }
 0x203   : > { %v2046_v36 = vpop.f32.mrb[12].mxu1 }
 0x204   : > { %v2048_v38 = vpop.f32.mrb[13].mxu1 }
 0x205   : > { %v4878_v40 = vpop.f32.mrb[14].mxu1 }
 0x206   : > { %v2051_v42 = vpop.f32.mrb[15].mxu1 }
 0x208   : > { %1997 = vmatmul.mubr.bf16.gmra.mrb[16].mxu0 %v3815_v35  ;;  %3269 = vmatmul.mubr.msk.bf16.gmra.mrb[120].mxu1 %vm1612_vm0, %v3816_v37 }
 0x209   : > { %2004 = vmatprep.mubr.bf16.mxu0 %v3817_v39  ;;  %3272 = vmatprep.mubr.msk.bf16.mxu1 %vm1612_vm0, %v3819_v41 }
 0x20b   : > { %v2054_v44 = vpop.f32.mrb[16].mxu1 }
 0x20c   : > { %v2056_v46 = vpop.f32.mrb[17].mxu1 }
 0x20d   : > { %v2057_v48 = vpop.f32.mrb[18].mxu1 }
 0x20e   : > { %v2059_v49 = vpop.f32.mrb[19].mxu1 }
 0x210   : > { %2005 = vmatmul.mubr.bf16.gmra.mrb[20].mxu0 %v3820_v43  ;;  %3273 = vmatmul.mubr.msk.bf16.gmra.mrb[124].mxu1 %vm1612_vm0, %v3821_v45 }
 0x211   : > { %2012 = vmatprep.mubr.bf16.mxu0 %v3822_v47 }
 0x213   : > { %v2062_v51 = vpop.f32.mrb[20].mxu1 }
 0x214   : > { %v2064_v52 = vpop.f32.mrb[21].mxu1 }
 0x215   : > { %v4888_v53 = vpop.f32.mrb[22].mxu1 }
 0x216   : > { %v2067_v54 = vpop.f32.mrb[23].mxu1 }
 0x218   : > { %2013 = vmatmul.mubr.bf16.gmra.mrb[24].mxu0 %v3824_v50 }
 0x21b   : > { %v4890_v55 = vpop.f32.mrb[24].mxu1 }
 0x21c   : > { %v2072_v56 = vpop.f32.mrb[25].mxu1 }
 0x21d   : > { %v4892_v58 = vpop.f32.mrb[26].mxu1 }
 0x21e   : > { %v2075_v59 = vpop.f32.mrb[27].mxu1 }
 0x223   : > { %v1781_v60 = vpop.f32.mrb[28].mxu0  ;;  %v4897_v63 = vpop.f32.mrb[28].mxu1 }
 0x224   : > { %v4895_v61 = vadd.f32 %v4846_v12, %v1781_v60  ;;  %v1783_v62 = vpop.f32.mrb[29].mxu0  ;;  %v2080_v1 = vpop.f32.mrb[29].mxu1 }
 0x225   : > { %v1784_v0 = vpop.f32.mrb[30].mxu0  ;;  %v4902_v4 = vpop.f32.mrb[30].mxu1 }
 0x226   : > { %v4900_v2 = vadd.f32 %v4850_v16, %v1784_v0  ;;  %v1786_v3 = vpop.f32.mrb[31].mxu0  ;;  %v2083_v5 = vpop.f32.mrb[31].mxu1 }
 0x22b   : > { %v1789_v6 = vpop.f32.mrb[32].mxu0  ;;  %v4907_v8 = vpop.f32.mrb[32].mxu1 }
 0x22c   : > { %v4905_v57 = vadd.f32 %v4856_v20, %v1789_v6  ;;  %v1791_v7 = vpop.f32.mrb[33].mxu0  ;;  %v2088_v10 = vpop.f32.mrb[33].mxu1 }
 0x22d   : > { %v1792_v9 = vpop.f32.mrb[34].mxu0  ;;  %v4912_v13 = vpop.f32.mrb[34].mxu1 }
 0x22e   : > { %v4910_v11 = vadd.f32 %v4860_v24, %v1792_v9  ;;  %v1794_v12 = vpop.f32.mrb[35].mxu0  ;;  %v2091_v14 = vpop.f32.mrb[35].mxu1 }
 0x233   : > { %v1797_v15 = vpop.f32.mrb[36].mxu0  ;;  %v4917_v18 = vpop.f32.mrb[36].mxu1 }
 0x234   : > { %v4915_v16 = vadd.f32 %v4866_v28, %v1797_v15  ;;  %v1799_v17 = vpop.f32.mrb[37].mxu0  ;;  %v2096_v20 = vpop.f32.mrb[37].mxu1 }
 0x235   : > { %v1800_v19 = vpop.f32.mrb[38].mxu0  ;;  %v4922_v23 = vpop.f32.mrb[38].mxu1 }
 0x236   : > { %v4920_v21 = vadd.f32 %v4870_v32, %v1800_v19  ;;  %v1802_v22 = vpop.f32.mrb[39].mxu0  ;;  %v2099_v24 = vpop.f32.mrb[39].mxu1 }
 0x23b   : > { %v1805_v25 = vpop.f32.mrb[40].mxu0  ;;  %v4926_v29 = vpop.f32.mrb[40].mxu1 }
 0x23c   : > { %v4924_v26 = vadd.f32 %v2046_v36, %v1805_v25  ;;  %v1807_v27 = vpop.f32.mrb[41].mxu0  ;;  %v2104_v30 = vpop.f32.mrb[41].mxu1 }
 0x23d   : > { %v1808_v28 = vpop.f32.mrb[42].mxu0  ;;  %v4931_v34 = vpop.f32.mrb[42].mxu1 }
 0x23e   : > { %v4929_v31 = vadd.f32 %v4878_v40, %v1808_v28  ;;  %v1810_v33 = vpop.f32.mrb[43].mxu0  ;;  %v2107_v32 = vpop.f32.mrb[43].mxu1 }
 0x243   : > { %v1813_v35 = vpop.f32.mrb[44].mxu0  ;;  %v4935_v39 = vpop.f32.mrb[44].mxu1 }
 0x244   : > { %v4933_v37 = vadd.f32 %v2054_v44, %v1813_v35  ;;  %v1815_v38 = vpop.f32.mrb[45].mxu0  ;;  %v2112_v41 = vpop.f32.mrb[45].mxu1 }
 0x245   : > { %v1816_v36 = vpop.f32.mrb[46].mxu0  ;;  %v4939_v45 = vpop.f32.mrb[46].mxu1 }
 0x246   : > { %v4937_v42 = vadd.f32 %v2057_v48, %v1816_v36  ;;  %v1818_v43 = vpop.f32.mrb[47].mxu0  ;;  %v2115_v46 = vpop.f32.mrb[47].mxu1 }
 0x24b   : > { %v1821_v40 = vpop.f32.mrb[48].mxu0  ;;  %v4943_v50 = vpop.f32.mrb[48].mxu1 }
 0x24c   : > { %v4941_v47 = vadd.f32 %v2062_v51, %v1821_v40  ;;  %v1823_v49 = vpop.f32.mrb[49].mxu0  ;;  %v2120_v44 = vpop.f32.mrb[49].mxu1 }
 0x24d   : > { %v1824_v52 = vpop.f32.mrb[50].mxu0  ;;  %v4948_v59 = vpop.f32.mrb[50].mxu1 }
 0x24e   : > { %v4946_v54 = vadd.f32 %v4888_v53, %v1824_v52  ;;  %v1826_v56 = vpop.f32.mrb[51].mxu0  ;;  %v2123_v48 = vpop.f32.mrb[51].mxu1 }
 0x253   : > { %v1829_v60 = vpop.f32.mrb[52].mxu0  ;;  %v4953_v1 = vpop.f32.mrb[52].mxu1 }
 0x254   : > { %v4951_v62 = vadd.f32 %v4890_v55, %v1829_v60  ;;  %v1831_v0 = vpop.f32.mrb[53].mxu0  ;;  %v2128_v3 = vpop.f32.mrb[53].mxu1 }
 0x255   : > { %v1832_v51 = vpop.f32.mrb[54].mxu0  ;;  %v4958_v7 = vpop.f32.mrb[54].mxu1 }
 0x256   : > { %v4956_v5 = vadd.f32 %v4892_v58, %v1832_v51  ;;  %v1834_v6 = vpop.f32.mrb[55].mxu0  ;;  %v2131_v53 = vpop.f32.mrb[55].mxu1 }
 0x25b   : > { %v1837_v9 = vpop.f32.mrb[56].mxu0  ;;  %v4963_v14 = vpop.f32.mrb[56].mxu1 }
 0x25c   : > { %v4961_v10 = vadd.f32 %v4897_v63, %v1837_v9  ;;  %v1839_v12 = vpop.f32.mrb[57].mxu0  ;;  %v2136_v15 = vpop.f32.mrb[57].mxu1 }
 0x25d   : > { %v1840_v55 = vpop.f32.mrb[58].mxu0  ;;  %v4968_v20 = vpop.f32.mrb[58].mxu1 }
 0x25e   : > { %v4966_v17 = vadd.f32 %v4902_v4, %v1840_v55  ;;  %v1842_v19 = vpop.f32.mrb[59].mxu0  ;;  %v2139_v58 = vpop.f32.mrb[59].mxu1 }
 0x263   : > { %v1845_v22 = vpop.f32.mrb[60].mxu0  ;;  %v4973_v27 = vpop.f32.mrb[60].mxu1 }
 0x264   : > { %v4971_v24 = vadd.f32 %v4907_v8, %v1845_v22  ;;  %v1847_v25 = vpop.f32.mrb[61].mxu0  ;;  %v2144_v28 = vpop.f32.mrb[61].mxu1 }
 0x265   : > { %v1848_v63 = vpop.f32.mrb[62].mxu0  ;;  %v4978_v32 = vpop.f32.mrb[62].mxu1 }
 0x266   : > { %v4976_v30 = vadd.f32 %v4912_v13, %v1848_v63  ;;  %v1850_v33 = vpop.f32.mrb[63].mxu0  ;;  %v2147_v4 = vpop.f32.mrb[63].mxu1 }
 0x26b   : > { %v1853_v35 = vpop.f32.mrb[64].mxu0  ;;  %v4983_v41 = vpop.f32.mrb[64].mxu1 }
 0x26c   : > { %v4981_v38 = vadd.f32 %v4917_v18, %v1853_v35  ;;  %v1855_v36 = vpop.f32.mrb[65].mxu0  ;;  %v2152_v43 = vpop.f32.mrb[65].mxu1 }
 0x26d   : > { %v1856_v8 = vpop.f32.mrb[66].mxu0  ;;  %v4988_v49 = vpop.f32.mrb[66].mxu1 }
 0x26e   : > { %v4986_v46 = vadd.f32 %v4922_v23, %v1856_v8  ;;  %v1858_v40 = vpop.f32.mrb[67].mxu0  ;;  %v2155_v13 = vpop.f32.mrb[67].mxu1 }
 0x273   : > { %v1861_v52 = vpop.f32.mrb[68].mxu0  ;;  %v4993_v48 = vpop.f32.mrb[68].mxu1 }
 0x274   : > { %v4991_v44 = vadd.f32 %v4926_v29, %v1861_v52  ;;  %v1863_v56 = vpop.f32.mrb[69].mxu0  ;;  %v2160_v60 = vpop.f32.mrb[69].mxu1 }
 0x275   : > { %v1864_v18 = vpop.f32.mrb[70].mxu0  ;;  %v4998_v3 = vpop.f32.mrb[70].mxu1 }
 0x276   : > { %v4996_v0 = vadd.f32 %v4931_v34, %v1864_v18  ;;  %v1866_v51 = vpop.f32.mrb[71].mxu0  ;;  %v2163_v23 = vpop.f32.mrb[71].mxu1 }
 0x27b   : > { %v1869_v6 = vpop.f32.mrb[72].mxu0  ;;  %v5003_v12 = vpop.f32.mrb[72].mxu1 }
 0x27c   : > { %v5001_v53 = vadd.f32 %v4935_v39, %v1869_v6  ;;  %v1871_v9 = vpop.f32.mrb[73].mxu0  ;;  %v2168_v55 = vpop.f32.mrb[73].mxu1 }
 0x27d   : > { %v1872_v29 = vpop.f32.mrb[74].mxu0  ;;  %v5008_v58 = vpop.f32.mrb[74].mxu1 }
 0x27e   : > { %v5006_v15 = vadd.f32 %v4939_v45, %v1872_v29  ;;  %v1874_v19 = vpop.f32.mrb[75].mxu0  ;;  %v2171_v34 = vpop.f32.mrb[75].mxu1 }
 0x283   : > { %v1877_v22 = vpop.f32.mrb[76].mxu0  ;;  %v5013_v28 = vpop.f32.mrb[76].mxu1 }
 0x284   : > { %v5011_v25 = vadd.f32 %v4943_v50, %v1877_v22  ;;  %v1879_v63 = vpop.f32.mrb[77].mxu0  ;;  %v5015_v33 = vpop.f32.mrb[77].mxu1 }
 0x285   : > { %v1880_v39 = vpop.f32.mrb[78].mxu0  ;;  %v5020_v45 = vpop.f32.mrb[78].mxu1 }
 0x286   : > { %v5018_v4 = vadd.f32 %v4948_v59, %v1880_v39  ;;  %v1882_v35 = vpop.f32.mrb[79].mxu0  ;;  %v5022_v36 = vpop.f32.mrb[79].mxu1 }
 0x28b   : > { %v1885_v8 = vpop.f32.mrb[80].mxu0  ;;  %v5027_v40 = vpop.f32.mrb[80].mxu1 }
 0x28c   : > { %v5025_v43 = vadd.f32 %v4953_v1, %v1885_v8  ;;  %v1887_v50 = vpop.f32.mrb[81].mxu0  ;;  %v5029_v52 = vpop.f32.mrb[81].mxu1 }
 0x28d   : > { %v1888_v13 = vpop.f32.mrb[82].mxu0  ;;  %v5034_v18 = vpop.f32.mrb[82].mxu1 }
 0x28e   : > { %v5032_v56 = vadd.f32 %v4958_v7, %v1888_v13  ;;  %v1890_v59 = vpop.f32.mrb[83].mxu0  ;;  %v5036_v60 = vpop.f32.mrb[83].mxu1 }
 0x293   : > { %v1893_v51 = vpop.f32.mrb[84].mxu0  ;;  %v5041_v6 = vpop.f32.mrb[84].mxu1 }
 0x294   : > { %v5039_v23 = vadd.f32 %v4963_v14, %v1893_v51  ;;  %v1895_v1 = vpop.f32.mrb[85].mxu0  ;;  %v5043_v29 = vpop.f32.mrb[85].mxu1 }
 0x295   : > { %v1896_v9 = vpop.f32.mrb[86].mxu0  ;;  %v5048_v19 = vpop.f32.mrb[86].mxu1 }
 0x296   : > { %v5046_v55 = vadd.f32 %v4968_v20, %v1896_v9  ;;  %v1898_v7 = vpop.f32.mrb[87].mxu0  ;;  %v5050_v34 = vpop.f32.mrb[87].mxu1 }
 0x29b   : > { %v1901_v22 = vpop.f32.mrb[88].mxu0  ;;  %v3238_v14 = vpop.f32.mrb[88].mxu1 }
 0x29c   : > { %v5053_v63 = vadd.f32 %v4973_v27, %v1901_v22  ;;  %v1903_v39 = vpop.f32.mrb[89].mxu0  ;;  %v5056_v35 = vadd.f32 %v3238_v14, %v4895_v61  ;;  %v5058_v8 = vpop.f32.mrb[89].mxu1 }
 0x29d   : > { %v1904_v50 = vpop.f32.mrb[90].mxu0  ;;  %v3239_v13 = vpop.f32.mrb[90].mxu1 }
 0x29e   : > { %v5061_v20 = vadd.f32 %v4978_v32, %v1904_v50  ;;  %v1906_v59 = vpop.f32.mrb[91].mxu0  ;;  %v5064_v51 = vadd.f32 %v3239_v13, %v4900_v2  ;;  %v5066_v1 = vpop.f32.mrb[91].mxu1 }
 0x29f   : > { %5322 = vst [vmem:[#allocation4_spill] sm:$0xff] %v5066_v1 }
 0x2a3   : > { %v1909_v27 = vpop.f32.mrb[92].mxu0  ;;  %v3242_v7 = vpop.f32.mrb[92].mxu1 }
 0x2a4   : > { %v5069_v9 = vadd.f32 %v4983_v41, %v1909_v27  ;;  %v1911_v61 = vpop.f32.mrb[93].mxu0  ;;  %v5072_v22 = vadd.f32 %v3242_v7, %v4915_v16  ;;  %v2271_v14 = vpop.f32.mrb[93].mxu1 }
 0x2a5   : > { %v1912_v39 = vpop.f32.mrb[94].mxu0  ;;  %v5075_v32 = vadd.f32 %v2271_v14, %v4905_v57  ;;  %v3243_v2 = vpop.f32.mrb[94].mxu1 }
 0x2a6   : > { %v5078_v50 = vadd.f32 %v4988_v49, %v1912_v39  ;;  %v1914_v13 = vpop.f32.mrb[95].mxu0  ;;  %v5081_v59 = vadd.f32 %v3243_v2, %v4920_v21  ;;  %v2274_v41 = vpop.f32.mrb[95].mxu1 }
 0x2a7   : > { %v5084_v27 = vadd.f32 %v2274_v41, %v4910_v11 }
 0x2ab   : > { %v1917_v61 = vpop.f32.mrb[96].mxu0  ;;  %v3246_v7 = vpop.f32.mrb[96].mxu1 }
 0x2ac   : > { %v5087_v16 = vadd.f32 %v4993_v48, %v1917_v61  ;;  %v1919_v1 = vpop.f32.mrb[97].mxu0  ;;  %v5090_v57 = vadd.f32 %v3246_v7, %v4933_v37  ;;  %v2287_v49 = vpop.f32.mrb[97].mxu1 }
 0x2ad   : > { %v1920_v14 = vpop.f32.mrb[98].mxu0  ;;  %v5093_v39 = vadd.f32 %v2287_v49, %v4924_v26  ;;  %v3247_v2 = vpop.f32.mrb[98].mxu1 }
 0x2ae   : > { %v5096_v21 = vadd.f32 %v4998_v3, %v1920_v14  ;;  %v1922_v11 = vpop.f32.mrb[99].mxu0  ;;  %v5099_v13 = vadd.f32 %v3247_v2, %v4937_v42  ;;  %v2290_v48 = vpop.f32.mrb[99].mxu1 }
 0x2af   : > { %v5102_v41 = vadd.f32 %v2290_v48, %v4929_v31 }
 0x2b3   : > { %v1925_v1 = vpop.f32.mrb[100].mxu0  ;;  %v3250_v61 = vpop.f32.mrb[100].mxu1 }
 0x2b4   : > { %v5105_v37 = vadd.f32 %v5003_v12, %v1925_v1  ;;  %v1927_v7 = vpop.f32.mrb[101].mxu0  ;;  %v5108_v26 = vadd.f32 %v3250_v61, %v4951_v62  ;;  %v2303_v3 = vpop.f32.mrb[101].mxu1 }
 0x2b5   : > { %v1928_v49 = vpop.f32.mrb[102].mxu0  ;;  %v5111_v14 = vadd.f32 %v2303_v3, %v4941_v47  ;;  %v3251_v2 = vpop.f32.mrb[102].mxu1 }
 0x2b6   : > { %5323 = vst [vmem:[#allocation5_spill] sm:$0xff] %v5108_v26  ;;  %v5114_v42 = vadd.f32 %v5008_v58, %v1928_v49  ;;  %v1930_v31 = vpop.f32.mrb[103].mxu0  ;;  %v2315_v11 = vadd.f32 %v3251_v2, %v4956_v5  ;;  %v2306_v48 = vpop.f32.mrb[103].mxu1 }
 0x2b7   : > { %v5118_v12 = vadd.f32 %v2306_v48, %v4946_v54 }
 0x2bb   : > { %v1966_v1 = vpop.f32.mrb[0].mxu0  ;;  %v3254_v61 = vpop.f32.mrb[104].mxu1 }
 0x2bc   : > { %v5121_v62 = vadd.f32 %v5015_v33, %v1966_v1  ;;  %v1968_v7 = vpop.f32.mrb[1].mxu0  ;;  %v2328_v47 = vadd.f32 %v3254_v61, %v4971_v24  ;;  %v2319_v3 = vpop.f32.mrb[105].mxu1 }
 0x2bd   : > { %v1969_v26 = vpop.f32.mrb[2].mxu0  ;;  %v2320_v58 = vadd.f32 %v2319_v3, %v4961_v10  ;;  %v3255_v31 = vpop.f32.mrb[106].mxu1 }
 0x2be   : > { %5324 = vst [vmem:[#allocation6_spill] sm:$0xff] %v5121_v62  ;;  %v2211_v49 = vadd.f32 %v5022_v36, %v1969_v26  ;;  %v1971_v5 = vpop.f32.mrb[3].mxu0  ;;  %v2331_v2 = vadd.f32 %v3255_v31, %v4976_v30  ;;  %v2322_v54 = vpop.f32.mrb[107].mxu1 }
 0x2bf   : > { %v2323_v33 = vadd.f32 %v2322_v54, %v4966_v17 }
 0x2c0   : > { %v2417_v48 = vmax.f32 %v2211_v49, %v5056_v35 }
 0x2c2   : > { %v5129_v1 = vmax.f32 %v2417_v48, %v2315_v11 }
 0x2c3   : > { %v1974_v7 = vpop.f32.mrb[4].mxu0  ;;  %v3258_v61 = vpop.f32.mrb[108].mxu1 }
 0x2c4   : > { %v2216_v24 = vadd.f32 %v5013_v28, %v1974_v7  ;;  %v1976_v62 = vpop.f32.mrb[5].mxu0  ;;  %v5133_v10 = vadd.f32 %v3258_v61, %v4991_v44  ;;  %v2335_v36 = vpop.f32.mrb[109].mxu1 }
 0x2c5   : > { %v1977_v26 = vpop.f32.mrb[6].mxu0  ;;  %v2336_v30 = vadd.f32 %v2335_v36, %v4981_v38  ;;  %v3259_v49 = vpop.f32.mrb[110].mxu1 }
 0x2c6   : > { %v2420_v3 = vmax.f32 %v2216_v24, %v5064_v51  ;;  %v2219_v35 = vadd.f32 %v5020_v45, %v1977_v26  ;;  %v1979_v17 = vpop.f32.mrb[7].mxu0  ;;  %v5139_v11 = vadd.f32 %v3259_v49, %v4996_v0  ;;  %v2338_v31 = vpop.f32.mrb[111].mxu1 }
 0x2c7   : > { %v2339_v62 = vadd.f32 %v2338_v31, %v4986_v46 }
 0x2c8   : > { %v2423_v28 = vmax.f32 %v2219_v35, %v5075_v32  ;;  %v2421_v44 = vmax.f32 %v2420_v3, %v2320_v58 }
 0x2ca   : > { %v2424_v5 = vmax.f32 %v2423_v28, %v2323_v33 }
 0x2cb   : > { %v1982_v54 = vpop.f32.mrb[8].mxu0  ;;  %v3262_v51 = vpop.f32.mrb[112].mxu1 }
 0x2cc   : > { %v2224_v48 = vadd.f32 %v5029_v52, %v1982_v54  ;;  %v1984_v7 = vpop.f32.mrb[9].mxu0  ;;  %v5145_v38 = vadd.f32 %v3262_v51, %v5011_v25  ;;  %v2351_v45 = vpop.f32.mrb[113].mxu1 }
 0x2cd   : > { %v1985_v24 = vpop.f32.mrb[10].mxu0  ;;  %v5149_v61 = vadd.f32 %v2351_v45, %v5001_v53  ;;  %v3263_v46 = vpop.f32.mrb[114].mxu1 }
 0x2ce   : > { %v2426_v0 = vmax.f32 %v2224_v48, %v5084_v27  ;;  %v2227_v32 = vadd.f32 %v5036_v60, %v1985_v24  ;;  %v1987_v58 = vpop.f32.mrb[11].mxu0  ;;  %v5153_v33 = vadd.f32 %v3263_v46, %v5018_v4  ;;  %v2354_v52 = vpop.f32.mrb[115].mxu1 }
 0x2cf   : > { %v5157_v25 = vadd.f32 %v2354_v52, %v5006_v15 }
 0x2d0   : > { %v2429_v36 = vmax.f32 %v2227_v32, %v5072_v22  ;;  %v2427_v26 = vmax.f32 %v2426_v0, %v2328_v47  ;;  %v5165_v22 = vld [vmem:[%s5309_s2] ss:$0 sm:$0xff] }
 0x2d2   : > { %v2430_v3 = vmax.f32 %v2429_v36, %v2331_v2 }
 0x2d3   : > { %v1990_v35 = vpop.f32.mrb[12].mxu0  ;;  %v3266_v53 = vpop.f32.mrb[116].mxu1 }
 0x2d4   : > { %v2232_v27 = vadd.f32 %v5027_v40, %v1990_v35  ;;  %v1992_v49 = vpop.f32.mrb[13].mxu0  ;;  %v2376_v60 = vadd.f32 %v3266_v53, %v5039_v23  ;;  %v2367_v17 = vpop.f32.mrb[117].mxu1 }
 0x2d5   : > { %v1993_v31 = vpop.f32.mrb[14].mxu0  ;;  %v5168_v15 = vadd.f32 %v2367_v17, %v5025_v43  ;;  %v3267_v40 = vpop.f32.mrb[118].mxu1 }
 0x2d6   : > { %v2432_v4 = vmax.f32 %v2232_v27, %v5081_v59  ;;  %v2235_v47 = vadd.f32 %v5034_v18, %v1993_v31  ;;  %v1995_v2 = vpop.f32.mrb[15].mxu0  ;;  %v2425_v28 = vmax.f32 %v2424_v5, %v2376_v60  ;;  %v2379_v23 = vadd.f32 %v3267_v40, %v5046_v55  ;;  %v2370_v54 = vpop.f32.mrb[119].mxu1 }
 0x2d7   : > { %v2419_v59 = vmax.f32 %v5129_v1, %v5168_v15  ;;  %v2371_v51 = vadd.f32 %v2370_v54, %v5032_v56 }
 0x2d8   : > { %v2435_v48 = vmax.f32 %v2235_v47, %v5093_v39  ;;  %v2433_v7 = vmax.f32 %v2432_v4, %v2336_v30  ;;  %v2463_v45 = vadd.f32 %v5165_v22, %v2425_v28  ;;  %v2428_v43 = vmax.f32 %v2427_v26, %v2379_v23 }
 0x2d9   : > { %v2422_v24 = vmax.f32 %v2421_v44, %v2371_v51 }
 0x2da   : > { %v2436_v0 = vmax.f32 %v2435_v48, %v2339_v62  ;;  %v2476_v58 = vmax.f32 %v2463_v45, 0.0  ;;  %v2464_v27 = vadd.f32 %v5165_v22, %v2428_v43 }
 0x2db   : > { %v1998_v18 = vpop.f32.mrb[16].mxu0  ;;  %v2462_v5 = vadd.f32 %v5165_v22, %v2422_v24  ;;  %v3270_v32 = vpop.f32.mrb[120].mxu1 }
 0x2dc   : > { %v2240_v55 = vadd.f32 %v5043_v29, %v1998_v18  ;;  %v2000_v46 = vpop.f32.mrb[17].mxu0  ;;  %v2392_v39 = vadd.f32 %v3270_v32, %v5069_v9  ;;  %v2383_v52 = vpop.f32.mrb[121].mxu1 }
 0x2dd   : > { %v2001_v56 = vpop.f32.mrb[18].mxu0  ;;  %v2475_v30 = vmax.f32 %v2462_v5, 0.0  ;;  %v2384_v44 = vadd.f32 %v2383_v52, %v5053_v63  ;;  %v3271_v26 = vpop.f32.mrb[122].mxu1 }
 0x2de   : > { %v2438_v36 = vmax.f32 %v2240_v55, %v5102_v41  ;;  %v2243_v62 = vadd.f32 %v5050_v34, %v2001_v56  ;;  %v2003_v35 = vpop.f32.mrb[19].mxu0  ;;  %v2437_v53 = vmax.f32 %v2436_v0, %v2392_v39  ;;  %v2395_v29 = vadd.f32 %v3271_v26, %v5078_v50  ;;  %v2386_v49 = vpop.f32.mrb[123].mxu1  ;;  %v5325_v26 = vld [vmem:[#allocation4_spill] sm:$0xff] }
 0x2df   : > { %v3159_v60 = vpack.c.bf16 %v2476_v58, %v2475_v30  ;;  %v2431_v17 = vmax.f32 %v2430_v3, %v2384_v44  ;;  %v2387_v41 = vadd.f32 %v2386_v49, %v5061_v20  ;;  %v2477_v3 = vmax.f32 %v2464_v27, 0.0 }
 0x2e0   : > { %v2441_v9 = vmax.f32 %v2243_v62, %v5090_v57  ;;  %v2439_v31 = vmax.f32 %v2438_v36, %v5133_v10  ;;  %v2467_v50 = vadd.f32 %v5165_v22, %v2437_v53 }
 0x2e1   : > { %3181 = vst [vmem:[%s5190_s12 + $0x8] sm:$0xff] %v3159_v60   ;;  %v2465_v34 = vadd.f32 %v5165_v22, %v2431_v17  ;;  %v2434_v47 = vmax.f32 %v2433_v7, %v2387_v41 }
 0x2e2   : > { %v2440_v63 = vmax.f32 %v2439_v31, %v2395_v29  ;;  %v2442_v4 = vmax.f32 %v2441_v9, %v5139_v11  ;;  %v2480_v24 = vmax.f32 %v2467_v50, 0.0  ;;  %v5326_v29 = vld [vmem:[#allocation6_spill] sm:$0xff]  ;;  %v5327_v9 = vld [vmem:[#allocation5_spill] sm:$0xff] }
 0x2e3   : > { %v2006_v40 = vpop.f32.mrb[20].mxu0  ;;  %v2478_v2 = vmax.f32 %v2465_v34, 0.0  ;;  %v3274_v10 = vpop.f32.mrb[124].mxu1  ;;  %v2466_v28 = vadd.f32 %v5165_v22, %v2434_v47 }
 0x2e4   : > { %v2248_v57 = vadd.f32 %v5041_v6, %v2006_v40  ;;  %v2008_v20 = vpop.f32.mrb[21].mxu0  ;;  %v2408_v23 = vadd.f32 %v3274_v10, %v5105_v37  ;;  %v2399_v54 = vpop.f32.mrb[125].mxu1  ;;  %v2468_v37 = vadd.f32 %v5165_v22, %v2440_v63 }
 0x2e5   : > { %v2009_v48 = vpop.f32.mrb[22].mxu0  ;;  %v3164_v51 = vpack.c.bf16 %v2478_v2, %v2477_v3  ;;  %v2400_v45 = vadd.f32 %v2399_v54, %v5087_v16  ;;  %v3275_v7 = vpop.f32.mrb[126].mxu1  ;;  %v2479_v0 = vmax.f32 %v2466_v28, 0.0 }
 0x2e6   : > { %v2444_v11 = vmax.f32 %v2248_v57, %v5099_v13  ;;  %v2011_v43 = vpop.f32.mrb[23].mxu0  ;;  %v2251_v6 = vadd.f32 %v5048_v19, %v2009_v48  ;;  %v2411_v18 = vadd.f32 %v3275_v7, %v5114_v42  ;;  %v2402_v5 = vpop.f32.mrb[127].mxu1  ;;  %v2481_v52 = vmax.f32 %v2468_v37, 0.0 }
 0x2e7   : > { %3182 = vst [vmem:[%s5190_s12 + $0x10] sm:$0xff] %v3164_v51   ;;  %v2443_v55 = vmax.f32 %v2442_v4, %v2400_v45  ;;  %v2403_v32 = vadd.f32 %v2402_v5, %v5096_v21  ;;  %v3169_v46 = vpack.c.bf16 %v2480_v24, %v2479_v0 }
 0x2e8   : > { %v2445_v13 = vmax.f32 %v2444_v11, %v5149_v61  ;;  %v2447_v16 = vmax.f32 %v2251_v6, %v5111_v14 }
 0x2e9   : > { %v2469_v58 = vadd.f32 %v5165_v22, %v2443_v55  ;;  %3183 = vst [vmem:[%s5190_s12 + $0x18] sm:$0xff] %v3169_v46  }
 0x2ea   : > { %v2446_v39 = vmax.f32 %v2445_v13, %v2403_v32  ;;  %v2448_v19 = vmax.f32 %v2447_v16, %v5157_v25 }
 0x2eb   : > { %v2014_v42 = vpop.f32.mrb[24].mxu0  ;;  %v2482_v56 = vmax.f32 %v2469_v58, 0.0 }
 0x2ec   : > { %v2256_v30 = vadd.f32 %v5058_v8, %v2014_v42  ;;  %v2016_v36 = vpop.f32.mrb[25].mxu0  ;;  %v2449_v44 = vmax.f32 %v2448_v19, %v2408_v23  ;;  %v2470_v21 = vadd.f32 %v5165_v22, %v2446_v39 }
 0x2ed   : > { %v2017_v61 = vpop.f32.mrb[26].mxu0  ;;  %v3174_v62 = vpack.c.bf16 %v2482_v56, %v2481_v52 }
 0x2ee   : > { %v2450_v14 = vmax.f32 %v2256_v30, %v5118_v12  ;;  %v2259_v35 = vadd.f32 %v5325_v26, %v2017_v61  ;;  %v2019_v27 = vpop.f32.mrb[27].mxu0  ;;  %v2471_v53 = vadd.f32 %v5165_v22, %v2449_v44  ;;  %v2483_v49 = vmax.f32 %v2470_v21, 0.0 }
 0x2ef   : > { %3184 = vst [vmem:[%s5190_s12 + $0x20] sm:$0xff] %v3174_v62   ;;  %v2461_v12 = vadd.f32 %v5165_v22, %v2419_v59 }
 0x2f0   : > { %v2451_v25 = vmax.f32 %v2450_v14, %v5145_v38  ;;  %v2414_v8 = vmax.f32 %v5326_v29, %v2259_v35  ;;  %v2484_v60 = vmax.f32 %v2471_v53, 0.0 }
 0x2f1   : > { %v2474_v50 = vmax.f32 %v2461_v12, 0.0 }
 0x2f2   : > { %v2452_v17 = vmax.f32 %v2451_v25, %v2411_v18  ;;  %v2415_v31 = vmax.f32 %v2414_v8, %v5327_v9  ;;  %v3179_v41 = vpack.c.bf16 %v2484_v60, %v2483_v49 }
 0x2f4   : > { %v2472_v34 = vadd.f32 %v5165_v22, %v2452_v17  ;;  %v2416_v63 = vmax.f32 %v2415_v31, %v5153_v33  ;;  %3185 = vst [vmem:[%s5190_s12 + $0x28] sm:$0xff] %v3179_v41  }
 0x2f6   : > { %v2485_v38 = vmax.f32 %v2472_v34, 0.0  ;;  %v2460_v4 = vadd.f32 %v5165_v22, %v2416_v63  ;;  %2558 = sbr.rel (!%p4097_p5) target bundleno = 835 (0x343), region = 76 }
 0x2f8   : > { %v3149_v47 = vpack.c.bf16 %v2485_v38, %v2485_v38  ;;  %v2473_v40 = vmax.f32 %v2460_v4, 0.0 }
 0x2fa   : > { %2551 = vst [vmem:[%s5190_s12 + $0x30] sm:$0xf] %v3149_v47  ;;  %v3154_v3 = vpack.c.bf16 %v2474_v50, %v2473_v40 }
 0x2fc   : > { %3155 = vst [vmem:[%s5190_s12] sm:$0xff] %v3154_v3  }
 0x2fd   : > { %s5345_s5 = smov (!%p2561_p11, %s2560_s5), 13 }
 0x2fe   : > { %s3125_s11 = sshll.u32 %s5345_s5, 6 }
 0x2ff   : > { %p3128_p12 = scmp.eq.s32.totalorder %s3125_s11, 0 }
 0x300   : > { %3825 = sdivrem.u32 (!%p3128_p12), %s5345_s5, 13 }
 0x301   : > { %2569 = sbr.rel (%p3128_p12) target bundleno = 835 (0x343), region = 80 }
 0x309   : > { %s5243_s20 = spop.drf %3825 }
 0x30a   : > { %p3129_p5 = scmp.le.s32.totalorder %s5243_s20, 0 }
 0x30b   : > { %s5328_s15 = smov (!%p3129_p5), %s5237_s10  ;;  %s5329_s17 = smov (!%p3129_p5), %s5190_s12 }
 0x30c   : > { %2860 = sbr.rel (%p3129_p5) target bundleno = 806 (0x326), region = 211  ;;  %s5252_s18 = smov (!%p3129_p5), 0  }
 0x30d   : > { %s5254_s21 = smov (!%p3129_p5), 0  }
 0x313 LB: >> { %v2586_v1 = vld [vmem:[%s4019_s17] sm:$0xf]  ;;  %v2588_v33 = vld [vmem:[%s4019_s17 + $0x4] sm:$0xf]  ;;  %v2590_v22 = vld [vmem:[%s4019_s17 + $0x8] sm:$0xf]  ;;  %s4027_s21 = sphi %s5254_s21, %s2580_s21   ;;  %s4023_s18 = sphi %s5252_s18, %s5330_s18   ;;  %s4019_s17 = sphi %s5329_s17, %s2617_s17   ;;  %s4015_s15 = sphi %s5328_s15, %s2618_s15  }
 0x314   : >> { %2587 = vst [vmem:[%s4015_s15] sm:$0xf] %v2586_v1  ;;  %2589 = vst [vmem:[%s4015_s15 + $0x4] sm:$0xf] %v2588_v33  ;;  %v2592_v15 = vld [vmem:[%s4019_s17 + $0xc] sm:$0xf]  ;;  %s2612_s14 = sadd.s32 1, %s4023_s18 }
 0x315   : >> { %2591 = vst [vmem:[%s4015_s15 + $0x8] sm:$0xf] %v2590_v22  ;;  %v2594_v59 = vld [vmem:[%s4019_s17 + $0x10] sm:$0xf]  ;;  %v2596_v2 = vld [vmem:[%s4019_s17 + $0x14] sm:$0xf]  ;;  %p2613_p13 = scmp.ge.s32.totalorder %s2612_s14, %s5243_s20 }
 0x316   : >> { %2593 = vst [vmem:[%s4015_s15 + $0xc] sm:$0xf] %v2592_v15  ;;  %2595 = vst [vmem:[%s4015_s15 + $0x10] sm:$0xf] %v2594_v59  ;;  %v2598_v57 = vld [vmem:[%s4019_s17 + $0x18] sm:$0xf] }
 0x317   : >> { %2597 = vst [vmem:[%s4015_s15 + $0x14] sm:$0xf] %v2596_v2  ;;  %v2600_v10 = vld [vmem:[%s4019_s17 + $0x1c] sm:$0xf]  ;;  %v2602_v20 = vld [vmem:[%s4019_s17 + $0x20] sm:$0xf] }
 0x318   : >> { %2599 = vst [vmem:[%s4015_s15 + $0x18] sm:$0xf] %v2598_v57  ;;  %2601 = vst [vmem:[%s4015_s15 + $0x1c] sm:$0xf] %v2600_v10  ;;  %v2604_v28 = vld [vmem:[%s4019_s17 + $0x24] sm:$0xf] }
 0x319   : >> { %2603 = vst [vmem:[%s4015_s15 + $0x20] sm:$0xf] %v2602_v20  ;;  %v2606_v23 = vld [vmem:[%s4019_s17 + $0x28] sm:$0xf]  ;;  %v2608_v54 = vld [vmem:[%s4019_s17 + $0x2c] sm:$0xf] }
 0x31a   : >> { %2605 = vst [vmem:[%s4015_s15 + $0x24] sm:$0xf] %v2604_v28  ;;  %2607 = vst [vmem:[%s4015_s15 + $0x28] sm:$0xf] %v2606_v23  ;;  %v2610_v48 = vld [vmem:[%s4019_s17 + $0x30] sm:$0xf] }
 0x31b   : >> { %2609 = vst [vmem:[%s4015_s15 + $0x2c] sm:$0xf] %v2608_v54  ;;  %2611 = vst [vmem:[%s4015_s15 + $0x30] sm:$0xf] %v2610_v48  ;;  %s5347_s14 = smov (%p2613_p13, %s2612_s14), 0  ;;  %s2580_s21 = sadd.s32 1, %s4027_s21  }
 0x31c   : >> { %s2615_s23 = smul.u32 52, %s5347_s14  ;;  %p2579_p0 = scmp.ge.s32.totalorder %s2580_s21, %s5243_s20 }
 0x31d   : >> { %s5330_s18 = smov %s5347_s14 }
 0x31e   : >> { %s2617_s17 = scalar_lea.vmem %s5190_s12, %s2615_s23 [#allocation3]   ;;  %s2618_s15 = scalar_lea.vmem %s5237_s10, %s2615_s23  }
 0x31f   : > { %2582 = sbr.rel (!%p2579_p0) target bundleno = 787 (0x313), region = 217 }
 0x326 PF: > { %3827 = sdivrem.u32 %s5345_s5, 13 }
 0x327   : > { %s3130_s25 = smul.u32 52, %s5243_s20 }
 0x329   : > { %s2623_s26 = scalar_lea.vmem %s5190_s12, %s3130_s25 [#allocation3]   ;;  %s2625_s27 = scalar_lea.vmem %s5237_s10, %s3130_s25  }
 0x32f   : > { %s3828_s29 = spop.drf %3827 }
 0x330   : > { %p3132_p1 = scmp.le.s32.totalorder %s3828_s29, 0 }
 0x331   : > { %s4029_s7 = smov (!%p3132_p1), %s2625_s27   ;;  %s4033_s8 = smov (!%p3132_p1), %s2623_s26  }
 0x332   : > { %2874 = sbr.rel (%p3132_p1) target bundleno = 835 (0x343), region = 222  ;;  %s4037_s28 = smov (!%p3132_p1), 0  }
 0x333   : > { %s4041_s4 = smov (!%p3132_p1), 0  }
 0x339 LB: >> { %v2635_v51 = vld [vmem:[%s4035_s8] sm:$0xf]  ;;  %s2637_s24 = sadd.s32 1, %s4039_s28  ;;  %s2629_s4 = sadd.s32 1, %s4043_s4   ;;  %s4043_s4 = sphi %s4041_s4, %s2629_s4   ;;  %s4039_s28 = sphi %s4037_s28, %s4038_s28   ;;  %s4035_s8 = sphi %s4033_s8, %s2642_s8   ;;  %s4031_s7 = sphi %s4029_s7, %s2643_s7  }
 0x33a   : >> { %2636 = vst [vmem:[%s4031_s7] sm:$0xf] %v2635_v51  ;;  %p2638_p2 = scmp.ge.s32.totalorder %s2637_s24, %s3828_s29  ;;  %p2628_p3 = scmp.ge.s32.totalorder %s2629_s4, %s3828_s29 }
 0x33c   : >> { %s5349_s24 = smov (%p2638_p2, %s2637_s24), 0  ;;  %2631 = sbr.rel (!%p2628_p3) target bundleno = 825 (0x339), region = 228 }
 0x33d   : >> { %s3133_s12 = sshll.u32 %s5349_s24, 2  ;;  %s4038_s28 = smov %s5349_s24  }
 0x33e   : >> { %s2642_s8 = scalar_lea.vmem %s2623_s26, %s3133_s12 [#allocation3]   ;;  %s2643_s7 = scalar_lea.vmem %s2625_s27, %s3133_s12  }
 0x343 PF: > { %p10_p4 = scmp.ge.s32.totalorder %s4085_s16, 4   ;;  %s5331_s12 = smov %s3943_s13 }
 0x344   : > { %s5332_s13 = smov %s4095_s19  ;;  %s5333_s14 = smov %s4085_s16 }
 0x345   :  { %12 = sbr.rel (!%p10_p4) target bundleno = 2 (0x2), region = 239 }

// kernel: forward.5
= control target key start
LH: loop header
LB: loop body
LE: loop exit
PB: predicated region body
PF: predicated region fallthrough
CT: control target
= control target key end

     0   :  { %v4130_v0 = vmov 0   ;;  %vm879_vm0 = vcmask 523264   ;;  %vm4132_vm1 = vmmov 0   ;;  %vm3087_vm2 = vcmask 80896   ;;  %s5322_s1 = inlined_call_operand.vmem [shape: bf16[576,128], index: 1, kind: input, shape index: {}]   ;;  %s5323_s0 = inlined_call_operand.vmem [shape: bf16[4,9,8,576], index: 0, kind: input, shape index: {}]   ;;  %s5324_s3 = inlined_call_operand.vmem [shape: bf16[9,128,256], index: 3, kind: input, shape index: {}]   ;;  %s5325_s2 = inlined_call_operand.vmem [shape: f32[1,128], index: 2, kind: input, shape index: {}]   ;;  %s5326_s5 = inlined_call_operand.vmem [shape: bf16[256,128], index: 5, kind: input, shape index: {}]   ;;  %s5327_s7 = inlined_call_operand.vmem [shape: bf16[128,10], index: 7, kind: input, shape index: {}]   ;;  %s5328_s4 = inlined_call_operand.vmem [shape: f32[1,256], index: 4, kind: input, shape index: {}]   ;;  %s5329_s6 = inlined_call_operand.vmem [shape: f32[1,128], index: 6, kind: input, shape index: {}]   ;;  %s5330_s8 = inlined_call_operand.vmem [shape: f32[1,10], index: 8, kind: input, shape index: {}]   ;;  %s5331_s9 = inlined_call_operand.vmem [shape: f32[8,10], index: 9, kind: output, shape index: {}]  }
   0x1   :  { %934 = vmatprep.subr.bf16.mxu0 %v4130_v0  ;;  %v3728_v1 = vld [vmem:[%s5322_s1] sm:$0xff]   ;;  %v3729_v2 = vld [vmem:[%s5322_s1 + $0x8] sm:$0xff]   ;;  %v3730_v3 = vld [vmem:[%s5322_s1 + $0x10] sm:$0xff]  }
   0x2   :  { %935 = vmatpush1.bf16.msra.mxu0 %v3728_v1  ;;  %v3731_v4 = vld [vmem:[%s5322_s1 + $0x18] sm:$0xff]   ;;  %v3732_v5 = vld [vmem:[%s5322_s1 + $0x20] sm:$0xff]   ;;  %v3733_v7 = vld [vmem:[%s5322_s1 + $0x28] sm:$0xff]  }
   0x3   :  { %936 = vmatprep.subr.bf16.mxu0 %v4130_v0  ;;  %v3746_v6 = vld [vmem:[%s5323_s0 + $0x4] ss:$20 sps:$4 sm:$0xff]   ;;  %v3734_v8 = vld [vmem:[%s5322_s1 + $0x30] sm:$0xff]   ;;  %v3737_v11 = vld [vmem:[%s5322_s1 + $0x48] sm:$0xff]  }
   0x4   :  { %966 = vmatprep.mubr.bf16.mxu0 %v3746_v6  ;;  %v3735_v9 = vld [vmem:[%s5322_s1 + $0x38] sm:$0xff]   ;;  %v3736_v10 = vld [vmem:[%s5322_s1 + $0x40] sm:$0xff]   ;;  %v3738_v12 = vld [vmem:[%s5322_s1 + $0x50] sm:$0xff]  }
   0x5   :  { %v3739_v13 = vld [vmem:[%s5322_s1 + $0x58] sm:$0xff]   ;;  %v3740_v14 = vld [vmem:[%s5322_s1 + $0x60] sm:$0xff]   ;;  %v3741_v15 = vld [vmem:[%s5322_s1 + $0x68] sm:$0xff]  }
   0x6   :  { %937 = vmatpush1.bf16.msra.mxu0 %v3729_v2  ;;  %v3742_v16 = vld [vmem:[%s5322_s1 + $0x70] sm:$0xff]   ;;  %v3743_v17 = vld [vmem:[%s5322_s1 + $0x78] sm:$0xff]   ;;  %v3809_v18 = vld [vmem:[%s5322_s1 + $0x100] sm:$0xff]  }
   0x7   :  { %938 = vmatprep.subr.bf16.mxu0 %v4130_v0  ;;  %v3744_v19 = vld [vmem:[%s5323_s0] ss:$20 sps:$4 sm:$0xff]   ;;  %3589 = vmatprep.subr.bf16.mxu1 %v3809_v18  ;;  %v3811_v22 = vld [vmem:[%s5322_s1 + $0x108] sm:$0xff]   ;;  %v3817_v28 = vld [vmem:[%s5322_s1 + $0x118] sm:$0xff]  }
   0x8   :  { %v3747_v20 = vld [vmem:[%s5322_s1 + $0x80] sm:$0xff]   ;;  %3590 = vmatpush3.bf16.msra.mxu1 %v3809_v18  ;;  %v3751_v23 = vld [vmem:[%s5322_s1 + $0x88] sm:$0xff]   ;;  %v3814_v24 = vld [vmem:[%s5322_s1 + $0x110] sm:$0xff]  }
   0x9   :  { %v3748_v21 = vld [vmem:[%s5323_s0 + $0x2c] ss:$20 sps:$4 sm:$0xff]   ;;  %v3750_v25 = vld [vmem:[%s5323_s0 + $0x28] ss:$20 sps:$4 sm:$0xff]   ;;  %3591 = vmatprep.subr.bf16.mxu1 %v3811_v22  ;;  %v3755_v27 = vld [vmem:[%s5322_s1 + $0x90] sm:$0xff]  }
   0xa   :  { %939 = vmatpush1.bf16.msra.mxu0 %v3730_v3  ;;  %v3752_v26 = vld [vmem:[%s5323_s0 + $0x54] ss:$20 sps:$4 sm:$0xff]   ;;  %v3818_v29 = vld [vmem:[%s5323_s0 + $0x10] ss:$20 sps:$4 sm:$0xff]   ;;  %v3759_v30 = vld [vmem:[%s5322_s1 + $0x98] sm:$0xff]  }
   0xb   :  { %940 = vmatprep.subr.bf16.mxu0 %v4130_v0  ;;  %v3822_v31 = vld [vmem:[%s5323_s0 + $0x38] ss:$20 sps:$4 sm:$0xff]   ;;  %v3754_v32 = vld [vmem:[%s5323_s0 + $0x50] ss:$20 sps:$4 sm:$0xff]   ;;  %3597 = vmatprep.mubr.msk.bf16.mxu1 %vm879_vm0, %v3818_v29  ;;  %v3826_v39 = vld [vmem:[%s5323_s0 + $0x60] ss:$20 sps:$4 sm:$0xff]  }
   0xc   :  { %3592 = vmatpush3.bf16.msra.mxu1 %v3811_v22  ;;  %v3756_v33 = vld [vmem:[%s5323_s0 + $0x7c] ss:$20 sps:$4 sm:$0xff]   ;;  %v3763_v34 = vld [vmem:[%s5322_s1 + $0xa0] sm:$0xff]   ;;  %v3767_v35 = vld [vmem:[%s5322_s1 + $0xa8] sm:$0xff]  }
   0xd   :  { %3593 = vmatprep.subr.bf16.mxu1 %v3814_v24  ;;  %v3758_v36 = vld [vmem:[%s5323_s0 + $0x78] ss:$20 sps:$4 sm:$0xff]   ;;  %v3773_v38 = vld [vmem:[%s5322_s1 + $0xb0] sm:$0xff]   ;;  %v3829_v41 = vld [vmem:[%s5323_s0 + $0x88] ss:$20 sps:$4 sm:$0xff]  }
   0xe   :  { %941 = vmatpush1.bf16.msra.mxu0 %v3731_v4  ;;  %v3760_v37 = vld [vmem:[%s5323_s0 + $0xa4] ss:$20 sps:$4 sm:$0xff]   ;;  %v3762_v42 = vld [vmem:[%s5323_s0 + $0xa0] ss:$20 sps:$4 sm:$0xff]   ;;  %v3786_v45 = vld [vmem:[%s5322_s1 + $0xc8] sm:$0xff]  }
   0xf   :  { %942 = vmatprep.subr.bf16.mxu0 %v4130_v0  ;;  %v3778_v40 = vld [vmem:[%s5322_s1 + $0xb8] sm:$0xff]   ;;  %v3764_v43 = vld [vmem:[%s5323_s0 + $0xcc] ss:$20 sps:$4 sm:$0xff]   ;;  %v3768_v47 = vld [vmem:[%s5323_s0 + $0xf4] ss:$20 sps:$4 sm:$0xff]  }
  0x10   :  { %3594 = vmatpush3.bf16.msra.mxu1 %v3814_v24  ;;  %v3782_v44 = vld [vmem:[%s5322_s1 + $0xc0] sm:$0xff]   ;;  %v3766_v46 = vld [vmem:[%s5323_s0 + $0xc8] ss:$20 sps:$4 sm:$0xff]   ;;  %v3790_v48 = vld [vmem:[%s5322_s1 + $0xd0] sm:$0xff]  }
  0x11   :  { %3595 = vmatprep.subr.bf16.mxu1 %v3817_v28  ;;  %v3834_v49 = vld [vmem:[%s5323_s0 + $0xb0] ss:$20 sps:$4 sm:$0xff]   ;;  %v3794_v50 = vld [vmem:[%s5322_s1 + $0xd8] sm:$0xff]   ;;  %v3802_v55 = vld [vmem:[%s5322_s1 + $0xe8] sm:$0xff]  }
  0x12   :  { %943 = vmatpush1.bf16.msra.mxu0 %v3732_v5  ;;  %v3837_v51 = vld [vmem:[%s5323_s0 + $0xd8] ss:$20 sps:$4 sm:$0xff]   ;;  %v3770_v52 = vld [vmem:[%s5323_s0 + $0xf0] ss:$20 sps:$4 sm:$0xff]   ;;  %v3842_v59 = vld [vmem:[%s5323_s0 + $0x100] ss:$20 sps:$4 sm:$0xff]  }
  0x13   :  { %944 = vmatprep.subr.bf16.mxu0 %v4130_v0  ;;  %v3771_v53 = vld [vmem:[%s5323_s0 + $0x11c] ss:$20 sps:$4 sm:$0xff]   ;;  %v3798_v54 = vld [vmem:[%s5322_s1 + $0xe0] sm:$0xff]   ;;  %v3774_v56 = vld [vmem:[%s5323_s0 + $0x118] ss:$20 sps:$4 sm:$0xff]  }
  0x14   :  { %3596 = vmatpush3.bf16.msra.mxu1 %v3817_v28  ;;  %v3775_v57 = vld [vmem:[%s5323_s0 + $0x144] ss:$20 sps:$4 sm:$0xff]   ;;  %v3808_v58 = vld [vmem:[%s5322_s1 + $0xf0] sm:$0xff]   ;;  %v3845_v61 = vld [vmem:[%s5323_s0 + $0x128] ss:$20 sps:$4 sm:$0xff]  }
  0x15   :  { %v3816_v60 = vld [vmem:[%s5322_s1 + $0xf8] sm:$0xff]   ;;  %v3777_v62 = vld [vmem:[%s5323_s0 + $0x140] ss:$20 sps:$4 sm:$0xff]   ;;  %v3850_v3 = vld [vmem:[%s5323_s0 + $0x150] ss:$20 sps:$4 sm:$0xff]  }
  0x16   :  { %945 = vmatpush1.bf16.msra.mxu0 %v3733_v7  ;;  %v3779_v63 = vld [vmem:[%s5323_s0 + $0x16c] ss:$20 sps:$4 sm:$0xff]   ;;  %v3781_v1 = vld [vmem:[%s5323_s0 + $0x168] ss:$20 sps:$4 sm:$0xff]   ;;  %v3785_v5 = vld [vmem:[%s5323_s0 + $0x190] ss:$20 sps:$4 sm:$0xff]  }
  0x17   :  { %946 = vmatprep.subr.bf16.mxu0 %v4130_v0  ;;  %3598 = vmatmul.mubr.msk.bf16.vlgmr.msra.gmra.mrb[0].mxu1 %vm879_vm0, %v3822_v31  ;;  %v3783_v2 = vld [vmem:[%s5323_s0 + $0x194] ss:$20 sps:$4 sm:$0xff]   ;;  %v3853_v4 = vld [vmem:[%s5323_s0 + $0x178] ss:$20 sps:$4 sm:$0xff]   ;;  %v3787_v6 = vld [vmem:[%s5323_s0 + $0x1bc] ss:$20 sps:$4 sm:$0xff]  }
  0x18   :  { %3601 = vmatprep.mubr.msk.bf16.mxu1 %vm879_vm0, %v3826_v39  ;;  %v3789_v7 = vld [vmem:[%s5323_s0 + $0x1b8] ss:$20 sps:$4 sm:$0xff]   ;;  %v3803_v18 = vld [vmem:[%s5323_s0 + $0x25c] ss:$20 sps:$4 sm:$0xff]  }
  0x19   :  { %v3875_v22 = vld [vmem:[%s5323_s0 + $0x268] ss:$20 sps:$4 sm:$0xff]   ;;  %v3812_v24 = vld [vmem:[%s5323_s0 + $0x2ac] ss:$20 sps:$4 sm:$0xff]   ;;  %v3825_v31 = vld [vmem:[%s5323_s0 + $0x30] ss:$20 sps:$4 sm:$0xff]  }
  0x1a   :  { %947 = vmatpush1.bf16.msra.mxu0 %v3734_v8  ;;  %v3791_v8 = vld [vmem:[%s5323_s0 + $0x1e4] ss:$20 sps:$4 sm:$0xff]   ;;  %v3819_v29 = vld [vmem:[%s5323_s0 + $0x8] ss:$20 sps:$4 sm:$0xff]  }
  0x1b   :  { %948 = vmatprep.subr.bf16.mxu0 %v4130_v0  ;;  %v3885_v28 = vld [vmem:[%s5323_s0 + $0x2b8] ss:$20 sps:$4 sm:$0xff]   ;;  %v3841_v39 = vld [vmem:[%s5323_s0 + $0xd0] ss:$20 sps:$4 sm:$0xff]  }
  0x1e   :  { %949 = vmatpush1.bf16.msra.mxu0 %v3735_v9  ;;  %v3858_v9 = vld [vmem:[%s5323_s0 + $0x1a0] ss:$20 sps:$4 sm:$0xff]  }
  0x1f   :  { %950 = vmatprep.subr.bf16.mxu0 %v4130_v0  ;;  %3602 = vmatmul.mubr.msk.bf16.gmra.mrb[4].mxu1 %vm879_vm0, %v3829_v41  ;;  %v3846_v41 = vld [vmem:[%s5323_s0 + $0xf8] ss:$20 sps:$4 sm:$0xff]  }
  0x20   :  { %3605 = vmatprep.mubr.msk.bf16.mxu1 %vm879_vm0, %v3834_v49  ;;  %v3862_v49 = vld [vmem:[%s5323_s0 + $0x198] ss:$20 sps:$4 sm:$0xff]  }
  0x22   :  { %951 = vmatpush1.bf16.msra.mxu0 %v3736_v10  ;;  %v3861_v10 = vld [vmem:[%s5323_s0 + $0x1c8] ss:$20 sps:$4 sm:$0xff]  }
  0x23   :  { %952 = vmatprep.subr.bf16.mxu0 %v4130_v0 }
  0x26   :  { %953 = vmatpush1.bf16.msra.mxu0 %v3737_v11  ;;  %v3793_v11 = vld [vmem:[%s5323_s0 + $0x1e0] ss:$20 sps:$4 sm:$0xff]  }
  0x27   :  { %954 = vmatprep.subr.bf16.mxu0 %v4130_v0  ;;  %3606 = vmatmul.mubr.msk.bf16.gmra.mrb[8].mxu1 %vm879_vm0, %v3837_v51 }
  0x28   :  { %3609 = vmatprep.mubr.msk.bf16.mxu1 %vm879_vm0, %v3842_v59 }
  0x2a   :  { %955 = vmatpush1.bf16.msra.mxu0 %v3738_v12  ;;  %v3795_v12 = vld [vmem:[%s5323_s0 + $0x20c] ss:$20 sps:$4 sm:$0xff]  }
  0x2b   :  { %956 = vmatprep.subr.bf16.mxu0 %v4130_v0 }
  0x2e   :  { %957 = vmatpush1.bf16.msra.mxu0 %v3739_v13  ;;  %v3797_v13 = vld [vmem:[%s5323_s0 + $0x208] ss:$20 sps:$4 sm:$0xff]  }
  0x2f   :  { %958 = vmatprep.subr.bf16.mxu0 %v4130_v0  ;;  %3610 = vmatmul.mubr.msk.bf16.gmra.mrb[12].mxu1 %vm879_vm0, %v3845_v61  ;;  %v3873_v61 = vld [vmem:[%s5323_s0 + $0x210] ss:$20 sps:$4 sm:$0xff]  }
  0x30   :  { %3613 = vmatprep.mubr.msk.bf16.mxu1 %vm879_vm0, %v3850_v3  ;;  %v3879_v3 = vld [vmem:[%s5323_s0 + $0x264] ss:$20 sps:$4 sm:$0xff]  }
  0x32   :  { %959 = vmatpush1.bf16.msra.mxu0 %v3740_v14  ;;  %v3799_v14 = vld [vmem:[%s5323_s0 + $0x234] ss:$20 sps:$4 sm:$0xff]  }
  0x33   :  { %960 = vmatprep.subr.bf16.mxu0 %v4130_v0 }
  0x36   :  { %961 = vmatpush1.bf16.msra.mxu0 %v3741_v15  ;;  %v3866_v15 = vld [vmem:[%s5323_s0 + $0x1f0] ss:$20 sps:$4 sm:$0xff]  }
  0x37   :  { %962 = vmatprep.subr.bf16.mxu0 %v4130_v0  ;;  %3614 = vmatmul.mubr.msk.bf16.gmra.mrb[16].mxu1 %vm879_vm0, %v3853_v4 }
  0x38   :  { %3617 = vmatprep.mubr.msk.bf16.mxu1 %vm879_vm0, %v3858_v9 }
  0x3a   :  { %963 = vmatpush1.bf16.msra.mxu0 %v3742_v16  ;;  %v3869_v16 = vld [vmem:[%s5323_s0 + $0x218] ss:$20 sps:$4 sm:$0xff]  }
  0x3b   :  { %964 = vmatprep.subr.bf16.mxu0 %v4130_v0 }
  0x3e   :  { %965 = vmatpush1.bf16.msra.mxu0 %v3743_v17  ;;  %v3801_v17 = vld [vmem:[%s5323_s0 + $0x230] ss:$20 sps:$4 sm:$0xff]  }
  0x3f   :  { %1111 = vmatprep.subr.bf16.mxu0 %v4130_v0  ;;  %3618 = vmatmul.mubr.msk.bf16.gmra.mrb[20].mxu1 %vm879_vm0, %v3861_v10  ;;  %v3886_v10 = vld [vmem:[%s5323_s0 + $0x288] ss:$20 sps:$4 sm:$0xff]  }
  0x40   :  { %3621 = vmatprep.mubr.msk.bf16.mxu1 %vm879_vm0, %v3866_v15 }
  0x41   :  { %967 = vmatmul.mubr.bf16.vlgmr.msra.gmra.mrb[0].mxu0 %v3744_v19  ;;  %v3805_v19 = vld [vmem:[%s5323_s0 + $0x258] ss:$20 sps:$4 sm:$0xff]  }
  0x42   :  { %1112 = vmatpush1.bf16.msra.mxu0 %v3747_v20  ;;  %974 = vmatprep.mubr.bf16.mxu0 %v3748_v21  ;;  %v3806_v20 = vld [vmem:[%s5323_s0 + $0x284] ss:$20 sps:$4 sm:$0xff]   ;;  %v3874_v21 = vld [vmem:[%s5323_s0 + $0x240] ss:$20 sps:$4 sm:$0xff]  }
  0x43   :  { %1113 = vmatprep.subr.bf16.mxu0 %v4130_v0 }
  0x46   :  { %1114 = vmatpush1.bf16.msra.mxu0 %v3751_v23  ;;  %v3810_v23 = vld [vmem:[%s5323_s0 + $0x280] ss:$20 sps:$4 sm:$0xff]  }
  0x47   :  { %1115 = vmatprep.subr.bf16.mxu0 %v4130_v0  ;;  %3622 = vmatmul.mubr.msk.bf16.gmra.mrb[24].mxu1 %vm879_vm0, %v3869_v16 }
  0x48   :  { %3625 = vmatprep.mubr.msk.bf16.mxu1 %vm879_vm0, %v3874_v21 }
  0x49   :  { %975 = vmatmul.mubr.bf16.gmra.mrb[4].mxu0 %v3750_v25  ;;  %v3815_v25 = vld [vmem:[%s5323_s0 + $0x2a8] ss:$20 sps:$4 sm:$0xff]  }
  0x4a   :  { %982 = vmatprep.mubr.bf16.mxu0 %v3752_v26  ;;  %1116 = vmatpush1.bf16.msra.mxu0 %v3755_v27  ;;  %v3821_v26 = vld [vmem:[%s5323_s0 + $0xc] ss:$20 sps:$4 sm:$0xff]   ;;  %v3882_v27 = vld [vmem:[%s5323_s0 + $0x290] ss:$20 sps:$4 sm:$0xff]  }
  0x4b   :  { %1117 = vmatprep.subr.bf16.mxu0 %v4130_v0 }
  0x4e   :  { %1118 = vmatpush1.bf16.msra.mxu0 %v3759_v30  ;;  %v3823_v30 = vld [vmem:[%s5323_s0 + $0x34] ss:$20 sps:$4 sm:$0xff]  }
  0x4f   :  { %1119 = vmatprep.subr.bf16.mxu0 %v4130_v0  ;;  %3626 = vmatmul.mubr.msk.bf16.gmra.mrb[28].mxu1 %vm879_vm0, %v3875_v22 }
  0x50   :  { %3629 = vmatprep.mubr.msk.bf16.mxu1 %vm879_vm0, %v3882_v27  ;;  %v3899_v27 = vld [vmem:[%s5324_s3 + $0xb0] ss:$8 sps:$4 sm:$0xff]  }
  0x51   :  { %983 = vmatmul.mubr.bf16.gmra.mrb[8].mxu0 %v3754_v32  ;;  %v3827_v32 = vld [vmem:[%s5323_s0 + $0x5c] ss:$20 sps:$4 sm:$0xff]  }
  0x52   :  { %990 = vmatprep.mubr.bf16.mxu0 %v3756_v33  ;;  %1120 = vmatpush1.bf16.msra.mxu0 %v3763_v34  ;;  %v3830_v33 = vld [vmem:[%s5323_s0 + $0x58] ss:$20 sps:$4 sm:$0xff]  }
  0x53   :  { %1121 = vmatprep.subr.bf16.mxu0 %v4130_v0  ;;  %v3831_v34 = vld [vmem:[%s5323_s0 + $0x84] ss:$20 sps:$4 sm:$0xff]  }
  0x56   :  { %1122 = vmatpush1.bf16.msra.mxu0 %v3767_v35  ;;  %v3833_v35 = vld [vmem:[%s5323_s0 + $0x80] ss:$20 sps:$4 sm:$0xff]  }
  0x57   :  { %1123 = vmatprep.subr.bf16.mxu0 %v4130_v0  ;;  %3630 = vmatmul.mubr.msk.bf16.gmra.mrb[32].mxu1 %vm879_vm0, %v3885_v28  ;;  %v3901_v28 = vld [vmem:[%s5324_s3 + $0xb4] ss:$8 sps:$4 sm:$0xff]  }
  0x58   :  { %1671 = vmatprep.mubr.bf16.mxu1 %v4130_v0 }
  0x59   :  { %991 = vmatmul.mubr.bf16.gmra.mrb[12].mxu0 %v3758_v36  ;;  %v3835_v36 = vld [vmem:[%s5323_s0 + $0xac] ss:$20 sps:$4 sm:$0xff]  }
  0x5a   :  { %998 = vmatprep.mubr.bf16.mxu0 %v3760_v37  ;;  %1124 = vmatpush1.bf16.msra.mxu0 %v3773_v38  ;;  %v3838_v37 = vld [vmem:[%s5323_s0 + $0xa8] ss:$20 sps:$4 sm:$0xff]  }
  0x5b   :  { %1125 = vmatprep.subr.bf16.mxu0 %v4130_v0  ;;  %v3839_v38 = vld [vmem:[%s5323_s0 + $0xd4] ss:$20 sps:$4 sm:$0xff]  }
  0x5e   :  { %1126 = vmatpush1.bf16.msra.mxu0 %v3778_v40  ;;  %v3843_v40 = vld [vmem:[%s5323_s0 + $0xfc] ss:$20 sps:$4 sm:$0xff]  }
  0x5f   :  { %1127 = vmatprep.subr.bf16.mxu0 %v4130_v0 }
  0x61   :  { %999 = vmatmul.mubr.bf16.gmra.mrb[16].mxu0 %v3762_v42  ;;  %v3847_v42 = vld [vmem:[%s5323_s0 + $0x124] ss:$20 sps:$4 sm:$0xff]  }
  0x62   :  { %1006 = vmatprep.mubr.bf16.mxu0 %v3764_v43  ;;  %1128 = vmatpush1.bf16.msra.mxu0 %v3782_v44  ;;  %v3849_v43 = vld [vmem:[%s5323_s0 + $0x120] ss:$20 sps:$4 sm:$0xff]  }
  0x63   :  { %1129 = vmatprep.subr.bf16.mxu0 %v4130_v0  ;;  %v3851_v44 = vld [vmem:[%s5323_s0 + $0x14c] ss:$20 sps:$4 sm:$0xff]  }
  0x66   :  { %1130 = vmatpush1.bf16.msra.mxu0 %v3786_v45  ;;  %v3854_v45 = vld [vmem:[%s5323_s0 + $0x148] ss:$20 sps:$4 sm:$0xff]  }
  0x67   :  { %1131 = vmatprep.subr.bf16.mxu0 %v4130_v0 }
  0x69   :  { %1007 = vmatmul.mubr.bf16.gmra.mrb[20].mxu0 %v3766_v46  ;;  %v3855_v46 = vld [vmem:[%s5323_s0 + $0x174] ss:$20 sps:$4 sm:$0xff]  }
  0x6a   :  { %1014 = vmatprep.mubr.bf16.mxu0 %v3768_v47  ;;  %1132 = vmatpush1.bf16.msra.mxu0 %v3790_v48  ;;  %v3857_v47 = vld [vmem:[%s5323_s0 + $0x170] ss:$20 sps:$4 sm:$0xff]  }
  0x6b   :  { %1133 = vmatprep.subr.bf16.mxu0 %v4130_v0  ;;  %v3859_v48 = vld [vmem:[%s5323_s0 + $0x19c] ss:$20 sps:$4 sm:$0xff]  }
  0x6e   :  { %1134 = vmatpush1.bf16.msra.mxu0 %v3794_v50  ;;  %v3863_v50 = vld [vmem:[%s5323_s0 + $0x1c4] ss:$20 sps:$4 sm:$0xff]  }
  0x6f   :  { %1135 = vmatprep.subr.bf16.mxu0 %v4130_v0 }
  0x71   :  { %1015 = vmatmul.mubr.bf16.gmra.mrb[24].mxu0 %v3770_v52 }
  0x72   :  { %1022 = vmatprep.mubr.bf16.mxu0 %v3771_v53  ;;  %1136 = vmatpush1.bf16.msra.mxu0 %v3798_v54  ;;  %v3865_v53 = vld [vmem:[%s5323_s0 + $0x1c0] ss:$20 sps:$4 sm:$0xff]  }
  0x73   :  { %1137 = vmatprep.subr.bf16.mxu0 %v4130_v0 }
  0x76   :  { %1138 = vmatpush1.bf16.msra.mxu0 %v3802_v55  ;;  %v3867_v55 = vld [vmem:[%s5323_s0 + $0x1ec] ss:$20 sps:$4 sm:$0xff]  }
  0x77   :  { %1139 = vmatprep.subr.bf16.mxu0 %v4130_v0 }
  0x79   :  { %1023 = vmatmul.mubr.bf16.gmra.mrb[28].mxu0 %v3774_v56 }
  0x7a   :  { %1030 = vmatprep.mubr.bf16.mxu0 %v3775_v57  ;;  %1140 = vmatpush1.bf16.msra.mxu0 %v3808_v58  ;;  %v3870_v57 = vld [vmem:[%s5323_s0 + $0x1e8] ss:$20 sps:$4 sm:$0xff]  }
  0x7b   :  { %1141 = vmatprep.subr.bf16.mxu0 %v4130_v0  ;;  %v3871_v58 = vld [vmem:[%s5323_s0 + $0x214] ss:$20 sps:$4 sm:$0xff]  }
  0x7e   :  { %1142 = vmatpush1.bf16.msra.mxu0 %v3816_v60 }
  0x81   :  { %1031 = vmatmul.mubr.bf16.gmra.mrb[32].mxu0 %v3777_v62 }
  0x82   :  { %1038 = vmatprep.mubr.bf16.mxu0 %v3779_v63  ;;  %v3876_v63 = vld [vmem:[%s5323_s0 + $0x23c] ss:$20 sps:$4 sm:$0xff]  }
  0x89   :  { %1039 = vmatmul.mubr.bf16.gmra.mrb[36].mxu0 %v3781_v1 }
  0x8a   :  { %1046 = vmatprep.mubr.bf16.mxu0 %v3783_v2  ;;  %v3878_v2 = vld [vmem:[%s5323_s0 + $0x238] ss:$20 sps:$4 sm:$0xff]  }
  0x91   :  { %1047 = vmatmul.mubr.bf16.gmra.mrb[40].mxu0 %v3785_v5 }
  0x92   :  { %1054 = vmatprep.mubr.bf16.mxu0 %v3787_v6  ;;  %v3881_v6 = vld [vmem:[%s5323_s0 + $0x260] ss:$20 sps:$4 sm:$0xff]  }
  0x99   :  { %1055 = vmatmul.mubr.bf16.gmra.mrb[44].mxu0 %v3789_v7 }
  0x9a   :  { %1062 = vmatprep.mubr.bf16.mxu0 %v3791_v8  ;;  %v3883_v8 = vld [vmem:[%s5323_s0 + $0x28c] ss:$20 sps:$4 sm:$0xff]  }
  0xa1   :  { %1063 = vmatmul.mubr.bf16.gmra.mrb[48].mxu0 %v3793_v11  ;;  %v3887_v11 = vld [vmem:[%s5323_s0 + $0x2b4] ss:$20 sps:$4 sm:$0xff]  }
  0xa2   :  { %1070 = vmatprep.mubr.bf16.mxu0 %v3795_v12 }
  0xa9   :  { %1071 = vmatmul.mubr.bf16.gmra.mrb[52].mxu0 %v3797_v13 }
  0xaa   :  { %1078 = vmatprep.mubr.bf16.mxu0 %v3799_v14  ;;  %v3889_v14 = vld [vmem:[%s5323_s0 + $0x2b0] ss:$20 sps:$4 sm:$0xff]  }
  0xb1   :  { %1079 = vmatmul.mubr.bf16.gmra.mrb[56].mxu0 %v3801_v17  ;;  %v3890_v17 = vld [vmem:[%s5324_s3 + $0x80] ss:$8 sps:$4 sm:$0xff]  }
  0xb2   :  { %1086 = vmatprep.mubr.bf16.mxu0 %v3803_v18  ;;  %v3892_v18 = vld [vmem:[%s5324_s3 + $0x84] ss:$8 sps:$4 sm:$0xff]  }
  0xb3   :  { %1639 = vmatprep.subr.bf16.mxu1 %v3892_v18 }
  0xb4   :  { %1640 = vmatpush1.bf16.msra.mxu1 %v3890_v17 }
  0xb9   :  { %1087 = vmatmul.mubr.bf16.gmra.mrb[60].mxu0 %v3805_v19  ;;  %v3893_v19 = vld [vmem:[%s5324_s3 + $0x90] ss:$8 sps:$4 sm:$0xff]  }
  0xba   :  { %1094 = vmatprep.mubr.bf16.mxu0 %v3806_v20  ;;  %v3895_v20 = vld [vmem:[%s5324_s3 + $0x94] ss:$8 sps:$4 sm:$0xff]  }
  0xbb   :  { %1641 = vmatprep.subr.bf16.mxu1 %v3895_v20 }
  0xbc   :  { %1642 = vmatpush1.bf16.msra.mxu1 %v3893_v19 }
  0xc1   :  { %1095 = vmatmul.mubr.bf16.gmra.mrb[64].mxu0 %v3810_v23 }
  0xc2   :  { %1102 = vmatprep.mubr.bf16.mxu0 %v3812_v24 }
  0xc9   :  { %1103 = vmatmul.mubr.bf16.gmra.mrb[68].mxu0 %v3815_v25  ;;  %v3896_v25 = vld [vmem:[%s5324_s3 + $0xa0] ss:$8 sps:$4 sm:$0xff]  }
  0xca   :  { %1143 = vmatprep.mubr.bf16.mxu0 %v3821_v26  ;;  %v3898_v26 = vld [vmem:[%s5324_s3 + $0xa4] ss:$8 sps:$4 sm:$0xff]  }
  0xcb   :  { %1643 = vmatprep.subr.bf16.mxu1 %v3898_v26 }
  0xcc   :  { %1644 = vmatpush1.bf16.msra.mxu1 %v3896_v25 }
  0xcd   :  { %1645 = vmatprep.subr.bf16.mxu1 %v3901_v28 }
  0xd0   :  { %1646 = vmatpush1.bf16.msra.mxu1 %v3899_v27 }
  0xd1   :  { %1144 = vmatmul.mubr.bf16.vlgmr.msra.gmra.mrb[0].mxu0 %v3819_v29 }
  0xd2   :  { %1151 = vmatprep.mubr.bf16.mxu0 %v3823_v30 }
  0xd9   :  { %1152 = vmatmul.mubr.bf16.gmra.mrb[4].mxu0 %v3825_v31 }
  0xda   :  { %1159 = vmatprep.mubr.bf16.mxu0 %v3827_v32 }
  0xe1   :  { %1160 = vmatmul.mubr.bf16.gmra.mrb[8].mxu0 %v3830_v33  ;;  %v3902_v33 = vld [vmem:[%s5324_s3 + $0xc0] ss:$8 sps:$4 sm:$0xff]  }
  0xe2   :  { %1167 = vmatprep.mubr.bf16.mxu0 %v3831_v34  ;;  %v3904_v34 = vld [vmem:[%s5324_s3 + $0xc4] ss:$8 sps:$4 sm:$0xff]  }
  0xe3   :  { %1647 = vmatprep.subr.bf16.mxu1 %v3904_v34 }
  0xe4   :  { %1648 = vmatpush1.bf16.msra.mxu1 %v3902_v33 }
  0xe9   :  { %1168 = vmatmul.mubr.bf16.gmra.mrb[12].mxu0 %v3833_v35 }
  0xea   :  { %1175 = vmatprep.mubr.bf16.mxu0 %v3835_v36  ;;  %v4573_v51 = vpop.f32.mrb[0].mxu1 }
  0xeb   :  { %v4575_v52 = vpop.f32.mrb[1].mxu1 }
  0xec   :  { %v4580_v54 = vpop.f32.mrb[2].mxu1 }
  0xed   :  { %v4585_v56 = vpop.f32.mrb[3].mxu1 }
  0xf1   :  { %1176 = vmatmul.mubr.bf16.gmra.mrb[16].mxu0 %v3838_v37 }
  0xf2   :  { %1183 = vmatprep.mubr.bf16.mxu0 %v3839_v38  ;;  %v4593_v59 = vpop.f32.mrb[4].mxu1 }
  0xf3   :  { %v4595_v60 = vpop.f32.mrb[5].mxu1 }
  0xf4   :  { %v4600_v62 = vpop.f32.mrb[6].mxu1 }
  0xf5   :  { %v4605_v1 = vpop.f32.mrb[7].mxu1 }
  0xf9   :  { %1184 = vmatmul.mubr.bf16.gmra.mrb[20].mxu0 %v3841_v39  ;;  %v3905_v39 = vld [vmem:[%s5324_s3 + $0xd0] ss:$8 sps:$4 sm:$0xff]  }
  0xfa   :  { %1191 = vmatprep.mubr.bf16.mxu0 %v3843_v40  ;;  %v4613_v4 = vpop.f32.mrb[8].mxu1  ;;  %v3907_v40 = vld [vmem:[%s5324_s3 + $0xd4] ss:$8 sps:$4 sm:$0xff]  }
  0xfb   :  { %v4615_v5 = vpop.f32.mrb[9].mxu1  ;;  %1649 = vmatprep.subr.bf16.mxu1 %v3907_v40 }
  0xfc   :  { %v4620_v7 = vpop.f32.mrb[10].mxu1  ;;  %1650 = vmatpush1.bf16.msra.mxu1 %v3905_v39 }
  0xfd   :  { %v4625_v9 = vpop.f32.mrb[11].mxu1 }
 0x101   :  { %1192 = vmatmul.mubr.bf16.gmra.mrb[24].mxu0 %v3846_v41  ;;  %v3908_v41 = vld [vmem:[%s5324_s3 + $0xe0] ss:$8 sps:$4 sm:$0xff]  }
 0x102   :  { %1199 = vmatprep.mubr.bf16.mxu0 %v3847_v42  ;;  %v4633_v12 = vpop.f32.mrb[12].mxu1  ;;  %v3910_v42 = vld [vmem:[%s5324_s3 + $0xe4] ss:$8 sps:$4 sm:$0xff]  }
 0x103   :  { %v4635_v13 = vpop.f32.mrb[13].mxu1  ;;  %1651 = vmatprep.subr.bf16.mxu1 %v3910_v42 }
 0x104   :  { %v4640_v15 = vpop.f32.mrb[14].mxu1  ;;  %1652 = vmatpush1.bf16.msra.mxu1 %v3908_v41 }
 0x105   :  { %v4642_v16 = vpop.f32.mrb[15].mxu1 }
 0x109   :  { %1200 = vmatmul.mubr.bf16.gmra.mrb[28].mxu0 %v3849_v43 }
 0x10a   :  { %1207 = vmatprep.mubr.bf16.mxu0 %v3851_v44  ;;  %v4656_v21 = vpop.f32.mrb[16].mxu1 }
 0x10b   :  { %v4658_v22 = vpop.f32.mrb[17].mxu1 }
 0x10c   :  { %v4660_v23 = vpop.f32.mrb[18].mxu1 }
 0x10d   :  { %v4662_v24 = vpop.f32.mrb[19].mxu1 }
 0x111   :  { %1208 = vmatmul.mubr.bf16.gmra.mrb[32].mxu0 %v3854_v45 }
 0x112   :  { %1215 = vmatprep.mubr.bf16.mxu0 %v3855_v46  ;;  %v4676_v29 = vpop.f32.mrb[20].mxu1 }
 0x113   :  { %v4678_v30 = vpop.f32.mrb[21].mxu1 }
 0x114   :  { %v4680_v31 = vpop.f32.mrb[22].mxu1 }
 0x115   :  { %v4682_v32 = vpop.f32.mrb[23].mxu1 }
 0x119   :  { %1216 = vmatmul.mubr.bf16.gmra.mrb[36].mxu0 %v3857_v47  ;;  %v3913_v47 = vld [vmem:[%s5324_s3 + $0xf4] ss:$8 sps:$4 sm:$0xff]  }
 0x11a   :  { %1223 = vmatprep.mubr.bf16.mxu0 %v3859_v48  ;;  %v4690_v35 = vpop.f32.mrb[24].mxu1  ;;  %v3911_v48 = vld [vmem:[%s5324_s3 + $0xf0] ss:$8 sps:$4 sm:$0xff]   ;;  %1653 = vmatprep.subr.bf16.mxu1 %v3913_v47 }
 0x11b   :  { %v4692_v36 = vpop.f32.mrb[25].mxu1  ;;  %1654 = vmatpush1.bf16.msra.mxu1 %v3911_v48 }
 0x11c   :  { %v4694_v37 = vpop.f32.mrb[26].mxu1 }
 0x11d   :  { %v4696_v38 = vpop.f32.mrb[27].mxu1 }
 0x121   :  { %1224 = vmatmul.mubr.bf16.gmra.mrb[40].mxu0 %v3862_v49  ;;  %v3916_v49 = vld [vmem:[%s5324_s3 + $0x4] ss:$8 sps:$4 sm:$0xff]  }
 0x122   :  { %1231 = vmatprep.mubr.bf16.mxu0 %v3863_v50  ;;  %v4710_v43 = vpop.f32.mrb[28].mxu1  ;;  %1760 = vmatprep.subr.bf16.mxu1 %v3916_v49 }
 0x123   :  { %v4712_v44 = vpop.f32.mrb[29].mxu1 }
 0x124   :  { %v4714_v45 = vpop.f32.mrb[30].mxu1 }
 0x125   :  { %v4716_v46 = vpop.f32.mrb[31].mxu1 }
 0x129   :  { %1232 = vmatmul.mubr.bf16.gmra.mrb[44].mxu0 %v3865_v53 }
 0x12a   :  { %1239 = vmatprep.mubr.bf16.mxu0 %v3867_v55  ;;  %v4727_v53 = vpop.f32.mrb[32].mxu1 }
 0x131   :  { %1240 = vmatmul.mubr.bf16.gmra.mrb[48].mxu0 %v3870_v57 }
 0x132   :  { %1247 = vmatprep.mubr.bf16.mxu0 %v3871_v58  ;;  %v4732_v58 = vpop.f32.mrb[33].mxu1 }
 0x139   :  { %1248 = vmatmul.mubr.bf16.gmra.mrb[52].mxu0 %v3873_v61 }
 0x13a   :  { %1255 = vmatprep.mubr.bf16.mxu0 %v3876_v63  ;;  %v4734_v63 = vpop.f32.mrb[34].mxu1 }
 0x141   :  { %1256 = vmatmul.mubr.bf16.gmra.mrb[56].mxu0 %v3878_v2 }
 0x142   :  { %1263 = vmatprep.mubr.bf16.mxu0 %v3879_v3 }
 0x149   :  { %1264 = vmatmul.mubr.bf16.gmra.mrb[60].mxu0 %v3881_v6  ;;  %v4739_v6 = vpop.f32.mrb[35].mxu1 }
 0x14a   :  { %1271 = vmatprep.mubr.bf16.mxu0 %v3883_v8 }
 0x151   :  { %1272 = vmatmul.mubr.bf16.gmra.mrb[64].mxu0 %v3886_v10 }
 0x152   :  { %1279 = vmatprep.mubr.bf16.mxu0 %v3887_v11 }
 0x159   :  { %1280 = vmatmul.mubr.bf16.gmra.mrb[68].mxu0 %v3889_v14 }
 0x1a4   :  { %v1145_v50 = vpop.f32.mrb[0].mxu0 }
 0x1a5   :  { %v4730_v55 = vadd.f32 %v4575_v52, %v1145_v50  ;;  %v1147_v57 = vpop.f32.mrb[1].mxu0 }
 0x1a6   :  { %v1148_v61 = vpop.f32.mrb[2].mxu0 }
 0x1a7   :  { %v4737_v2 = vadd.f32 %v4585_v56, %v1148_v61  ;;  %v1150_v3 = vpop.f32.mrb[3].mxu0 }
 0x1ac   :  { %v1153_v8 = vpop.f32.mrb[4].mxu0 }
 0x1ad   :  { %v4742_v10 = vadd.f32 %v4573_v51, %v1153_v8  ;;  %v1155_v11 = vpop.f32.mrb[5].mxu0 }
 0x1ae   :  { %v1156_v14 = vpop.f32.mrb[6].mxu0 }
 0x1af   :  { %v4745_v52 = vadd.f32 %v4580_v54, %v1156_v14  ;;  %v1158_v17 = vpop.f32.mrb[7].mxu0 }
 0x1b4   :  { %v1161_v18 = vpop.f32.mrb[8].mxu0 }
 0x1b5   :  { %v4748_v19 = vadd.f32 %v4595_v60, %v1161_v18  ;;  %v1163_v20 = vpop.f32.mrb[9].mxu0 }
 0x1b6   :  { %v1164_v56 = vpop.f32.mrb[10].mxu0 }
 0x1b7   :  { %v4751_v25 = vadd.f32 %v4605_v1, %v1164_v56  ;;  %v1166_v26 = vpop.f32.mrb[11].mxu0 }
 0x1bc   :  { %v1169_v27 = vpop.f32.mrb[12].mxu0 }
 0x1bd   :  { %v4754_v51 = vadd.f32 %v4593_v59, %v1169_v27  ;;  %v1171_v28 = vpop.f32.mrb[13].mxu0 }
 0x1be   :  { %v1172_v33 = vpop.f32.mrb[14].mxu0 }
 0x1bf   :  { %v4757_v54 = vadd.f32 %v4600_v62, %v1172_v33  ;;  %v1174_v34 = vpop.f32.mrb[15].mxu0 }
 0x1c4   :  { %v1177_v39 = vpop.f32.mrb[16].mxu0 }
 0x1c5   :  { %v4760_v60 = vadd.f32 %v4615_v5, %v1177_v39  ;;  %v1179_v40 = vpop.f32.mrb[17].mxu0 }
 0x1c6   :  { %v1180_v41 = vpop.f32.mrb[18].mxu0 }
 0x1c7   :  { %v1358_v1 = vadd.f32 %v4625_v9, %v1180_v41  ;;  %v1182_v42 = vpop.f32.mrb[19].mxu0 }
 0x1c9   :  { %v1465_v47 = vmax.f32 %v4730_v55, %v1358_v1 }
 0x1cc   :  { %v1185_v48 = vpop.f32.mrb[20].mxu0 }
 0x1cd   :  { %v1363_v59 = vadd.f32 %v4613_v4, %v1185_v48  ;;  %v1187_v49 = vpop.f32.mrb[21].mxu0 }
 0x1ce   :  { %v1188_v50 = vpop.f32.mrb[22].mxu0 }
 0x1cf   :  { %v1468_v62 = vmax.f32 %v4737_v2, %v1363_v59  ;;  %v1366_v57 = vadd.f32 %v4620_v7, %v1188_v50  ;;  %v1190_v61 = vpop.f32.mrb[23].mxu0 }
 0x1d1   :  { %v1471_v5 = vmax.f32 %v4742_v10, %v1366_v57 }
 0x1d4   :  { %v1193_v3 = vpop.f32.mrb[24].mxu0 }
 0x1d5   :  { %v1371_v8 = vadd.f32 %v4635_v13, %v1193_v3  ;;  %v1195_v11 = vpop.f32.mrb[25].mxu0 }
 0x1d6   :  { %v1196_v9 = vpop.f32.mrb[26].mxu0 }
 0x1d7   :  { %v1474_v14 = vmax.f32 %v4745_v52, %v1371_v8  ;;  %v1374_v55 = vadd.f32 %v4642_v16, %v1196_v9  ;;  %v1198_v17 = vpop.f32.mrb[27].mxu0 }
 0x1d9   :  { %v1477_v4 = vmax.f32 %v4748_v19, %v1374_v55 }
 0x1dc   :  { %v1201_v18 = vpop.f32.mrb[28].mxu0 }
 0x1dd   :  { %v1379_v2 = vadd.f32 %v4633_v12, %v1201_v18  ;;  %v1203_v20 = vpop.f32.mrb[29].mxu0 }
 0x1de   :  { %v1204_v7 = vpop.f32.mrb[30].mxu0 }
 0x1df   :  { %v1480_v56 = vmax.f32 %v4751_v25, %v1379_v2  ;;  %v1382_v10 = vadd.f32 %v4640_v15, %v1204_v7  ;;  %v1206_v26 = vpop.f32.mrb[31].mxu0 }
 0x1e1   :  { %v1483_v13 = vmax.f32 %v4754_v51, %v1382_v10 }
 0x1e4   :  { %v1209_v27 = vpop.f32.mrb[32].mxu0 }
 0x1e5   :  { %v1387_v52 = vadd.f32 %v4658_v22, %v1209_v27  ;;  %v1211_v28 = vpop.f32.mrb[33].mxu0 }
 0x1e6   :  { %v1212_v16 = vpop.f32.mrb[34].mxu0 }
 0x1e7   :  { %v1486_v33 = vmax.f32 %v4757_v54, %v1387_v52  ;;  %v1390_v19 = vadd.f32 %v4662_v24, %v1212_v16  ;;  %v1214_v34 = vpop.f32.mrb[35].mxu0  ;;  %v3237_v52 = vld [vmem:[%s5325_s2] ss:$0 sm:$0xff] }
 0x1e9   :  { %v1489_v12 = vmax.f32 %v4760_v60, %v1390_v19 }
 0x1ec   :  { %v1217_v39 = vpop.f32.mrb[36].mxu0 }
 0x1ed   :  { %v1395_v25 = vadd.f32 %v4656_v21, %v1217_v39  ;;  %v1219_v40 = vpop.f32.mrb[37].mxu0 }
 0x1ee   :  { %v1220_v15 = vpop.f32.mrb[38].mxu0 }
 0x1ef   :  { %v4781_v41 = vmax.f32 %v1465_v47, %v1395_v25  ;;  %v1398_v51 = vadd.f32 %v4660_v23, %v1220_v15  ;;  %v1222_v1 = vpop.f32.mrb[39].mxu0 }
 0x1f0   :  { %v3917_v1 = vld [vmem:[%s5324_s3 + $0x10] ss:$8 sps:$4 sm:$0xff]  }
 0x1f1   :  { %v1469_v22 = vmax.f32 %v1468_v62, %v1398_v51 }
 0x1f4   :  { %v1225_v42 = vpop.f32.mrb[40].mxu0 }
 0x1f5   :  { %v1403_v48 = vadd.f32 %v4678_v30, %v1225_v42  ;;  %v1227_v54 = vpop.f32.mrb[41].mxu0  ;;  %v3922_v42 = vld [vmem:[%s5324_s3 + $0x24] ss:$8 sps:$4 sm:$0xff]  }
 0x1f6   :  { %v1228_v59 = vpop.f32.mrb[42].mxu0  ;;  %v3920_v54 = vld [vmem:[%s5324_s3 + $0x20] ss:$8 sps:$4 sm:$0xff]  }
 0x1f7   :  { %v1472_v24 = vmax.f32 %v1471_v5, %v1403_v48  ;;  %v1406_v49 = vadd.f32 %v4682_v32, %v1228_v59  ;;  %v1230_v60 = vpop.f32.mrb[43].mxu0 }
 0x1f9   :  { %v1475_v50 = vmax.f32 %v1474_v14, %v1406_v49  ;;  %v3925_v49 = vld [vmem:[%s5324_s3 + $0x34] ss:$8 sps:$4 sm:$0xff]  }
 0x1fc   :  { %v1233_v57 = vpop.f32.mrb[44].mxu0 }
 0x1fd   :  { %v1411_v21 = vadd.f32 %v4676_v29, %v1233_v57  ;;  %v1235_v61 = vpop.f32.mrb[45].mxu0 }
 0x1fe   :  { %v1236_v47 = vpop.f32.mrb[46].mxu0  ;;  %v3923_v61 = vld [vmem:[%s5324_s3 + $0x30] ss:$8 sps:$4 sm:$0xff]  }
 0x1ff   :  { %v1478_v3 = vmax.f32 %v1477_v4, %v1411_v21  ;;  %v1414_v23 = vadd.f32 %v4680_v31, %v1236_v47  ;;  %v1238_v8 = vpop.f32.mrb[47].mxu0 }
 0x201   :  { %v4788_v62 = vmax.f32 %v1480_v56, %v1414_v23 }
 0x204   :  { %v1241_v11 = vpop.f32.mrb[48].mxu0 }
 0x205   :  { %v1419_v30 = vadd.f32 %v4692_v36, %v1241_v11  ;;  %v1243_v9 = vpop.f32.mrb[49].mxu0 }
 0x206   :  { %v1244_v5 = vpop.f32.mrb[50].mxu0 }
 0x207   :  { %v1484_v55 = vmax.f32 %v1483_v13, %v1419_v30  ;;  %v1422_v32 = vadd.f32 %v4696_v38, %v1244_v5  ;;  %v1246_v14 = vpop.f32.mrb[51].mxu0  ;;  %v3931_v30 = vld [vmem:[%s5324_s3 + $0x54] ss:$8 sps:$4 sm:$0xff]  }
 0x208   :  { %v3929_v14 = vld [vmem:[%s5324_s3 + $0x50] ss:$8 sps:$4 sm:$0xff]  }
 0x209   :  { %v4792_v17 = vmax.f32 %v1486_v33, %v1422_v32 }
 0x20c   :  { %v1249_v29 = vpop.f32.mrb[52].mxu0 }
 0x20d   :  { %v1427_v18 = vadd.f32 %v4690_v35, %v1249_v29  ;;  %v1251_v4 = vpop.f32.mrb[53].mxu0 }
 0x20e   :  { %v1252_v2 = vpop.f32.mrb[54].mxu0 }
 0x20f   :  { %v4795_v31 = vmax.f32 %v1489_v12, %v1427_v18  ;;  %v4798_v20 = vadd.f32 %v4694_v37, %v1252_v2  ;;  %v1254_v7 = vpop.f32.mrb[55].mxu0  ;;  %v3934_v18 = vld [vmem:[%s5324_s3 + $0x64] ss:$8 sps:$4 sm:$0xff]   ;;  %v3937_v2 = vld [vmem:[%s5324_s3 + $0x74] ss:$8 sps:$4 sm:$0xff]  }
 0x211   :  { %v1467_v36 = vmax.f32 %v4781_v41, %v4798_v20  ;;  %v3938_v41 = vld [vmem:[%s5324_s3 + $0x100] ss:$8 sps:$4 sm:$0xff]  }
 0x214   :  { %v1257_v56 = vpop.f32.mrb[56].mxu0 }
 0x215   :  { %v1435_v38 = vadd.f32 %v4712_v44, %v1257_v56  ;;  %v1259_v10 = vpop.f32.mrb[57].mxu0  ;;  %v3914_v44 = vld [vmem:[%s5324_s3] ss:$8 sps:$4 sm:$0xff]   ;;  %v3940_v56 = vld [vmem:[%s5324_s3 + $0x104] ss:$8 sps:$4 sm:$0xff]  }
 0x216   :  { %v1260_v26 = vpop.f32.mrb[58].mxu0  ;;  %v3946_v10 = vld [vmem:[%s5324_s3 + $0x124] ss:$8 sps:$4 sm:$0xff]  }
 0x217   :  { %v1470_v13 = vmax.f32 %v1469_v22, %v1435_v38  ;;  %v1438_v27 = vadd.f32 %v4716_v46, %v1260_v26  ;;  %v1262_v35 = vpop.f32.mrb[59].mxu0  ;;  %v3919_v46 = vld [vmem:[%s5324_s3 + $0x14] ss:$8 sps:$4 sm:$0xff]   ;;  %v3941_v38 = vld [vmem:[%s5324_s3 + $0x110] ss:$8 sps:$4 sm:$0xff]  }
 0x218   :  { %v3944_v26 = vld [vmem:[%s5324_s3 + $0x120] ss:$8 sps:$4 sm:$0xff]   ;;  %v3952_v35 = vld [vmem:[%s5324_s3 + $0x144] ss:$8 sps:$4 sm:$0xff]  }
 0x219   :  { %v1500_v28 = vadd.f32 %v3237_v52, %v1470_v13  ;;  %v1473_v37 = vmax.f32 %v1472_v24, %v1438_v27  ;;  %v3949_v13 = vld [vmem:[%s5324_s3 + $0x134] ss:$8 sps:$4 sm:$0xff]   ;;  %v3947_v27 = vld [vmem:[%s5324_s3 + $0x130] ss:$8 sps:$4 sm:$0xff]  }
 0x21b   :  { %v1509_v16 = vmax.f32 %v1500_v28, 0.0  ;;  %v4807_v33 = vadd.f32 %v3237_v52, %v1473_v37  ;;  %v3955_v28 = vld [vmem:[%s5324_s3 + $0x154] ss:$8 sps:$4 sm:$0xff]   ;;  %v3953_v37 = vld [vmem:[%s5324_s3 + $0x150] ss:$8 sps:$4 sm:$0xff]  }
 0x21c   :  { %v1265_v19 = vpop.f32.mrb[60].mxu0 }
 0x21d   :  { %v1518_v34 = vpack.c.bf16 %v1509_v16, %v1509_v16  ;;  %v1443_v12 = vadd.f32 %v4710_v43, %v1265_v19  ;;  %v1267_v39 = vpop.f32.mrb[61].mxu0  ;;  %v3958_v16 = vld [vmem:[%s5324_s3 + $0x164] ss:$8 sps:$4 sm:$0xff]   ;;  %v3956_v19 = vld [vmem:[%s5324_s3 + $0x160] ss:$8 sps:$4 sm:$0xff]  }
 0x21e   :  { %v1268_v25 = vpop.f32.mrb[62].mxu0  ;;  %v3964_v39 = vld [vmem:[%s5324_s3 + $0x184] ss:$8 sps:$4 sm:$0xff]  }
 0x21f   :  { %v1476_v40 = vmax.f32 %v1475_v50, %v1443_v12  ;;  %v1446_v15 = vadd.f32 %v4714_v45, %v1268_v25  ;;  %v1270_v51 = vpop.f32.mrb[63].mxu0  ;;  %1672 = vmatmul.mubr.bf16.vlgmr.msra.gmra.mrb[36].mxu1 %v1518_v34  ;;  %v3959_v34 = vld [vmem:[%s5324_s3 + $0x170] ss:$8 sps:$4 sm:$0xff]   ;;  %v1510_v12 = vmax.f32 %v4807_v33, 0.0 }
 0x220   :  { %1761 = vmatpush1.bf16.msra.mxu1 %v3914_v44  ;;  %1792 = vmatprep.mubr.bf16.mxu1 %v4130_v0  ;;  %v3961_v44 = vld [vmem:[%s5324_s3 + $0x174] ss:$8 sps:$4 sm:$0xff]   ;;  %v3965_v33 = vld [vmem:[%s5324_s3 + $0x190] ss:$8 sps:$4 sm:$0xff]   ;;  %v3968_v51 = vld [vmem:[%s5324_s3 + $0x1a0] ss:$8 sps:$4 sm:$0xff]  }
 0x221   :  { %v4821_v22 = vadd.f32 %v3237_v52, %v1476_v40  ;;  %v1479_v43 = vmax.f32 %v1478_v3, %v1446_v15  ;;  %1762 = vmatprep.subr.bf16.mxu1 %v3919_v46  ;;  %v3928_v3 = vld [vmem:[%s5324_s3 + $0x44] ss:$8 sps:$4 sm:$0xff]   ;;  %v3962_v46 = vld [vmem:[%s5324_s3 + $0x180] ss:$8 sps:$4 sm:$0xff]   ;;  %v1519_v25 = vpack.c.bf16 %v1510_v12, %v1510_v12  ;;  %v3967_v40 = vld [vmem:[%s5324_s3 + $0x194] ss:$8 sps:$4 sm:$0xff]  }
 0x222   :  { %v3970_v15 = vld [vmem:[%s5324_s3 + $0x1a4] ss:$8 sps:$4 sm:$0xff]  }
 0x223   :  { %v4826_v48 = vadd.f32 %v3237_v52, %v1479_v43  ;;  %v3971_v43 = vld [vmem:[%s5324_s3 + $0x1b0] ss:$8 sps:$4 sm:$0xff]   ;;  %v4042_v12 = vld [vmem:[%s5324_s3 + $0x324] ss:$8 sps:$4 sm:$0xff]  }
 0x224   :  { %1763 = vmatpush1.bf16.msra.mxu1 %v3917_v1  ;;  %v1273_v45 = vpop.f32.mrb[64].mxu0  ;;  %v3973_v1 = vld [vmem:[%s5324_s3 + $0x1b4] ss:$8 sps:$4 sm:$0xff]  }
 0x225   :  { %v1451_v59 = vadd.f32 %v4732_v58, %v1273_v45  ;;  %v1275_v24 = vpop.f32.mrb[65].mxu0  ;;  %1764 = vmatprep.subr.bf16.mxu1 %v3922_v42  ;;  %v3976_v42 = vld [vmem:[%s5324_s3 + $0x1c4] ss:$8 sps:$4 sm:$0xff]   ;;  %v3974_v45 = vld [vmem:[%s5324_s3 + $0x1c0] ss:$8 sps:$4 sm:$0xff]  }
 0x226   :  { %v1276_v60 = vpop.f32.mrb[66].mxu0  ;;  %v3982_v24 = vld [vmem:[%s5324_s3 + $0x1e4] ss:$8 sps:$4 sm:$0xff]  }
 0x227   :  { %v1482_v50 = vmax.f32 %v4788_v62, %v1451_v59  ;;  %v1454_v57 = vadd.f32 %v4739_v6, %v1276_v60  ;;  %v1278_v21 = vpop.f32.mrb[67].mxu0  ;;  %v3926_v6 = vld [vmem:[%s5324_s3 + $0x40] ss:$8 sps:$4 sm:$0xff]   ;;  %v3977_v59 = vld [vmem:[%s5324_s3 + $0x1d0] ss:$8 sps:$4 sm:$0xff]  }
 0x228   :  { %1765 = vmatpush1.bf16.msra.mxu1 %v3920_v54  ;;  %v3979_v54 = vld [vmem:[%s5324_s3 + $0x1d4] ss:$8 sps:$4 sm:$0xff]   ;;  %v3988_v21 = vld [vmem:[%s5324_s3 + $0x204] ss:$8 sps:$4 sm:$0xff]  }
 0x229   :  { %v4840_v47 = vadd.f32 %v3237_v52, %v1482_v50  ;;  %v1485_v58 = vmax.f32 %v1484_v55, %v1454_v57  ;;  %1766 = vmatprep.subr.bf16.mxu1 %v3925_v49  ;;  %v3980_v49 = vld [vmem:[%s5324_s3 + $0x1e0] ss:$8 sps:$4 sm:$0xff]   ;;  %v3985_v60 = vld [vmem:[%s5324_s3 + $0x1f4] ss:$8 sps:$4 sm:$0xff]   ;;  %v3983_v50 = vld [vmem:[%s5324_s3 + $0x1f0] ss:$8 sps:$4 sm:$0xff]  }
 0x22a   :  { %v1511_v57 = vmax.f32 %v4821_v22, 0.0  ;;  %v3989_v22 = vld [vmem:[%s5324_s3 + $0x210] ss:$8 sps:$4 sm:$0xff]  }
 0x22b   :  { %v4845_v23 = vadd.f32 %v3237_v52, %v1485_v58 }
 0x22c   :  { %1767 = vmatpush1.bf16.msra.mxu1 %v3923_v61  ;;  %v1281_v8 = vpop.f32.mrb[68].mxu0  ;;  %v3986_v61 = vld [vmem:[%s5324_s3 + $0x200] ss:$8 sps:$4 sm:$0xff]   ;;  %v1520_v58 = vpack.c.bf16 %v1511_v57, %v1511_v57  ;;  %v4061_v57 = vld [vmem:[%s5324_s3 + $0x390] ss:$8 sps:$4 sm:$0xff]  }
 0x22d   :  { %v1459_v62 = vadd.f32 %v4727_v53, %v1281_v8  ;;  %v1283_v11 = vpop.f32.mrb[69].mxu0  ;;  %1768 = vmatprep.subr.bf16.mxu1 %v3928_v3  ;;  %v3991_v3 = vld [vmem:[%s5324_s3 + $0x214] ss:$8 sps:$4 sm:$0xff]   ;;  %v3994_v8 = vld [vmem:[%s5324_s3 + $0x224] ss:$8 sps:$4 sm:$0xff]  }
 0x22e   :  { %v1284_v9 = vpop.f32.mrb[70].mxu0  ;;  %v3995_v11 = vld [vmem:[%s5324_s3 + $0x230] ss:$8 sps:$4 sm:$0xff]  }
 0x22f   :  { %v1488_v5 = vmax.f32 %v4792_v17, %v1459_v62  ;;  %v1462_v55 = vadd.f32 %v4734_v63, %v1284_v9  ;;  %v1286_v32 = vpop.f32.mrb[71].mxu0  ;;  %v3932_v63 = vld [vmem:[%s5324_s3 + $0x60] ss:$8 sps:$4 sm:$0xff]   ;;  %v1499_v17 = vadd.f32 %v3237_v52, %v1467_v36  ;;  %v3943_v36 = vld [vmem:[%s5324_s3 + $0x114] ss:$8 sps:$4 sm:$0xff]  }
 0x230   :  { %1769 = vmatpush1.bf16.msra.mxu1 %v3926_v6  ;;  %v3992_v6 = vld [vmem:[%s5324_s3 + $0x220] ss:$8 sps:$4 sm:$0xff]   ;;  %v3997_v62 = vld [vmem:[%s5324_s3 + $0x234] ss:$8 sps:$4 sm:$0xff]   ;;  %v4006_v32 = vld [vmem:[%s5324_s3 + $0x264] ss:$8 sps:$4 sm:$0xff]  }
 0x231   :  { %v4859_v29 = vadd.f32 %v3237_v52, %v1488_v5  ;;  %v1491_v53 = vmax.f32 %v4795_v31, %v1462_v55  ;;  %1770 = vmatprep.subr.bf16.mxu1 %v3931_v30  ;;  %v3935_v31 = vld [vmem:[%s5324_s3 + $0x70] ss:$8 sps:$4 sm:$0xff]   ;;  %v1508_v7 = vmax.f32 %v1499_v17, 0.0  ;;  %v4000_v30 = vld [vmem:[%s5324_s3 + $0x244] ss:$8 sps:$4 sm:$0xff]  }
 0x232   :  { %v3998_v9 = vld [vmem:[%s5324_s3 + $0x240] ss:$8 sps:$4 sm:$0xff]   ;;  %v4003_v5 = vld [vmem:[%s5324_s3 + $0x254] ss:$8 sps:$4 sm:$0xff]   ;;  %v4001_v55 = vld [vmem:[%s5324_s3 + $0x250] ss:$8 sps:$4 sm:$0xff]  }
 0x233   :  { %v4865_v4 = vadd.f32 %v3237_v52, %v1491_v53  ;;  %v1517_v20 = vpack.c.bf16 %v1508_v7, %v1508_v7  ;;  %v3950_v52 = vld [vmem:[%s5324_s3 + $0x140] ss:$8 sps:$4 sm:$0xff]   ;;  %v4009_v53 = vld [vmem:[%s5324_s3 + $0x274] ss:$8 sps:$4 sm:$0xff]   ;;  %v4012_v17 = vld [vmem:[%s5324_s3 + $0x284] ss:$8 sps:$4 sm:$0xff]  }
 0x234   :  { %1771 = vmatpush1.bf16.msra.mxu1 %v3929_v14  ;;  %v4004_v14 = vld [vmem:[%s5324_s3 + $0x260] ss:$8 sps:$4 sm:$0xff]   ;;  %v4015_v7 = vld [vmem:[%s5324_s3 + $0x294] ss:$8 sps:$4 sm:$0xff]  }
 0x235   :  { %1772 = vmatprep.subr.bf16.mxu1 %v3934_v18  ;;  %v4007_v18 = vld [vmem:[%s5324_s3 + $0x270] ss:$8 sps:$4 sm:$0xff]  }
 0x238   :  { %1773 = vmatpush1.bf16.msra.mxu1 %v3932_v63  ;;  %v1512_v63 = vmax.f32 %v4826_v48, 0.0  ;;  %v4013_v48 = vld [vmem:[%s5324_s3 + $0x290] ss:$8 sps:$4 sm:$0xff]  }
 0x239   :  { %1774 = vmatprep.subr.bf16.mxu1 %v3937_v2  ;;  %v4010_v2 = vld [vmem:[%s5324_s3 + $0x280] ss:$8 sps:$4 sm:$0xff]  }
 0x23c   :  { %1775 = vmatpush1.bf16.msra.mxu1 %v3935_v31  ;;  %v1521_v31 = vpack.c.bf16 %v1512_v63, %v1512_v63  ;;  %v4110_v63 = vld [vmem:[%s5326_s5 + $0x50] sm:$0xff]  }
 0x23d   :  { %1898 = vmatprep.subr.bf16.mxu1 %v3940_v56  ;;  %v4018_v56 = vld [vmem:[%s5324_s3 + $0x2a4] ss:$8 sps:$4 sm:$0xff]  }
 0x23f   :  { %1793 = vmatmul.mubr.bf16.vlgmr.msra.gmra.mrb[40].mxu1 %v1517_v20  ;;  %v4021_v20 = vld [vmem:[%s5324_s3 + $0x2b4] ss:$8 sps:$4 sm:$0xff]  }
 0x240   :  { %1899 = vmatpush1.bf16.msra.mxu1 %v3938_v41  ;;  %1930 = vmatprep.mubr.bf16.mxu1 %v4130_v0  ;;  %v4016_v41 = vld [vmem:[%s5324_s3 + $0x2a0] ss:$8 sps:$4 sm:$0xff]  }
 0x241   :  { %1900 = vmatprep.subr.bf16.mxu1 %v3943_v36  ;;  %v4019_v36 = vld [vmem:[%s5324_s3 + $0x2b0] ss:$8 sps:$4 sm:$0xff]  }
 0x244   :  { %1901 = vmatpush1.bf16.msra.mxu1 %v3941_v38  ;;  %v4024_v38 = vld [vmem:[%s5324_s3 + $0x2c4] ss:$8 sps:$4 sm:$0xff]  }
 0x245   :  { %1902 = vmatprep.subr.bf16.mxu1 %v3946_v10  ;;  %v4022_v10 = vld [vmem:[%s5324_s3 + $0x2c0] ss:$8 sps:$4 sm:$0xff]  }
 0x248   :  { %1903 = vmatpush1.bf16.msra.mxu1 %v3944_v26  ;;  %v4027_v26 = vld [vmem:[%s5324_s3 + $0x2d4] ss:$8 sps:$4 sm:$0xff]  }
 0x249   :  { %1904 = vmatprep.subr.bf16.mxu1 %v3949_v13  ;;  %v4025_v13 = vld [vmem:[%s5324_s3 + $0x2d0] ss:$8 sps:$4 sm:$0xff]  }
 0x24c   :  { %1905 = vmatpush1.bf16.msra.mxu1 %v3947_v27  ;;  %v4030_v27 = vld [vmem:[%s5324_s3 + $0x2e4] ss:$8 sps:$4 sm:$0xff]  }
 0x24d   :  { %1906 = vmatprep.subr.bf16.mxu1 %v3952_v35  ;;  %v4028_v35 = vld [vmem:[%s5324_s3 + $0x2e0] ss:$8 sps:$4 sm:$0xff]  }
 0x250   :  { %1907 = vmatpush1.bf16.msra.mxu1 %v3950_v52  ;;  %v4033_v52 = vld [vmem:[%s5324_s3 + $0x2f4] ss:$8 sps:$4 sm:$0xff]  }
 0x251   :  { %1908 = vmatprep.subr.bf16.mxu1 %v3955_v28  ;;  %v4031_v28 = vld [vmem:[%s5324_s3 + $0x2f0] ss:$8 sps:$4 sm:$0xff]  }
 0x254   :  { %1909 = vmatpush1.bf16.msra.mxu1 %v3953_v37  ;;  %v1513_v37 = vmax.f32 %v4840_v47, 0.0  ;;  %v4037_v47 = vld [vmem:[%s5324_s3 + $0x310] ss:$8 sps:$4 sm:$0xff]  }
 0x255   :  { %1910 = vmatprep.subr.bf16.mxu1 %v3958_v16  ;;  %v4036_v16 = vld [vmem:[%s5324_s3 + $0x304] ss:$8 sps:$4 sm:$0xff]  }
 0x258   :  { %1911 = vmatpush1.bf16.msra.mxu1 %v3956_v19  ;;  %v4034_v19 = vld [vmem:[%s5324_s3 + $0x300] ss:$8 sps:$4 sm:$0xff]  }
 0x259   :  { %1912 = vmatprep.subr.bf16.mxu1 %v3961_v44  ;;  %v1522_v44 = vpack.c.bf16 %v1513_v37, %v1513_v37  ;;  %v4111_v37 = vld [vmem:[%s5326_s5 + $0x10] sm:$0xff]  }
 0x25c   :  { %1913 = vmatpush1.bf16.msra.mxu1 %v3959_v34  ;;  %v4039_v34 = vld [vmem:[%s5324_s3 + $0x314] ss:$8 sps:$4 sm:$0xff]  }
 0x25d   :  { %2038 = vmatprep.subr.bf16.mxu1 %v3964_v39  ;;  %v4040_v39 = vld [vmem:[%s5324_s3 + $0x320] ss:$8 sps:$4 sm:$0xff]  }
 0x25f   :  { %1931 = vmatmul.mubr.bf16.vlgmr.msra.gmra.mrb[44].mxu1 %v1519_v25  ;;  %v4043_v25 = vld [vmem:[%s5324_s3 + $0x330] ss:$8 sps:$4 sm:$0xff]  }
 0x260   :  { %2039 = vmatpush1.bf16.msra.mxu1 %v3962_v46  ;;  %2070 = vmatprep.mubr.bf16.mxu1 %v4130_v0  ;;  %v4045_v46 = vld [vmem:[%s5324_s3 + $0x334] ss:$8 sps:$4 sm:$0xff]  }
 0x261   :  { %2040 = vmatprep.subr.bf16.mxu1 %v3967_v40  ;;  %v4048_v40 = vld [vmem:[%s5324_s3 + $0x344] ss:$8 sps:$4 sm:$0xff]  }
 0x264   :  { %2041 = vmatpush1.bf16.msra.mxu1 %v3965_v33  ;;  %v4046_v33 = vld [vmem:[%s5324_s3 + $0x340] ss:$8 sps:$4 sm:$0xff]  }
 0x265   :  { %2042 = vmatprep.subr.bf16.mxu1 %v3970_v15  ;;  %v4051_v15 = vld [vmem:[%s5324_s3 + $0x354] ss:$8 sps:$4 sm:$0xff]  }
 0x268   :  { %2043 = vmatpush1.bf16.msra.mxu1 %v3968_v51  ;;  %v4049_v51 = vld [vmem:[%s5324_s3 + $0x350] ss:$8 sps:$4 sm:$0xff]  }
 0x269   :  { %2044 = vmatprep.subr.bf16.mxu1 %v3973_v1  ;;  %v4054_v1 = vld [vmem:[%s5324_s3 + $0x364] ss:$8 sps:$4 sm:$0xff]  }
 0x26c   :  { %2045 = vmatpush1.bf16.msra.mxu1 %v3971_v43  ;;  %v4052_v43 = vld [vmem:[%s5324_s3 + $0x360] ss:$8 sps:$4 sm:$0xff]  }
 0x26d   :  { %2046 = vmatprep.subr.bf16.mxu1 %v3976_v42  ;;  %v4057_v42 = vld [vmem:[%s5324_s3 + $0x374] ss:$8 sps:$4 sm:$0xff]  }
 0x270   :  { %2047 = vmatpush1.bf16.msra.mxu1 %v3974_v45  ;;  %v4055_v45 = vld [vmem:[%s5324_s3 + $0x370] ss:$8 sps:$4 sm:$0xff]  }
 0x271   :  { %2048 = vmatprep.subr.bf16.mxu1 %v3979_v54  ;;  %v4106_v54 = vld [vmem:[%s5326_s5 + $0x40] sm:$0xff]  }
 0x272   :  { %3558 = vmatprep.subr.bf16.mxu0 %v4106_v54  ;;  %v4115_v54 = vld [vmem:[%s5326_s5 + $0x20] sm:$0xff]  }
 0x274   :  { %2049 = vmatpush1.bf16.msra.mxu1 %v3977_v59  ;;  %v1514_v59 = vmax.f32 %v4845_v23, 0.0  ;;  %v4063_v23 = vld [vmem:[%s5324_s3 + $0x394] ss:$8 sps:$4 sm:$0xff]  }
 0x275   :  { %2050 = vmatprep.subr.bf16.mxu1 %v3982_v24  ;;  %v4060_v24 = vld [vmem:[%s5324_s3 + $0x384] ss:$8 sps:$4 sm:$0xff]  }
 0x278   :  { %2051 = vmatpush1.bf16.msra.mxu1 %v3980_v49  ;;  %v4107_v49 = vld [vmem:[%s5326_s5] sm:$0xff]  }
 0x279   :  { %2052 = vmatprep.subr.bf16.mxu1 %v3985_v60  ;;  %3559 = vmatpush3.bf16.msra.mxu0 %v4107_v49  ;;  %v4058_v60 = vld [vmem:[%s5324_s3 + $0x380] ss:$8 sps:$4 sm:$0xff]  }
 0x27c   :  { %2053 = vmatpush1.bf16.msra.mxu1 %v3983_v50  ;;  %v1523_v50 = vpack.c.bf16 %v1514_v59, %v1514_v59  ;;  %v4117_v59 = vld [vmem:[%s5326_s5 + $0x28] sm:$0xff]  }
 0x27d   :  { %2178 = vmatprep.subr.bf16.mxu1 %v3988_v21  ;;  %v4066_v21 = vld [vmem:[%s5324_s3 + $0x3a4] ss:$8 sps:$4 sm:$0xff]  }
 0x27f   :  { %2071 = vmatmul.mubr.bf16.vlgmr.msra.gmra.mrb[48].mxu1 %v1520_v58  ;;  %v4069_v58 = vld [vmem:[%s5324_s3 + $0x3b4] ss:$8 sps:$4 sm:$0xff]  }
 0x280   :  { %2179 = vmatpush1.bf16.msra.mxu1 %v3986_v61  ;;  %2210 = vmatprep.mubr.bf16.mxu1 %v4130_v0  ;;  %v4064_v61 = vld [vmem:[%s5324_s3 + $0x3a0] ss:$8 sps:$4 sm:$0xff]  }
 0x281   :  { %2180 = vmatprep.subr.bf16.mxu1 %v3991_v3  ;;  %v4067_v3 = vld [vmem:[%s5324_s3 + $0x3b0] ss:$8 sps:$4 sm:$0xff]  }
 0x284   :  { %2181 = vmatpush1.bf16.msra.mxu1 %v3989_v22  ;;  %v4072_v22 = vld [vmem:[%s5324_s3 + $0x3c4] ss:$8 sps:$4 sm:$0xff]  }
 0x285   :  { %2182 = vmatprep.subr.bf16.mxu1 %v3994_v8  ;;  %v4070_v8 = vld [vmem:[%s5324_s3 + $0x3c0] ss:$8 sps:$4 sm:$0xff]  }
 0x288   :  { %2183 = vmatpush1.bf16.msra.mxu1 %v3992_v6  ;;  %v4075_v6 = vld [vmem:[%s5324_s3 + $0x3d4] ss:$8 sps:$4 sm:$0xff]  }
 0x289   :  { %2184 = vmatprep.subr.bf16.mxu1 %v3997_v62  ;;  %v4073_v62 = vld [vmem:[%s5324_s3 + $0x3d0] ss:$8 sps:$4 sm:$0xff]  }
 0x28c   :  { %2185 = vmatpush1.bf16.msra.mxu1 %v3995_v11  ;;  %v4078_v11 = vld [vmem:[%s5324_s3 + $0x3e4] ss:$8 sps:$4 sm:$0xff]  }
 0x28d   :  { %2186 = vmatprep.subr.bf16.mxu1 %v4000_v30 }
 0x290   :  { %2187 = vmatpush1.bf16.msra.mxu1 %v3998_v9 }
 0x291   :  { %2188 = vmatprep.subr.bf16.mxu1 %v4003_v5 }
 0x294   :  { %2189 = vmatpush1.bf16.msra.mxu1 %v4001_v55  ;;  %v4076_v55 = vld [vmem:[%s5324_s3 + $0x3e0] ss:$8 sps:$4 sm:$0xff]  }
 0x295   :  { %2190 = vmatprep.subr.bf16.mxu1 %v4006_v32  ;;  %v4081_v32 = vld [vmem:[%s5324_s3 + $0x3f4] ss:$8 sps:$4 sm:$0xff]  }
 0x298   :  { %2191 = vmatpush1.bf16.msra.mxu1 %v4004_v14 }
 0x299   :  { %2192 = vmatprep.subr.bf16.mxu1 %v4009_v53  ;;  %v4108_v53 = vld [vmem:[%s5326_s5 + $0x48] sm:$0xff]  }
 0x29a   :  { %3560 = vmatprep.subr.bf16.mxu0 %v4108_v53  ;;  %v4126_v53 = vld [vmem:[%s5327_s7 + $0x20] sm:$0xff]  }
 0x29c   :  { %2193 = vmatpush1.bf16.msra.mxu1 %v4007_v18  ;;  %v4109_v18 = vld [vmem:[%s5326_s5 + $0x8] sm:$0xff]  }
 0x29d   :  { %2318 = vmatprep.subr.bf16.mxu1 %v4012_v17  ;;  %v4079_v17 = vld [vmem:[%s5324_s3 + $0x3f0] ss:$8 sps:$4 sm:$0xff]   ;;  %3561 = vmatpush3.bf16.msra.mxu0 %v4109_v18  ;;  %v4127_v18 = vld [vmem:[%s5327_s7 + $0x28] sm:$0xff]  }
 0x29e   :  { %3562 = vmatprep.subr.bf16.mxu0 %v4110_v63 }
 0x29f   :  { %2211 = vmatmul.mubr.bf16.vlgmr.msra.gmra.mrb[52].mxu1 %v1521_v31  ;;  %v4084_v31 = vld [vmem:[%s5324_s3 + $0x404] ss:$8 sps:$4 sm:$0xff]  }
 0x2a0   :  { %2319 = vmatpush1.bf16.msra.mxu1 %v4010_v2  ;;  %2350 = vmatprep.mubr.bf16.mxu1 %v4130_v0  ;;  %v1515_v2 = vmax.f32 %v4859_v29, 0.0  ;;  %v4085_v29 = vld [vmem:[%s5324_s3 + $0x410] ss:$8 sps:$4 sm:$0xff]  }
 0x2a1   :  { %2320 = vmatprep.subr.bf16.mxu1 %v4015_v7  ;;  %v4082_v7 = vld [vmem:[%s5324_s3 + $0x400] ss:$8 sps:$4 sm:$0xff]   ;;  %3563 = vmatpush3.bf16.msra.mxu0 %v4111_v37 }
 0x2a4   :  { %2321 = vmatpush1.bf16.msra.mxu1 %v4013_v48  ;;  %v1524_v48 = vpack.c.bf16 %v1515_v2, %v1515_v2 }
 0x2a5   :  { %2322 = vmatprep.subr.bf16.mxu1 %v4018_v56  ;;  %v4087_v56 = vld [vmem:[%s5324_s3 + $0x414] ss:$8 sps:$4 sm:$0xff]  }
 0x2a8   :  { %2323 = vmatpush1.bf16.msra.mxu1 %v4016_v41  ;;  %v4090_v41 = vld [vmem:[%s5324_s3 + $0x424] ss:$8 sps:$4 sm:$0xff]  }
 0x2a9   :  { %2324 = vmatprep.subr.bf16.mxu1 %v4021_v20  ;;  %v4088_v20 = vld [vmem:[%s5324_s3 + $0x420] ss:$8 sps:$4 sm:$0xff]  }
 0x2ac   :  { %2325 = vmatpush1.bf16.msra.mxu1 %v4019_v36  ;;  %v4093_v36 = vld [vmem:[%s5324_s3 + $0x434] ss:$8 sps:$4 sm:$0xff]  }
 0x2ad   :  { %2326 = vmatprep.subr.bf16.mxu1 %v4024_v38  ;;  %v4096_v38 = vld [vmem:[%s5324_s3 + $0x444] ss:$8 sps:$4 sm:$0xff]  }
 0x2b0   :  { %2327 = vmatpush1.bf16.msra.mxu1 %v4022_v10  ;;  %v4094_v10 = vld [vmem:[%s5324_s3 + $0x440] ss:$8 sps:$4 sm:$0xff]  }
 0x2b1   :  { %2328 = vmatprep.subr.bf16.mxu1 %v4027_v26  ;;  %v4099_v26 = vld [vmem:[%s5324_s3 + $0x454] ss:$8 sps:$4 sm:$0xff]  }
 0x2b4   :  { %2329 = vmatpush1.bf16.msra.mxu1 %v4025_v13  ;;  %v4097_v13 = vld [vmem:[%s5324_s3 + $0x450] ss:$8 sps:$4 sm:$0xff]  }
 0x2b5   :  { %2330 = vmatprep.subr.bf16.mxu1 %v4030_v27  ;;  %v4102_v27 = vld [vmem:[%s5324_s3 + $0x464] ss:$8 sps:$4 sm:$0xff]  }
 0x2b8   :  { %2331 = vmatpush1.bf16.msra.mxu1 %v4028_v35 }
 0x2b9   :  { %2332 = vmatprep.subr.bf16.mxu1 %v4033_v52 }
 0x2bc   :  { %2333 = vmatpush1.bf16.msra.mxu1 %v4031_v28 }
 0x2bd   :  { %2458 = vmatprep.subr.bf16.mxu1 %v4036_v16 }
 0x2bf   :  { %2351 = vmatmul.mubr.bf16.vlgmr.msra.gmra.mrb[56].mxu1 %v1522_v44  ;;  %v4100_v44 = vld [vmem:[%s5324_s3 + $0x460] ss:$8 sps:$4 sm:$0xff]  }
 0x2c0   :  { %2459 = vmatpush1.bf16.msra.mxu1 %v4034_v19  ;;  %2490 = vmatprep.mubr.bf16.mxu1 %v4130_v0 }
 0x2c1   :  { %2460 = vmatprep.subr.bf16.mxu1 %v4039_v34 }
 0x2c4   :  { %2461 = vmatpush1.bf16.msra.mxu1 %v4037_v47  ;;  %v4105_v47 = vld [vmem:[%s5324_s3 + $0x474] ss:$8 sps:$4 sm:$0xff]  }
 0x2c5   :  { %2462 = vmatprep.subr.bf16.mxu1 %v4042_v12  ;;  %v4112_v12 = vld [vmem:[%s5326_s5 + $0x58] sm:$0xff]  }
 0x2c6   :  { %3564 = vmatprep.subr.bf16.mxu0 %v4112_v12 }
 0x2c8   :  { %2463 = vmatpush1.bf16.msra.mxu1 %v4040_v39  ;;  %v4113_v39 = vld [vmem:[%s5326_s5 + $0x18] sm:$0xff]  }
 0x2c9   :  { %2464 = vmatprep.subr.bf16.mxu1 %v4045_v46  ;;  %v4103_v46 = vld [vmem:[%s5324_s3 + $0x470] ss:$8 sps:$4 sm:$0xff]   ;;  %3565 = vmatpush3.bf16.msra.mxu0 %v4113_v39 }
 0x2cc   :  { %2465 = vmatpush1.bf16.msra.mxu1 %v4043_v25  ;;  %v1516_v25 = vmax.f32 %v4865_v4, 0.0  ;;  %v4116_v4 = vld [vmem:[%s5326_s5 + $0x68] sm:$0xff]  }
 0x2cd   :  { %2466 = vmatprep.subr.bf16.mxu1 %v4048_v40 }
 0x2ce   :  { %v1525_v40 = vpack.c.bf16 %v1516_v25, %v1516_v25 }
 0x2d0   :  { %2467 = vmatpush1.bf16.msra.mxu1 %v4046_v33 }
 0x2d1   :  { %2468 = vmatprep.subr.bf16.mxu1 %v4051_v15 }
 0x2d4   :  { %2469 = vmatpush1.bf16.msra.mxu1 %v4049_v51 }
 0x2d5   :  { %2470 = vmatprep.subr.bf16.mxu1 %v4054_v1 }
 0x2d8   :  { %2471 = vmatpush1.bf16.msra.mxu1 %v4052_v43 }
 0x2d9   :  { %2472 = vmatprep.subr.bf16.mxu1 %v4057_v42 }
 0x2dc   :  { %2473 = vmatpush1.bf16.msra.mxu1 %v4055_v45  ;;  %v4114_v45 = vld [vmem:[%s5326_s5 + $0x60] sm:$0xff]  }
 0x2dd   :  { %2598 = vmatprep.subr.bf16.mxu1 %v4060_v24  ;;  %3566 = vmatprep.subr.bf16.mxu0 %v4114_v45  ;;  %v4128_v45 = vld [vmem:[%s5327_s7 + $0x30] sm:$0xff]  }
 0x2de   :  { %3567 = vmatpush3.bf16.msra.mxu0 %v4115_v54  ;;  %v4129_v54 = vld [vmem:[%s5327_s7 + $0x38] sm:$0xff]  }
 0x2df   :  { %2491 = vmatmul.mubr.bf16.vlgmr.msra.gmra.mrb[60].mxu1 %v1523_v50  ;;  %3568 = vmatprep.subr.bf16.mxu0 %v4116_v4 }
 0x2e0   :  { %2599 = vmatpush1.bf16.msra.mxu1 %v4058_v60  ;;  %2630 = vmatprep.mubr.bf16.mxu1 %v4130_v0 }
 0x2e1   :  { %2600 = vmatprep.subr.bf16.mxu1 %v4063_v23 }
 0x2e2   :  { %3569 = vmatpush3.bf16.msra.mxu0 %v4117_v59  ;;  %v3510_v59 = vld [vmem:[%s5329_s6] ss:$0 sm:$0xff] }
 0x2e4   :  { %2601 = vmatpush1.bf16.msra.mxu1 %v4061_v57 }
 0x2e5   :  { %2602 = vmatprep.subr.bf16.mxu1 %v4066_v21  ;;  %v4118_v21 = vld [vmem:[%s5326_s5 + $0x70] sm:$0xff]  }
 0x2e6   :  { %3570 = vmatprep.subr.bf16.mxu0 %v4118_v21 }
 0x2e8   :  { %2603 = vmatpush1.bf16.msra.mxu1 %v4064_v61  ;;  %v4119_v61 = vld [vmem:[%s5326_s5 + $0x30] sm:$0xff]  }
 0x2e9   :  { %2604 = vmatprep.subr.bf16.mxu1 %v4069_v58  ;;  %v4120_v58 = vld [vmem:[%s5326_s5 + $0x78] sm:$0xff]   ;;  %3571 = vmatpush3.bf16.msra.mxu0 %v4119_v61  ;;  %v3527_v61 = vld [vmem:[%s5330_s8] ss:$0 sm:$0xff] }
 0x2ea   :  { %3572 = vmatprep.subr.bf16.mxu0 %v4120_v58 }
 0x2ec   :  { %2605 = vmatpush1.bf16.msra.mxu1 %v4067_v3  ;;  %v4121_v3 = vld [vmem:[%s5326_s5 + $0x38] sm:$0xff]  }
 0x2ed   :  { %2606 = vmatprep.subr.bf16.mxu1 %v4072_v22  ;;  %3573 = vmatpush3.bf16.msra.mxu0 %v4121_v3 }
 0x2f0   :  { %2607 = vmatpush1.bf16.msra.mxu1 %v4070_v8 }
 0x2f1   :  { %2608 = vmatprep.subr.bf16.mxu1 %v4075_v6 }
 0x2f2   :  { %v1673_v30 = vpop.f32.mrb[36].mxu1 }
 0x2f3   :  { %v1675_v9 = vpop.f32.mrb[37].mxu1 }
 0x2f4   :  { %2609 = vmatpush1.bf16.msra.mxu1 %v4073_v62  ;;  %v1677_v5 = vpop.f32.mrb[38].mxu1 }
 0x2f5   :  { %v1678_v14 = vpop.f32.mrb[39].mxu1  ;;  %2610 = vmatprep.subr.bf16.mxu1 %v4078_v11  ;;  %v4122_v5 = vld [vmem:[%s5327_s7] sm:$0xff]  }
 0x2f6   :  { %v4125_v14 = vld [vmem:[%s5327_s7 + $0x18] sm:$0xff]  }
 0x2f8   :  { %2611 = vmatpush1.bf16.msra.mxu1 %v4076_v55  ;;  %v4123_v55 = vld [vmem:[%s5327_s7 + $0x8] sm:$0xff]  }
 0x2f9   :  { %2612 = vmatprep.subr.bf16.mxu1 %v4081_v32  ;;  %v4124_v32 = vld [vmem:[%s5327_s7 + $0x10] sm:$0xff]  }
 0x2fc   :  { %2613 = vmatpush1.bf16.msra.mxu1 %v4079_v17 }
 0x2fd   :  { %2738 = vmatprep.subr.bf16.mxu1 %v4084_v31 }
 0x2ff   :  { %2631 = vmatmul.mubr.bf16.vlgmr.msra.gmra.mrb[64].mxu1 %v1524_v48 }
 0x300   :  { %2739 = vmatpush1.bf16.msra.mxu1 %v4082_v7  ;;  %2770 = vmatprep.mubr.bf16.mxu1 %v4130_v0  ;;  %v4091_v0 = vld [vmem:[%s5324_s3 + $0x430] ss:$8 sps:$4 sm:$0xff]  }
 0x301   :  { %2740 = vmatprep.subr.bf16.mxu1 %v4087_v56 }
 0x304   :  { %2741 = vmatpush1.bf16.msra.mxu1 %v4085_v29 }
 0x305   :  { %2742 = vmatprep.subr.bf16.mxu1 %v4090_v41 }
 0x308   :  { %2743 = vmatpush1.bf16.msra.mxu1 %v4088_v20 }
 0x309   :  { %2744 = vmatprep.subr.bf16.mxu1 %v4093_v36 }
 0x30c   :  { %2745 = vmatpush1.bf16.msra.mxu1 %v4091_v0 }
 0x30d   :  { %2746 = vmatprep.subr.bf16.mxu1 %v4096_v38 }
 0x310   :  { %2747 = vmatpush1.bf16.msra.mxu1 %v4094_v10 }
 0x311   :  { %2748 = vmatprep.subr.bf16.mxu1 %v4099_v26 }
 0x312   :  { %v1794_v35 = vpop.f32.mrb[40].mxu1 }
 0x313   :  { %v1795_v52 = vadd.f32 %v1794_v35, %v1673_v30  ;;  %v1796_v28 = vpop.f32.mrb[41].mxu1 }
 0x314   :  { %v1797_v16 = vadd.f32 %v1796_v28, %v1675_v9  ;;  %v1798_v19 = vpop.f32.mrb[42].mxu1  ;;  %2749 = vmatpush1.bf16.msra.mxu1 %v4097_v13  ;;  %v4131_v9 = vmov 0.0  }
 0x315   :  { %v1799_v34 = vpop.f32.mrb[43].mxu1  ;;  %2750 = vmatprep.subr.bf16.mxu1 %v4102_v27 }
 0x318   :  { %2751 = vmatpush1.bf16.msra.mxu1 %v4100_v44 }
 0x319   :  { %2752 = vmatprep.subr.bf16.mxu1 %v4105_v47 }
 0x31c   :  { %2753 = vmatpush1.bf16.msra.mxu1 %v4103_v46 }
 0x31d   :  { %3633 = vmatprep.subr.bf16.mxu1 %v4131_v9 }
 0x31f   :  { %2771 = vmatmul.mubr.bf16.vlgmr.msra.gmra.mrb[68].mxu1 %v1525_v40 }
 0x320   :  { %3634 = vmatpush3.bf16.msra.mxu1 %v4122_v5  ;;  %3649 = vmatprep.mubr.msk.bf16.mxu1 %vm4132_vm1, %v4131_v9 }
 0x321   :  { %3635 = vmatprep.subr.bf16.mxu1 %v4131_v9 }
 0x324   :  { %3636 = vmatpush3.bf16.msra.mxu1 %v4123_v55 }
 0x325   :  { %3637 = vmatprep.subr.bf16.mxu1 %v4131_v9 }
 0x328   :  { %3638 = vmatpush3.bf16.msra.mxu1 %v4124_v32 }
 0x329   :  { %3639 = vmatprep.subr.bf16.mxu1 %v4131_v9 }
 0x32c   :  { %3640 = vmatpush3.bf16.msra.mxu1 %v4125_v14 }
 0x32d   :  { %3641 = vmatprep.subr.bf16.mxu1 %v4131_v9 }
 0x330   :  { %3642 = vmatpush3.bf16.msra.mxu1 %v4126_v53 }
 0x331   :  { %3643 = vmatprep.subr.bf16.mxu1 %v4131_v9 }
 0x332   :  { %v1932_v33 = vpop.f32.mrb[44].mxu1 }
 0x333   :  { %v1939_v15 = vadd.f32 %v1932_v33, %v1795_v52  ;;  %v1934_v51 = vpop.f32.mrb[45].mxu1  ;;  %v2783_v52 = vlaneseq }
 0x334   :  { %v1940_v1 = vadd.f32 %v1934_v51, %v1797_v16  ;;  %v1936_v43 = vpop.f32.mrb[46].mxu1  ;;  %3644 = vmatpush3.bf16.msra.mxu1 %v4127_v18  ;;  %v2781_v16 = vld [vmem:[%s5328_s4] sm:$0x3] }
 0x335   :  { %v1937_v42 = vpop.f32.mrb[47].mxu1  ;;  %3645 = vmatprep.subr.bf16.mxu1 %v4131_v9  ;;  %v2784_v28 = vshrl.u32 %v2783_v52, 7 }
 0x337   :  { %v2785_v37 = vsub.s32 0, %v2784_v28  ;;  %v2789_v19 = vsub.s32 1, %v2784_v28 }
 0x338   :  { %3646 = vmatpush3.bf16.msra.mxu1 %v4128_v45 }
 0x339   :  { %v2786_v44 = vrot.slane %v2781_v16, %v2785_v37  ;;  %v2790_v47 = vrot.slane %v2781_v16, %v2789_v19  ;;  %3647 = vmatprep.subr.bf16.mxu1 %v4131_v9 }
 0x33c   :  { %3648 = vmatpush3.bf16.msra.mxu1 %v4129_v54 }
 0x352   :  { %v2072_v24 = vpop.f32.mrb[48].mxu1 }
 0x353   :  { %v2079_v49 = vadd.f32 %v2072_v24, %v1939_v15  ;;  %v2074_v60 = vpop.f32.mrb[49].mxu1 }
 0x354   :  { %v2080_v23 = vadd.f32 %v2074_v60, %v1940_v1  ;;  %v2076_v50 = vpop.f32.mrb[50].mxu1 }
 0x355   :  { %v2077_v57 = vpop.f32.mrb[51].mxu1 }
 0x372   :  { %v2212_v22 = vpop.f32.mrb[52].mxu1 }
 0x373   :  { %v2219_v8 = vadd.f32 %v2212_v22, %v2079_v49  ;;  %v2214_v6 = vpop.f32.mrb[53].mxu1 }
 0x374   :  { %v2220_v62 = vadd.f32 %v2214_v6, %v2080_v23  ;;  %v2216_v11 = vpop.f32.mrb[54].mxu1 }
 0x375   :  { %v2217_v30 = vpop.f32.mrb[55].mxu1 }
 0x392   :  { %v2352_v63 = vpop.f32.mrb[56].mxu1 }
 0x393   :  { %v2359_v17 = vadd.f32 %v2352_v63, %v2219_v8  ;;  %v2354_v2 = vpop.f32.mrb[57].mxu1 }
 0x394   :  { %v2360_v31 = vadd.f32 %v2354_v2, %v2220_v62  ;;  %v2356_v7 = vpop.f32.mrb[58].mxu1 }
 0x395   :  { %v2357_v48 = vpop.f32.mrb[59].mxu1 }
 0x3b2   :  { %v2492_v56 = vpop.f32.mrb[60].mxu1 }
 0x3b3   :  { %v2499_v29 = vadd.f32 %v2492_v56, %v2359_v17  ;;  %v2494_v41 = vpop.f32.mrb[61].mxu1 }
 0x3b4   :  { %v2500_v20 = vadd.f32 %v2494_v41, %v2360_v31  ;;  %v2496_v36 = vpop.f32.mrb[62].mxu1 }
 0x3b5   :  { %v2497_v0 = vpop.f32.mrb[63].mxu1 }
 0x3d2   :  { %v2632_v38 = vpop.f32.mrb[64].mxu1 }
 0x3d3   :  { %v2639_v10 = vadd.f32 %v2632_v38, %v2499_v29  ;;  %v2634_v26 = vpop.f32.mrb[65].mxu1 }
 0x3d4   :  { %v2640_v13 = vadd.f32 %v2634_v26, %v2500_v20  ;;  %v2636_v27 = vpop.f32.mrb[66].mxu1 }
 0x3d5   :  { %v2637_v35 = vpop.f32.mrb[67].mxu1 }
 0x3f2   :  { %v2772_v34 = vpop.f32.mrb[68].mxu1 }
 0x3f3   :  { %v2779_v12 = vadd.f32 %v2772_v34, %v2639_v10  ;;  %v2774_v39 = vpop.f32.mrb[69].mxu1 }
 0x3f4   :  { %v2780_v46 = vadd.f32 %v2774_v39, %v2640_v13  ;;  %v2776_v25 = vpop.f32.mrb[70].mxu1 }
 0x3f5   :  { %v2793_v40 = vadd.f32 %v2786_v44, %v2779_v12  ;;  %v2777_v33 = vpop.f32.mrb[71].mxu1 }
 0x3f6   :  { %v2794_v15 = vadd.f32 %v2790_v47, %v2780_v46 }
 0x3f7   :  { %v2795_v51 = vmax.f32 %v2793_v40, 0.0 }
 0x3f8   :  { %v2796_v1 = vmax.f32 %v2794_v15, 0.0 }
 0x3f9   :  { %v2797_v42 = vpack.c.bf16 %v2795_v51, %v2795_v51 }
 0x3fa   :  { %v2798_v43 = vpack.c.bf16 %v2796_v1, %v2796_v1 }
 0x3fc   :  { %2966 = vmatprep.mubr.bf16.mxu0 %v2798_v43 }
 0x3fd   :  { %2967 = vmatmul.mubr.bf16.vlgmr.msra.gmra.mrb[72].mxu0 %v2797_v42 }
 0x4d0   :  { %v3574_v4 = vpop.f32.mrb[72].mxu0 }
 0x4d1   :  { %v3575_v24 = vpop.f32.mrb[73].mxu0 }
 0x4d2   :  { %v3576_v49 = vadd.f32 %v3575_v24, %v3574_v4  ;;  %v3577_v60 = vpop.f32.mrb[74].mxu0 }
 0x4d3   :  { %v3578_v23 = vpop.f32.mrb[75].mxu0 }
 0x4d4   :  { %v2969_v50 = vadd.f32 %v3576_v49, %v3510_v59 }
 0x4d6   :  { %v2974_v57 = vmax.f32 %v2969_v50, 0.0 }
 0x4d8   :  { %v2975_v21 = vpack.c.bf16 %v2974_v57, %v2974_v57 }
 0x4da   :  { %3650 = vmatmul.mubr.bf16.vlgmr.msra.gmra.mrb[72].mxu1 %v2975_v21 }
 0x5ad   :  { %v3081_v58 = vpop.f32.mrb[72].mxu1 }
 0x5ae   :  { %v3082_v3 = vadd.f32 %v3527_v61, %v3081_v58  ;;  %v3651_v22 = vpop.f32.mrb[73].mxu1 }
 0x5af   :  { %v3084_v8 = vpop.f32.mrb[74].mxu1 }
 0x5b0   :  { %3088 = vst.msk [vmem:[%s5331_s9] sm:$0xff] %vm3087_vm2, %v3082_v3  ;;  %v3652_v6 = vpop.f32.mrb[75].mxu1 }

</bundles_post_ra>
